<compile_context>
chip_gen: v6e
topology: v6e:2x2x1
jax: 0.10.0
libtpu: 0.0.40
codegen_flags: <defaults>
</compile_context>

<pallas_src>
import jax
import jax.numpy as jnp
from jax.experimental import pallas as pl
from jax.experimental.pallas import tpu as pltpu


def _round_up(x, m):
    return (x + m - 1) // m * m


def char_rnn_chunk_kernel(ids_ref, h0_ref, w_big_ref, wl_ref, bl_ref,
                          h_seq_ref, logp_ref, h_scr):
    """One grid step == CHUNK RNN timesteps; h carried in VMEM scratch."""
    chunk, B, _ = ids_ref.shape
    Vp = bl_ref.shape[1]

    @pl.when(pl.program_id(0) == 0)
    def _():
        h_scr[...] = h0_ref[...]

    # Hoisted loop invariants (iota is NOT CSE'd by JAX if left in the body).
    iota = jax.lax.broadcasted_iota(jnp.int32, (B, Vp), 1)      # (B, Vp)
    bl = bl_ref[...]                                            # (1, Vp)

    def step_fn(step, h_prev):
        # --- fused embedding + update: single K=256 MXU push ----------------
        ids = ids_ref[step]                                     # (B, 1) int32
        onehot = (iota == ids).astype(jnp.float32)              # (B, Vp)
        x_and_h = jnp.concatenate([onehot, h_prev], axis=-1)    # (B, Vp+Hp)
        pre = jnp.dot(x_and_h, w_big_ref[...],
                      preferred_element_type=jnp.float32)       # (B, Hp)
        h_next = jnp.tanh(pre)          # padded hidden lanes stay exactly 0
        h_seq_ref[step] = h_next

        # --- rnn_to_logits + log_softmax ------------------------------------
        # padded vocab lanes carry bias -1e30 -> exp underflows to 0 in sum
        logits = (jnp.dot(h_next, wl_ref[...],
                          preferred_element_type=jnp.float32) + bl)  # (B, Vp)
        m = jnp.max(logits, axis=-1, keepdims=True)
        lse = m + jnp.log(jnp.sum(jnp.exp(logits - m), axis=-1, keepdims=True))
        logp_ref[step] = logits - lse
        return h_next

    h_last = jax.lax.fori_loop(0, chunk, step_fn, h_scr[...], unroll=True)
    h_scr[...] = h_last


def char_rnn_forward_sequence(x_ids, h0, params, *, chunk=None):
    """Run the CharRNNCell forward for every timestep inside ONE pallas_call.

    x_ids: int32 [T, B] token ids in [0, num_tokens)
    h0:    float32 [B, H] initial hidden state
    Returns (h_seq [T,B,H], logp_seq [T,B,V]).
    """
    emb, wu_e, wu_h, bu, wl, bl = (params["emb"], params["wu_e"],
                                   params["wu_h"], params["bu"],
                                   params["wl"], params["bl"])
    T, B = x_ids.shape
    V, _E = emb.shape
    H = h0.shape[1]
    Hp = _round_up(H, 128)
    Vp = _round_up(V, 128)
    Bp = _round_up(B, 8)

    if chunk is None:
        chunk = T if T <= 64 else 32           # whole sequence in one grid step
    n_chunks = -(-T // chunk)
    Tp = n_chunks * chunk

    # Fused K=256 update weight: rows [0,V) = emb @ Wu_e + bu (exact row
    # selection via onehot), rows [Vp, Vp+H) = Wu_h; everything zero-padded.
    fused = emb @ wu_e + bu[None, :]                              # [V, H]
    w_big = (jnp.zeros((Vp + Hp, Hp), jnp.float32)
             .at[:V, :H].set(fused)
             .at[Vp:Vp + H, :H].set(wu_h))
    wl_p = jnp.zeros((Hp, Vp), jnp.float32).at[:H, :V].set(wl)
    bl_p = jnp.full((1, Vp), -1e30, jnp.float32).at[0, :V].set(bl)
    h0_p = jnp.zeros((Bp, Hp), jnp.float32).at[:B, :H].set(h0)
    ids3d = (jnp.zeros((Tp, Bp, 1), jnp.int32)
             .at[:T, :B, 0].set(x_ids.astype(jnp.int32)))

    const = lambda c: (0, 0)   # weights resident across the whole grid
    grid_spec = pltpu.PrefetchScalarGridSpec(
        num_scalar_prefetch=0,
        grid=(n_chunks,),
        in_specs=[
            pl.BlockSpec((chunk, Bp, 1), lambda c: (c, 0, 0)),   # ids per chunk
            pl.BlockSpec((Bp, Hp), const),                       # h0
            pl.BlockSpec((Vp + Hp, Hp), const),                  # fused update W
            pl.BlockSpec((Hp, Vp), const),                       # W_logits
            pl.BlockSpec((1, Vp), const),                        # b_logits (padded)
        ],
        out_specs=[
            pl.BlockSpec((chunk, Bp, Hp), lambda c: (c, 0, 0)),  # h_seq chunk
            pl.BlockSpec((chunk, Bp, Vp), lambda c: (c, 0, 0)),  # logp chunk
        ],
        scratch_shapes=[pltpu.VMEM((Bp, Hp), jnp.float32)],      # carried hidden
    )

    h_seq_p, logp_p = pl.pallas_call(
        char_rnn_chunk_kernel,
        out_shape=(jax.ShapeDtypeStruct((Tp, Bp, Hp), jnp.float32),
                   jax.ShapeDtypeStruct((Tp, Bp, Vp), jnp.float32)),
        grid_spec=grid_spec,
        compiler_params=pltpu.CompilerParams(
            dimension_semantics=("arbitrary",)),   # chunks carry state
    )(ids3d, h0_p, w_big, wl_p, bl_p)

    return h_seq_p[:T, :B, :H], logp_p[:T, :B, :V]


def char_rnn_cell(x, h_prev, params):
    """Single-step interface matching CharRNNCell.forward(x, h_prev)."""
    h_seq, lp_seq = char_rnn_forward_sequence(x[None, :], h_prev, params)
    return h_seq[0], lp_seq[0]


def init_params(key, num_tokens=32, embedding_size=16, rnn_num_units=64):
    """Deterministic init mirroring the PyTorch module's parameter shapes.

    Weights are stored [in_features, out_features] (transpose of nn.Linear).
    """
    E, H, V = embedding_size, rnn_num_units, num_tokens
    k_emb, k_wu, k_bu, k_wl, k_bl = jax.random.split(key, 5)
    emb = jax.random.normal(k_emb, (V, E), jnp.float32)           # nn.Embedding
    bound_u = 1.0 / jnp.sqrt(jnp.float32(E + H))                  # nn.Linear(E+H, H)
    wu = jax.random.uniform(k_wu, (E + H, H), jnp.float32, -bound_u, bound_u)
    bu = jax.random.uniform(k_bu, (H,), jnp.float32, -bound_u, bound_u)
    bound_l = 1.0 / jnp.sqrt(jnp.float32(H))                      # nn.Linear(H, V)
    wl = jax.random.uniform(k_wl, (H, V), jnp.float32, -bound_l, bound_l)
    bl = jax.random.uniform(k_bl, (V,), jnp.float32, -bound_l, bound_l)
    return {"emb": emb, "wu_e": wu[:E], "wu_h": wu[E:], "bu": bu,
            "wl": wl, "bl": bl}


if __name__ == "__main__":
    key = jax.random.PRNGKey(0)
    T, B, V, E, H = 16, 8, 32, 16, 64

    k_params, k_ids = jax.random.split(key, 2)
    params = init_params(k_params, num_tokens=V, embedding_size=E,
                         rnn_num_units=H)
    x_ids = jax.random.randint(k_ids, (T, B), 0, V, dtype=jnp.int32)
    h0 = jnp.zeros((B, H), jnp.float32)          # initial_state(batch_size)

    h_seq, logp_seq = char_rnn_forward_sequence(x_ids, h0, params)
    jax.block_until_ready((h_seq, logp_seq))

    # pure-JAX reference: apply the PyTorch module's forward step by step
    h = h0
    h_ref_l, lp_ref_l = [], []
    for t in range(T):
        x_emb = params["emb"][x_ids[t]]
        pre = x_emb @ params["wu_e"] + h @ params["wu_h"] + params["bu"]
        h = jnp.tanh(pre)
        logits = h @ params["wl"] + params["bl"]
        h_ref_l.append(h)
        lp_ref_l.append(jax.nn.log_softmax(logits, axis=-1))
    h_ref = jnp.stack(h_ref_l)
    lp_ref = jnp.stack(lp_ref_l)

    assert h_seq.shape == (T, B, H) and logp_seq.shape == (T, B, V)
    assert jnp.allclose(h_seq, h_ref, atol=1e-4, rtol=1e-4)
    assert jnp.allclose(logp_seq, lp_ref, atol=1e-4, rtol=1e-4)

    # single-step interface (== one CharRNNCell.forward call)
    h1, lp1 = char_rnn_cell(x_ids[0], h0, params)
    assert h1.shape == h0.shape
    assert jnp.allclose(h1, h_ref[0], atol=1e-4, rtol=1e-4)
    assert jnp.allclose(lp1, lp_ref[0], atol=1e-4, rtol=1e-4)

    print("KERNEL_OK")
</pallas_src>

<mosaic_0001>
module attributes {stable_mosaic.version = 11 : i64} {
  func.func @char_rnn_chunk_kernel(%arg0: i32, %arg1: memref<16x8x1xi32, #tpu.memory_space<vmem>>, %arg2: memref<8x128xf32, #tpu.memory_space<vmem>>, %arg3: memref<256x128xf32, #tpu.memory_space<vmem>>, %arg4: memref<128x128xf32, #tpu.memory_space<vmem>>, %arg5: memref<1x128xf32, #tpu.memory_space<vmem>>, %arg6: memref<16x8x128xf32, #tpu.memory_space<vmem>>, %arg7: memref<16x8x128xf32, #tpu.memory_space<vmem>>, %arg8: memref<8x128xf32, #tpu.memory_space<vmem>>) attributes {dimension_semantics = [#tpu.dimension_semantics<arbitrary>], iteration_bounds = array<i64: 1>, scalar_prefetch = 0 : i64, scratch_operands = 1 : i64, tpu.core_type = #tpu.core_type<tc>, window_params = [{transform_indices = @transform_0, window_bounds = array<i64: 16, 8, 1>}, {pipeline_mode = #tpu.pipeline_mode<synchronous>, transform_indices = @transform_1, window_bounds = array<i64: 8, 128>}, {pipeline_mode = #tpu.pipeline_mode<synchronous>, transform_indices = @transform_2, window_bounds = array<i64: 256, 128>}, {pipeline_mode = #tpu.pipeline_mode<synchronous>, transform_indices = @transform_3, window_bounds = array<i64: 128, 128>}, {pipeline_mode = #tpu.pipeline_mode<synchronous>, transform_indices = @transform_4, window_bounds = array<i64: 1, 128>}, {transform_indices = @transform_5, window_bounds = array<i64: 16, 8, 128>}, {transform_indices = @transform_6, window_bounds = array<i64: 16, 8, 128>}]} {
    %c0_i32 = arith.constant 0 : i32
    %0 = arith.cmpi eq, %arg0, %c0_i32 : i32
    %1 = arith.extui %0 : i1 to i32
    %c0_i32_0 = arith.constant 0 : i32
    %2 = arith.cmpi ne, %1, %c0_i32_0 : i32
    scf.if %2 {
      %c0_230 = arith.constant 0 : index
      %c0_231 = arith.constant 0 : index
      %551 = vector.load %arg2[%c0_230, %c0_231] : memref<8x128xf32, #tpu.memory_space<vmem>>, vector<8x128xf32>
      %c0_232 = arith.constant 0 : index
      %c0_233 = arith.constant 0 : index
      %552 = vector.load %arg8[%c0_232, %c0_233] : memref<8x128xf32, #tpu.memory_space<vmem>>, vector<8x128xf32>
      tpu.vector_store %arg8[%c0_232, %c0_233], %551 {strides = array<i32>} : memref<8x128xf32, #tpu.memory_space<vmem>>, vector<8x128xf32>,
    } else {
    }
    %3 = tpu.iota {dimensions = array<i32: 1>} : vector<8x128xi32>
    %c0 = arith.constant 0 : index
    %c0_1 = arith.constant 0 : index
    %4 = vector.load %arg5[%c0, %c0_1] : memref<1x128xf32, #tpu.memory_space<vmem>>, vector<1x128xf32>
    %c0_2 = arith.constant 0 : index
    %c0_3 = arith.constant 0 : index
    %5 = vector.load %arg8[%c0_2, %c0_3] : memref<8x128xf32, #tpu.memory_space<vmem>>, vector<8x128xf32>
    %c0_i32_4 = arith.constant 0 : i32
    %6 = arith.index_cast %c0_i32_4 : i32 to index
    %c0_5 = arith.constant 0 : index
    %c0_6 = arith.constant 0 : index
    %7 = vector.load %arg1[%6, %c0_5, %c0_6] : memref<16x8x1xi32, #tpu.memory_space<vmem>>, vector<1x8x1xi32>
    %8 = vector.shape_cast %7 : vector<1x8x1xi32> to vector<8x1xi32>
    %9 = vector.broadcast %8 : vector<8x1xi32> to vector<8x128xi32>
    %10 = arith.cmpi eq, %3, %9 : vector<8x128xi32>
    %11 = arith.extui %10 : vector<8x128xi1> to vector<8x128xi32>
    %12 = arith.sitofp %11 : vector<8x128xi32> to vector<8x128xf32>
    %13 = tpu.concatenate %12, %5 in 1 : vector<8x128xf32>, vector<8x128xf32> -> vector<8x256xf32>
    %c0_7 = arith.constant 0 : index
    %c0_8 = arith.constant 0 : index
    %14 = vector.load %arg3[%c0_7, %c0_8] : memref<256x128xf32, #tpu.memory_space<vmem>>, vector<256x128xf32>
    %cst = arith.constant dense<0.000000e+00> : vector<8x128xf32>
    %15 = tpu.matmul %13, %14, %cst {dimension_numbers = #tpu.dot_dimension_numbers<[1], [0], [0], [1], [0, 0, 1, 1], [], []>} : vector<8x256xf32>, vector<256x128xf32>, vector<8x128xf32> -> vector<8x128xf32>
    %16 = math.tanh %15 : vector<8x128xf32>
    %17 = arith.index_cast %c0_i32_4 : i32 to index
    %c0_9 = arith.constant 0 : index
    %c0_10 = arith.constant 0 : index
    %18 = vector.load %arg6[%17, %c0_9, %c0_10] : memref<16x8x128xf32, #tpu.memory_space<vmem>>, vector<1x8x128xf32>
    %19 = vector.shape_cast %18 : vector<1x8x128xf32> to vector<8x128xf32>
    %20 = vector.shape_cast %16 : vector<8x128xf32> to vector<1x8x128xf32>
    tpu.vector_store %arg6[%17, %c0_9, %c0_10], %20 {strides = array<i32>} : memref<16x8x128xf32, #tpu.memory_space<vmem>>, vector<1x8x128xf32>,
    %c0_11 = arith.constant 0 : index
    %c0_12 = arith.constant 0 : index
    %21 = vector.load %arg4[%c0_11, %c0_12] : memref<128x128xf32, #tpu.memory_space<vmem>>, vector<128x128xf32>
    %cst_13 = arith.constant dense<0.000000e+00> : vector<8x128xf32>
    %22 = tpu.matmul %16, %21, %cst_13 {dimension_numbers = #tpu.dot_dimension_numbers<[1], [0], [0], [1], [0, 0, 1, 1], [], []>} : vector<8x128xf32>, vector<128x128xf32>, vector<8x128xf32> -> vector<8x128xf32>
    %23 = vector.broadcast %4 : vector<1x128xf32> to vector<8x128xf32>
    %24 = arith.addf %22, %23 : vector<8x128xf32>
    %cst_14 = arith.constant dense<0xFF800000> : vector<8xf32>
    %25 = vector.multi_reduction <maximumf>, %24, %cst_14 [1] : vector<8x128xf32> to vector<8xf32>
    %26 = vector.shape_cast %25 : vector<8xf32> to vector<8x1xf32>
    %27 = vector.broadcast %26 : vector<8x1xf32> to vector<8x128xf32>
    %28 = arith.subf %24, %27 : vector<8x128xf32>
    %29 = math.exp %28 : vector<8x128xf32>
    %cst_15 = arith.constant dense<0.000000e+00> : vector<8xf32>
    %30 = vector.multi_reduction <add>, %29, %cst_15 [1] : vector<8x128xf32> to vector<8xf32>
    %31 = vector.shape_cast %30 : vector<8xf32> to vector<8x1xf32>
    %32 = math.log %31 : vector<8x1xf32>
    %33 = arith.addf %26, %32 : vector<8x1xf32>
    %34 = vector.broadcast %33 : vector<8x1xf32> to vector<8x128xf32>
    %35 = arith.subf %24, %34 : vector<8x128xf32>
    %36 = arith.index_cast %c0_i32_4 : i32 to index
    %c0_16 = arith.constant 0 : index
    %c0_17 = arith.constant 0 : index
    %37 = vector.load %arg7[%36, %c0_16, %c0_17] : memref<16x8x128xf32, #tpu.memory_space<vmem>>, vector<1x8x128xf32>
    %38 = vector.shape_cast %37 : vector<1x8x128xf32> to vector<8x128xf32>
    %39 = vector.shape_cast %35 : vector<8x128xf32> to vector<1x8x128xf32>
    tpu.vector_store %arg7[%36, %c0_16, %c0_17], %39 {strides = array<i32>} : memref<16x8x128xf32, #tpu.memory_space<vmem>>, vector<1x8x128xf32>,
    %c1_i32 = arith.constant 1 : i32
    %40 = arith.index_cast %c1_i32 : i32 to index
    %c0_18 = arith.constant 0 : index
    %c0_19 = arith.constant 0 : index
    %41 = vector.load %arg1[%40, %c0_18, %c0_19] : memref<16x8x1xi32, #tpu.memory_space<vmem>>, vector<1x8x1xi32>
    %42 = vector.shape_cast %41 : vector<1x8x1xi32> to vector<8x1xi32>
    %43 = vector.broadcast %42 : vector<8x1xi32> to vector<8x128xi32>
    %44 = arith.cmpi eq, %3, %43 : vector<8x128xi32>
    %45 = arith.extui %44 : vector<8x128xi1> to vector<8x128xi32>
    %46 = arith.sitofp %45 : vector<8x128xi32> to vector<8x128xf32>
    %47 = tpu.concatenate %46, %16 in 1 : vector<8x128xf32>, vector<8x128xf32> -> vector<8x256xf32>
    %c0_20 = arith.constant 0 : index
    %c0_21 = arith.constant 0 : index
    %48 = vector.load %arg3[%c0_20, %c0_21] : memref<256x128xf32, #tpu.memory_space<vmem>>, vector<256x128xf32>
    %cst_22 = arith.constant dense<0.000000e+00> : vector<8x128xf32>
    %49 = tpu.matmul %47, %48, %cst_22 {dimension_numbers = #tpu.dot_dimension_numbers<[1], [0], [0], [1], [0, 0, 1, 1], [], []>} : vector<8x256xf32>, vector<256x128xf32>, vector<8x128xf32> -> vector<8x128xf32>
    %50 = math.tanh %49 : vector<8x128xf32>
    %51 = arith.index_cast %c1_i32 : i32 to index
    %c0_23 = arith.constant 0 : index
    %c0_24 = arith.constant 0 : index
    %52 = vector.load %arg6[%51, %c0_23, %c0_24] : memref<16x8x128xf32, #tpu.memory_space<vmem>>, vector<1x8x128xf32>
    %53 = vector.shape_cast %52 : vector<1x8x128xf32> to vector<8x128xf32>
    %54 = vector.shape_cast %50 : vector<8x128xf32> to vector<1x8x128xf32>
    tpu.vector_store %arg6[%51, %c0_23, %c0_24], %54 {strides = array<i32>} : memref<16x8x128xf32, #tpu.memory_space<vmem>>, vector<1x8x128xf32>,
    %c0_25 = arith.constant 0 : index
    %c0_26 = arith.constant 0 : index
    %55 = vector.load %arg4[%c0_25, %c0_26] : memref<128x128xf32, #tpu.memory_space<vmem>>, vector<128x128xf32>
    %cst_27 = arith.constant dense<0.000000e+00> : vector<8x128xf32>
    %56 = tpu.matmul %50, %55, %cst_27 {dimension_numbers = #tpu.dot_dimension_numbers<[1], [0], [0], [1], [0, 0, 1, 1], [], []>} : vector<8x128xf32>, vector<128x128xf32>, vector<8x128xf32> -> vector<8x128xf32>
    %57 = vector.broadcast %4 : vector<1x128xf32> to vector<8x128xf32>
    %58 = arith.addf %56, %57 : vector<8x128xf32>
    %cst_28 = arith.constant dense<0xFF800000> : vector<8xf32>
    %59 = vector.multi_reduction <maximumf>, %58, %cst_28 [1] : vector<8x128xf32> to vector<8xf32>
    %60 = vector.shape_cast %59 : vector<8xf32> to vector<8x1xf32>
    %61 = vector.broadcast %60 : vector<8x1xf32> to vector<8x128xf32>
    %62 = arith.subf %58, %61 : vector<8x128xf32>
    %63 = math.exp %62 : vector<8x128xf32>
    %cst_29 = arith.constant dense<0.000000e+00> : vector<8xf32>
    %64 = vector.multi_reduction <add>, %63, %cst_29 [1] : vector<8x128xf32> to vector<8xf32>
    %65 = vector.shape_cast %64 : vector<8xf32> to vector<8x1xf32>
    %66 = math.log %65 : vector<8x1xf32>
    %67 = arith.addf %60, %66 : vector<8x1xf32>
    %68 = vector.broadcast %67 : vector<8x1xf32> to vector<8x128xf32>
    %69 = arith.subf %58, %68 : vector<8x128xf32>
    %70 = arith.index_cast %c1_i32 : i32 to index
    %c0_30 = arith.constant 0 : index
    %c0_31 = arith.constant 0 : index
    %71 = vector.load %arg7[%70, %c0_30, %c0_31] : memref<16x8x128xf32, #tpu.memory_space<vmem>>, vector<1x8x128xf32>
    %72 = vector.shape_cast %71 : vector<1x8x128xf32> to vector<8x128xf32>
    %73 = vector.shape_cast %69 : vector<8x128xf32> to vector<1x8x128xf32>
    tpu.vector_store %arg7[%70, %c0_30, %c0_31], %73 {strides = array<i32>} : memref<16x8x128xf32, #tpu.memory_space<vmem>>, vector<1x8x128xf32>,
    %c2_i32 = arith.constant 2 : i32
    %74 = arith.index_cast %c2_i32 : i32 to index
    %c0_32 = arith.constant 0 : index
    %c0_33 = arith.constant 0 : index
    %75 = vector.load %arg1[%74, %c0_32, %c0_33] : memref<16x8x1xi32, #tpu.memory_space<vmem>>, vector<1x8x1xi32>
    %76 = vector.shape_cast %75 : vector<1x8x1xi32> to vector<8x1xi32>
    %77 = vector.broadcast %76 : vector<8x1xi32> to vector<8x128xi32>
    %78 = arith.cmpi eq, %3, %77 : vector<8x128xi32>
    %79 = arith.extui %78 : vector<8x128xi1> to vector<8x128xi32>
    %80 = arith.sitofp %79 : vector<8x128xi32> to vector<8x128xf32>
    %81 = tpu.concatenate %80, %50 in 1 : vector<8x128xf32>, vector<8x128xf32> -> vector<8x256xf32>
    %c0_34 = arith.constant 0 : index
    %c0_35 = arith.constant 0 : index
    %82 = vector.load %arg3[%c0_34, %c0_35] : memref<256x128xf32, #tpu.memory_space<vmem>>, vector<256x128xf32>
    %cst_36 = arith.constant dense<0.000000e+00> : vector<8x128xf32>
    %83 = tpu.matmul %81, %82, %cst_36 {dimension_numbers = #tpu.dot_dimension_numbers<[1], [0], [0], [1], [0, 0, 1, 1], [], []>} : vector<8x256xf32>, vector<256x128xf32>, vector<8x128xf32> -> vector<8x128xf32>
    %84 = math.tanh %83 : vector<8x128xf32>
    %85 = arith.index_cast %c2_i32 : i32 to index
    %c0_37 = arith.constant 0 : index
    %c0_38 = arith.constant 0 : index
    %86 = vector.load %arg6[%85, %c0_37, %c0_38] : memref<16x8x128xf32, #tpu.memory_space<vmem>>, vector<1x8x128xf32>
    %87 = vector.shape_cast %86 : vector<1x8x128xf32> to vector<8x128xf32>
    %88 = vector.shape_cast %84 : vector<8x128xf32> to vector<1x8x128xf32>
    tpu.vector_store %arg6[%85, %c0_37, %c0_38], %88 {strides = array<i32>} : memref<16x8x128xf32, #tpu.memory_space<vmem>>, vector<1x8x128xf32>,
    %c0_39 = arith.constant 0 : index
    %c0_40 = arith.constant 0 : index
    %89 = vector.load %arg4[%c0_39, %c0_40] : memref<128x128xf32, #tpu.memory_space<vmem>>, vector<128x128xf32>
    %cst_41 = arith.constant dense<0.000000e+00> : vector<8x128xf32>
    %90 = tpu.matmul %84, %89, %cst_41 {dimension_numbers = #tpu.dot_dimension_numbers<[1], [0], [0], [1], [0, 0, 1, 1], [], []>} : vector<8x128xf32>, vector<128x128xf32>, vector<8x128xf32> -> vector<8x128xf32>
    %91 = vector.broadcast %4 : vector<1x128xf32> to vector<8x128xf32>
    %92 = arith.addf %90, %91 : vector<8x128xf32>
    %cst_42 = arith.constant dense<0xFF800000> : vector<8xf32>
    %93 = vector.multi_reduction <maximumf>, %92, %cst_42 [1] : vector<8x128xf32> to vector<8xf32>
    %94 = vector.shape_cast %93 : vector<8xf32> to vector<8x1xf32>
    %95 = vector.broadcast %94 : vector<8x1xf32> to vector<8x128xf32>
    %96 = arith.subf %92, %95 : vector<8x128xf32>
    %97 = math.exp %96 : vector<8x128xf32>
    %cst_43 = arith.constant dense<0.000000e+00> : vector<8xf32>
    %98 = vector.multi_reduction <add>, %97, %cst_43 [1] : vector<8x128xf32> to vector<8xf32>
    %99 = vector.shape_cast %98 : vector<8xf32> to vector<8x1xf32>
    %100 = math.log %99 : vector<8x1xf32>
    %101 = arith.addf %94, %100 : vector<8x1xf32>
    %102 = vector.broadcast %101 : vector<8x1xf32> to vector<8x128xf32>
    %103 = arith.subf %92, %102 : vector<8x128xf32>
    %104 = arith.index_cast %c2_i32 : i32 to index
    %c0_44 = arith.constant 0 : index
    %c0_45 = arith.constant 0 : index
    %105 = vector.load %arg7[%104, %c0_44, %c0_45] : memref<16x8x128xf32, #tpu.memory_space<vmem>>, vector<1x8x128xf32>
    %106 = vector.shape_cast %105 : vector<1x8x128xf32> to vector<8x128xf32>
    %107 = vector.shape_cast %103 : vector<8x128xf32> to vector<1x8x128xf32>
    tpu.vector_store %arg7[%104, %c0_44, %c0_45], %107 {strides = array<i32>} : memref<16x8x128xf32, #tpu.memory_space<vmem>>, vector<1x8x128xf32>,
    %c3_i32 = arith.constant 3 : i32
    %108 = arith.index_cast %c3_i32 : i32 to index
    %c0_46 = arith.constant 0 : index
    %c0_47 = arith.constant 0 : index
    %109 = vector.load %arg1[%108, %c0_46, %c0_47] : memref<16x8x1xi32, #tpu.memory_space<vmem>>, vector<1x8x1xi32>
    %110 = vector.shape_cast %109 : vector<1x8x1xi32> to vector<8x1xi32>
    %111 = vector.broadcast %110 : vector<8x1xi32> to vector<8x128xi32>
    %112 = arith.cmpi eq, %3, %111 : vector<8x128xi32>
    %113 = arith.extui %112 : vector<8x128xi1> to vector<8x128xi32>
    %114 = arith.sitofp %113 : vector<8x128xi32> to vector<8x128xf32>
    %115 = tpu.concatenate %114, %84 in 1 : vector<8x128xf32>, vector<8x128xf32> -> vector<8x256xf32>
    %c0_48 = arith.constant 0 : index
    %c0_49 = arith.constant 0 : index
    %116 = vector.load %arg3[%c0_48, %c0_49] : memref<256x128xf32, #tpu.memory_space<vmem>>, vector<256x128xf32>
    %cst_50 = arith.constant dense<0.000000e+00> : vector<8x128xf32>
    %117 = tpu.matmul %115, %116, %cst_50 {dimension_numbers = #tpu.dot_dimension_numbers<[1], [0], [0], [1], [0, 0, 1, 1], [], []>} : vector<8x256xf32>, vector<256x128xf32>, vector<8x128xf32> -> vector<8x128xf32>
    %118 = math.tanh %117 : vector<8x128xf32>
    %119 = arith.index_cast %c3_i32 : i32 to index
    %c0_51 = arith.constant 0 : index
    %c0_52 = arith.constant 0 : index
    %120 = vector.load %arg6[%119, %c0_51, %c0_52] : memref<16x8x128xf32, #tpu.memory_space<vmem>>, vector<1x8x128xf32>
    %121 = vector.shape_cast %120 : vector<1x8x128xf32> to vector<8x128xf32>
    %122 = vector.shape_cast %118 : vector<8x128xf32> to vector<1x8x128xf32>
    tpu.vector_store %arg6[%119, %c0_51, %c0_52], %122 {strides = array<i32>} : memref<16x8x128xf32, #tpu.memory_space<vmem>>, vector<1x8x128xf32>,
    %c0_53 = arith.constant 0 : index
    %c0_54 = arith.constant 0 : index
    %123 = vector.load %arg4[%c0_53, %c0_54] : memref<128x128xf32, #tpu.memory_space<vmem>>, vector<128x128xf32>
    %cst_55 = arith.constant dense<0.000000e+00> : vector<8x128xf32>
    %124 = tpu.matmul %118, %123, %cst_55 {dimension_numbers = #tpu.dot_dimension_numbers<[1], [0], [0], [1], [0, 0, 1, 1], [], []>} : vector<8x128xf32>, vector<128x128xf32>, vector<8x128xf32> -> vector<8x128xf32>
    %125 = vector.broadcast %4 : vector<1x128xf32> to vector<8x128xf32>
    %126 = arith.addf %124, %125 : vector<8x128xf32>
    %cst_56 = arith.constant dense<0xFF800000> : vector<8xf32>
    %127 = vector.multi_reduction <maximumf>, %126, %cst_56 [1] : vector<8x128xf32> to vector<8xf32>
    %128 = vector.shape_cast %127 : vector<8xf32> to vector<8x1xf32>
    %129 = vector.broadcast %128 : vector<8x1xf32> to vector<8x128xf32>
    %130 = arith.subf %126, %129 : vector<8x128xf32>
    %131 = math.exp %130 : vector<8x128xf32>
    %cst_57 = arith.constant dense<0.000000e+00> : vector<8xf32>
    %132 = vector.multi_reduction <add>, %131, %cst_57 [1] : vector<8x128xf32> to vector<8xf32>
    %133 = vector.shape_cast %132 : vector<8xf32> to vector<8x1xf32>
    %134 = math.log %133 : vector<8x1xf32>
    %135 = arith.addf %128, %134 : vector<8x1xf32>
    %136 = vector.broadcast %135 : vector<8x1xf32> to vector<8x128xf32>
    %137 = arith.subf %126, %136 : vector<8x128xf32>
    %138 = arith.index_cast %c3_i32 : i32 to index
    %c0_58 = arith.constant 0 : index
    %c0_59 = arith.constant 0 : index
    %139 = vector.load %arg7[%138, %c0_58, %c0_59] : memref<16x8x128xf32, #tpu.memory_space<vmem>>, vector<1x8x128xf32>
    %140 = vector.shape_cast %139 : vector<1x8x128xf32> to vector<8x128xf32>
    %141 = vector.shape_cast %137 : vector<8x128xf32> to vector<1x8x128xf32>
    tpu.vector_store %arg7[%138, %c0_58, %c0_59], %141 {strides = array<i32>} : memref<16x8x128xf32, #tpu.memory_space<vmem>>, vector<1x8x128xf32>,
    %c4_i32 = arith.constant 4 : i32
    %142 = arith.index_cast %c4_i32 : i32 to index
    %c0_60 = arith.constant 0 : index
    %c0_61 = arith.constant 0 : index
    %143 = vector.load %arg1[%142, %c0_60, %c0_61] : memref<16x8x1xi32, #tpu.memory_space<vmem>>, vector<1x8x1xi32>
    %144 = vector.shape_cast %143 : vector<1x8x1xi32> to vector<8x1xi32>
    %145 = vector.broadcast %144 : vector<8x1xi32> to vector<8x128xi32>
    %146 = arith.cmpi eq, %3, %145 : vector<8x128xi32>
    %147 = arith.extui %146 : vector<8x128xi1> to vector<8x128xi32>
    %148 = arith.sitofp %147 : vector<8x128xi32> to vector<8x128xf32>
    %149 = tpu.concatenate %148, %118 in 1 : vector<8x128xf32>, vector<8x128xf32> -> vector<8x256xf32>
    %c0_62 = arith.constant 0 : index
    %c0_63 = arith.constant 0 : index
    %150 = vector.load %arg3[%c0_62, %c0_63] : memref<256x128xf32, #tpu.memory_space<vmem>>, vector<256x128xf32>
    %cst_64 = arith.constant dense<0.000000e+00> : vector<8x128xf32>
    %151 = tpu.matmul %149, %150, %cst_64 {dimension_numbers = #tpu.dot_dimension_numbers<[1], [0], [0], [1], [0, 0, 1, 1], [], []>} : vector<8x256xf32>, vector<256x128xf32>, vector<8x128xf32> -> vector<8x128xf32>
    %152 = math.tanh %151 : vector<8x128xf32>
    %153 = arith.index_cast %c4_i32 : i32 to index
    %c0_65 = arith.constant 0 : index
    %c0_66 = arith.constant 0 : index
    %154 = vector.load %arg6[%153, %c0_65, %c0_66] : memref<16x8x128xf32, #tpu.memory_space<vmem>>, vector<1x8x128xf32>
    %155 = vector.shape_cast %154 : vector<1x8x128xf32> to vector<8x128xf32>
    %156 = vector.shape_cast %152 : vector<8x128xf32> to vector<1x8x128xf32>
    tpu.vector_store %arg6[%153, %c0_65, %c0_66], %156 {strides = array<i32>} : memref<16x8x128xf32, #tpu.memory_space<vmem>>, vector<1x8x128xf32>,
    %c0_67 = arith.constant 0 : index
    %c0_68 = arith.constant 0 : index
    %157 = vector.load %arg4[%c0_67, %c0_68] : memref<128x128xf32, #tpu.memory_space<vmem>>, vector<128x128xf32>
    %cst_69 = arith.constant dense<0.000000e+00> : vector<8x128xf32>
    %158 = tpu.matmul %152, %157, %cst_69 {dimension_numbers = #tpu.dot_dimension_numbers<[1], [0], [0], [1], [0, 0, 1, 1], [], []>} : vector<8x128xf32>, vector<128x128xf32>, vector<8x128xf32> -> vector<8x128xf32>
    %159 = vector.broadcast %4 : vector<1x128xf32> to vector<8x128xf32>
    %160 = arith.addf %158, %159 : vector<8x128xf32>
    %cst_70 = arith.constant dense<0xFF800000> : vector<8xf32>
    %161 = vector.multi_reduction <maximumf>, %160, %cst_70 [1] : vector<8x128xf32> to vector<8xf32>
    %162 = vector.shape_cast %161 : vector<8xf32> to vector<8x1xf32>
    %163 = vector.broadcast %162 : vector<8x1xf32> to vector<8x128xf32>
    %164 = arith.subf %160, %163 : vector<8x128xf32>
    %165 = math.exp %164 : vector<8x128xf32>
    %cst_71 = arith.constant dense<0.000000e+00> : vector<8xf32>
    %166 = vector.multi_reduction <add>, %165, %cst_71 [1] : vector<8x128xf32> to vector<8xf32>
    %167 = vector.shape_cast %166 : vector<8xf32> to vector<8x1xf32>
    %168 = math.log %167 : vector<8x1xf32>
    %169 = arith.addf %162, %168 : vector<8x1xf32>
    %170 = vector.broadcast %169 : vector<8x1xf32> to vector<8x128xf32>
    %171 = arith.subf %160, %170 : vector<8x128xf32>
    %172 = arith.index_cast %c4_i32 : i32 to index
    %c0_72 = arith.constant 0 : index
    %c0_73 = arith.constant 0 : index
    %173 = vector.load %arg7[%172, %c0_72, %c0_73] : memref<16x8x128xf32, #tpu.memory_space<vmem>>, vector<1x8x128xf32>
    %174 = vector.shape_cast %173 : vector<1x8x128xf32> to vector<8x128xf32>
    %175 = vector.shape_cast %171 : vector<8x128xf32> to vector<1x8x128xf32>
    tpu.vector_store %arg7[%172, %c0_72, %c0_73], %175 {strides = array<i32>} : memref<16x8x128xf32, #tpu.memory_space<vmem>>, vector<1x8x128xf32>,
    %c5_i32 = arith.constant 5 : i32
    %176 = arith.index_cast %c5_i32 : i32 to index
    %c0_74 = arith.constant 0 : index
    %c0_75 = arith.constant 0 : index
    %177 = vector.load %arg1[%176, %c0_74, %c0_75] : memref<16x8x1xi32, #tpu.memory_space<vmem>>, vector<1x8x1xi32>
    %178 = vector.shape_cast %177 : vector<1x8x1xi32> to vector<8x1xi32>
    %179 = vector.broadcast %178 : vector<8x1xi32> to vector<8x128xi32>
    %180 = arith.cmpi eq, %3, %179 : vector<8x128xi32>
    %181 = arith.extui %180 : vector<8x128xi1> to vector<8x128xi32>
    %182 = arith.sitofp %181 : vector<8x128xi32> to vector<8x128xf32>
    %183 = tpu.concatenate %182, %152 in 1 : vector<8x128xf32>, vector<8x128xf32> -> vector<8x256xf32>
    %c0_76 = arith.constant 0 : index
    %c0_77 = arith.constant 0 : index
    %184 = vector.load %arg3[%c0_76, %c0_77] : memref<256x128xf32, #tpu.memory_space<vmem>>, vector<256x128xf32>
    %cst_78 = arith.constant dense<0.000000e+00> : vector<8x128xf32>
    %185 = tpu.matmul %183, %184, %cst_78 {dimension_numbers = #tpu.dot_dimension_numbers<[1], [0], [0], [1], [0, 0, 1, 1], [], []>} : vector<8x256xf32>, vector<256x128xf32>, vector<8x128xf32> -> vector<8x128xf32>
    %186 = math.tanh %185 : vector<8x128xf32>
    %187 = arith.index_cast %c5_i32 : i32 to index
    %c0_79 = arith.constant 0 : index
    %c0_80 = arith.constant 0 : index
    %188 = vector.load %arg6[%187, %c0_79, %c0_80] : memref<16x8x128xf32, #tpu.memory_space<vmem>>, vector<1x8x128xf32>
    %189 = vector.shape_cast %188 : vector<1x8x128xf32> to vector<8x128xf32>
    %190 = vector.shape_cast %186 : vector<8x128xf32> to vector<1x8x128xf32>
    tpu.vector_store %arg6[%187, %c0_79, %c0_80], %190 {strides = array<i32>} : memref<16x8x128xf32, #tpu.memory_space<vmem>>, vector<1x8x128xf32>,
    %c0_81 = arith.constant 0 : index
    %c0_82 = arith.constant 0 : index
    %191 = vector.load %arg4[%c0_81, %c0_82] : memref<128x128xf32, #tpu.memory_space<vmem>>, vector<128x128xf32>
    %cst_83 = arith.constant dense<0.000000e+00> : vector<8x128xf32>
    %192 = tpu.matmul %186, %191, %cst_83 {dimension_numbers = #tpu.dot_dimension_numbers<[1], [0], [0], [1], [0, 0, 1, 1], [], []>} : vector<8x128xf32>, vector<128x128xf32>, vector<8x128xf32> -> vector<8x128xf32>
    %193 = vector.broadcast %4 : vector<1x128xf32> to vector<8x128xf32>
    %194 = arith.addf %192, %193 : vector<8x128xf32>
    %cst_84 = arith.constant dense<0xFF800000> : vector<8xf32>
    %195 = vector.multi_reduction <maximumf>, %194, %cst_84 [1] : vector<8x128xf32> to vector<8xf32>
    %196 = vector.shape_cast %195 : vector<8xf32> to vector<8x1xf32>
    %197 = vector.broadcast %196 : vector<8x1xf32> to vector<8x128xf32>
    %198 = arith.subf %194, %197 : vector<8x128xf32>
    %199 = math.exp %198 : vector<8x128xf32>
    %cst_85 = arith.constant dense<0.000000e+00> : vector<8xf32>
    %200 = vector.multi_reduction <add>, %199, %cst_85 [1] : vector<8x128xf32> to vector<8xf32>
    %201 = vector.shape_cast %200 : vector<8xf32> to vector<8x1xf32>
    %202 = math.log %201 : vector<8x1xf32>
    %203 = arith.addf %196, %202 : vector<8x1xf32>
    %204 = vector.broadcast %203 : vector<8x1xf32> to vector<8x128xf32>
    %205 = arith.subf %194, %204 : vector<8x128xf32>
    %206 = arith.index_cast %c5_i32 : i32 to index
    %c0_86 = arith.constant 0 : index
    %c0_87 = arith.constant 0 : index
    %207 = vector.load %arg7[%206, %c0_86, %c0_87] : memref<16x8x128xf32, #tpu.memory_space<vmem>>, vector<1x8x128xf32>
    %208 = vector.shape_cast %207 : vector<1x8x128xf32> to vector<8x128xf32>
    %209 = vector.shape_cast %205 : vector<8x128xf32> to vector<1x8x128xf32>
    tpu.vector_store %arg7[%206, %c0_86, %c0_87], %209 {strides = array<i32>} : memref<16x8x128xf32, #tpu.memory_space<vmem>>, vector<1x8x128xf32>,
    %c6_i32 = arith.constant 6 : i32
    %210 = arith.index_cast %c6_i32 : i32 to index
    %c0_88 = arith.constant 0 : index
    %c0_89 = arith.constant 0 : index
    %211 = vector.load %arg1[%210, %c0_88, %c0_89] : memref<16x8x1xi32, #tpu.memory_space<vmem>>, vector<1x8x1xi32>
    %212 = vector.shape_cast %211 : vector<1x8x1xi32> to vector<8x1xi32>
    %213 = vector.broadcast %212 : vector<8x1xi32> to vector<8x128xi32>
    %214 = arith.cmpi eq, %3, %213 : vector<8x128xi32>
    %215 = arith.extui %214 : vector<8x128xi1> to vector<8x128xi32>
    %216 = arith.sitofp %215 : vector<8x128xi32> to vector<8x128xf32>
    %217 = tpu.concatenate %216, %186 in 1 : vector<8x128xf32>, vector<8x128xf32> -> vector<8x256xf32>
    %c0_90 = arith.constant 0 : index
    %c0_91 = arith.constant 0 : index
    %218 = vector.load %arg3[%c0_90, %c0_91] : memref<256x128xf32, #tpu.memory_space<vmem>>, vector<256x128xf32>
    %cst_92 = arith.constant dense<0.000000e+00> : vector<8x128xf32>
    %219 = tpu.matmul %217, %218, %cst_92 {dimension_numbers = #tpu.dot_dimension_numbers<[1], [0], [0], [1], [0, 0, 1, 1], [], []>} : vector<8x256xf32>, vector<256x128xf32>, vector<8x128xf32> -> vector<8x128xf32>
    %220 = math.tanh %219 : vector<8x128xf32>
    %221 = arith.index_cast %c6_i32 : i32 to index
    %c0_93 = arith.constant 0 : index
    %c0_94 = arith.constant 0 : index
    %222 = vector.load %arg6[%221, %c0_93, %c0_94] : memref<16x8x128xf32, #tpu.memory_space<vmem>>, vector<1x8x128xf32>
    %223 = vector.shape_cast %222 : vector<1x8x128xf32> to vector<8x128xf32>
    %224 = vector.shape_cast %220 : vector<8x128xf32> to vector<1x8x128xf32>
    tpu.vector_store %arg6[%221, %c0_93, %c0_94], %224 {strides = array<i32>} : memref<16x8x128xf32, #tpu.memory_space<vmem>>, vector<1x8x128xf32>,
    %c0_95 = arith.constant 0 : index
    %c0_96 = arith.constant 0 : index
    %225 = vector.load %arg4[%c0_95, %c0_96] : memref<128x128xf32, #tpu.memory_space<vmem>>, vector<128x128xf32>
    %cst_97 = arith.constant dense<0.000000e+00> : vector<8x128xf32>
    %226 = tpu.matmul %220, %225, %cst_97 {dimension_numbers = #tpu.dot_dimension_numbers<[1], [0], [0], [1], [0, 0, 1, 1], [], []>} : vector<8x128xf32>, vector<128x128xf32>, vector<8x128xf32> -> vector<8x128xf32>
    %227 = vector.broadcast %4 : vector<1x128xf32> to vector<8x128xf32>
    %228 = arith.addf %226, %227 : vector<8x128xf32>
    %cst_98 = arith.constant dense<0xFF800000> : vector<8xf32>
    %229 = vector.multi_reduction <maximumf>, %228, %cst_98 [1] : vector<8x128xf32> to vector<8xf32>
    %230 = vector.shape_cast %229 : vector<8xf32> to vector<8x1xf32>
    %231 = vector.broadcast %230 : vector<8x1xf32> to vector<8x128xf32>
    %232 = arith.subf %228, %231 : vector<8x128xf32>
    %233 = math.exp %232 : vector<8x128xf32>
    %cst_99 = arith.constant dense<0.000000e+00> : vector<8xf32>
    %234 = vector.multi_reduction <add>, %233, %cst_99 [1] : vector<8x128xf32> to vector<8xf32>
    %235 = vector.shape_cast %234 : vector<8xf32> to vector<8x1xf32>
    %236 = math.log %235 : vector<8x1xf32>
    %237 = arith.addf %230, %236 : vector<8x1xf32>
    %238 = vector.broadcast %237 : vector<8x1xf32> to vector<8x128xf32>
    %239 = arith.subf %228, %238 : vector<8x128xf32>
    %240 = arith.index_cast %c6_i32 : i32 to index
    %c0_100 = arith.constant 0 : index
    %c0_101 = arith.constant 0 : index
    %241 = vector.load %arg7[%240, %c0_100, %c0_101] : memref<16x8x128xf32, #tpu.memory_space<vmem>>, vector<1x8x128xf32>
    %242 = vector.shape_cast %241 : vector<1x8x128xf32> to vector<8x128xf32>
    %243 = vector.shape_cast %239 : vector<8x128xf32> to vector<1x8x128xf32>
    tpu.vector_store %arg7[%240, %c0_100, %c0_101], %243 {strides = array<i32>} : memref<16x8x128xf32, #tpu.memory_space<vmem>>, vector<1x8x128xf32>,
    %c7_i32 = arith.constant 7 : i32
    %244 = arith.index_cast %c7_i32 : i32 to index
    %c0_102 = arith.constant 0 : index
    %c0_103 = arith.constant 0 : index
    %245 = vector.load %arg1[%244, %c0_102, %c0_103] : memref<16x8x1xi32, #tpu.memory_space<vmem>>, vector<1x8x1xi32>
    %246 = vector.shape_cast %245 : vector<1x8x1xi32> to vector<8x1xi32>
    %247 = vector.broadcast %246 : vector<8x1xi32> to vector<8x128xi32>
    %248 = arith.cmpi eq, %3, %247 : vector<8x128xi32>
    %249 = arith.extui %248 : vector<8x128xi1> to vector<8x128xi32>
    %250 = arith.sitofp %249 : vector<8x128xi32> to vector<8x128xf32>
    %251 = tpu.concatenate %250, %220 in 1 : vector<8x128xf32>, vector<8x128xf32> -> vector<8x256xf32>
    %c0_104 = arith.constant 0 : index
    %c0_105 = arith.constant 0 : index
    %252 = vector.load %arg3[%c0_104, %c0_105] : memref<256x128xf32, #tpu.memory_space<vmem>>, vector<256x128xf32>
    %cst_106 = arith.constant dense<0.000000e+00> : vector<8x128xf32>
    %253 = tpu.matmul %251, %252, %cst_106 {dimension_numbers = #tpu.dot_dimension_numbers<[1], [0], [0], [1], [0, 0, 1, 1], [], []>} : vector<8x256xf32>, vector<256x128xf32>, vector<8x128xf32> -> vector<8x128xf32>
    %254 = math.tanh %253 : vector<8x128xf32>
    %255 = arith.index_cast %c7_i32 : i32 to index
    %c0_107 = arith.constant 0 : index
    %c0_108 = arith.constant 0 : index
    %256 = vector.load %arg6[%255, %c0_107, %c0_108] : memref<16x8x128xf32, #tpu.memory_space<vmem>>, vector<1x8x128xf32>
    %257 = vector.shape_cast %256 : vector<1x8x128xf32> to vector<8x128xf32>
    %258 = vector.shape_cast %254 : vector<8x128xf32> to vector<1x8x128xf32>
    tpu.vector_store %arg6[%255, %c0_107, %c0_108], %258 {strides = array<i32>} : memref<16x8x128xf32, #tpu.memory_space<vmem>>, vector<1x8x128xf32>,
    %c0_109 = arith.constant 0 : index
    %c0_110 = arith.constant 0 : index
    %259 = vector.load %arg4[%c0_109, %c0_110] : memref<128x128xf32, #tpu.memory_space<vmem>>, vector<128x128xf32>
    %cst_111 = arith.constant dense<0.000000e+00> : vector<8x128xf32>
    %260 = tpu.matmul %254, %259, %cst_111 {dimension_numbers = #tpu.dot_dimension_numbers<[1], [0], [0], [1], [0, 0, 1, 1], [], []>} : vector<8x128xf32>, vector<128x128xf32>, vector<8x128xf32> -> vector<8x128xf32>
    %261 = vector.broadcast %4 : vector<1x128xf32> to vector<8x128xf32>
    %262 = arith.addf %260, %261 : vector<8x128xf32>
    %cst_112 = arith.constant dense<0xFF800000> : vector<8xf32>
    %263 = vector.multi_reduction <maximumf>, %262, %cst_112 [1] : vector<8x128xf32> to vector<8xf32>
    %264 = vector.shape_cast %263 : vector<8xf32> to vector<8x1xf32>
    %265 = vector.broadcast %264 : vector<8x1xf32> to vector<8x128xf32>
    %266 = arith.subf %262, %265 : vector<8x128xf32>
    %267 = math.exp %266 : vector<8x128xf32>
    %cst_113 = arith.constant dense<0.000000e+00> : vector<8xf32>
    %268 = vector.multi_reduction <add>, %267, %cst_113 [1] : vector<8x128xf32> to vector<8xf32>
    %269 = vector.shape_cast %268 : vector<8xf32> to vector<8x1xf32>
    %270 = math.log %269 : vector<8x1xf32>
    %271 = arith.addf %264, %270 : vector<8x1xf32>
    %272 = vector.broadcast %271 : vector<8x1xf32> to vector<8x128xf32>
    %273 = arith.subf %262, %272 : vector<8x128xf32>
    %274 = arith.index_cast %c7_i32 : i32 to index
    %c0_114 = arith.constant 0 : index
    %c0_115 = arith.constant 0 : index
    %275 = vector.load %arg7[%274, %c0_114, %c0_115] : memref<16x8x128xf32, #tpu.memory_space<vmem>>, vector<1x8x128xf32>
    %276 = vector.shape_cast %275 : vector<1x8x128xf32> to vector<8x128xf32>
    %277 = vector.shape_cast %273 : vector<8x128xf32> to vector<1x8x128xf32>
    tpu.vector_store %arg7[%274, %c0_114, %c0_115], %277 {strides = array<i32>} : memref<16x8x128xf32, #tpu.memory_space<vmem>>, vector<1x8x128xf32>,
    %c8_i32 = arith.constant 8 : i32
    %278 = arith.index_cast %c8_i32 : i32 to index
    %c0_116 = arith.constant 0 : index
    %c0_117 = arith.constant 0 : index
    %279 = vector.load %arg1[%278, %c0_116, %c0_117] : memref<16x8x1xi32, #tpu.memory_space<vmem>>, vector<1x8x1xi32>
    %280 = vector.shape_cast %279 : vector<1x8x1xi32> to vector<8x1xi32>
    %281 = vector.broadcast %280 : vector<8x1xi32> to vector<8x128xi32>
    %282 = arith.cmpi eq, %3, %281 : vector<8x128xi32>
    %283 = arith.extui %282 : vector<8x128xi1> to vector<8x128xi32>
    %284 = arith.sitofp %283 : vector<8x128xi32> to vector<8x128xf32>
    %285 = tpu.concatenate %284, %254 in 1 : vector<8x128xf32>, vector<8x128xf32> -> vector<8x256xf32>
    %c0_118 = arith.constant 0 : index
    %c0_119 = arith.constant 0 : index
    %286 = vector.load %arg3[%c0_118, %c0_119] : memref<256x128xf32, #tpu.memory_space<vmem>>, vector<256x128xf32>
    %cst_120 = arith.constant dense<0.000000e+00> : vector<8x128xf32>
    %287 = tpu.matmul %285, %286, %cst_120 {dimension_numbers = #tpu.dot_dimension_numbers<[1], [0], [0], [1], [0, 0, 1, 1], [], []>} : vector<8x256xf32>, vector<256x128xf32>, vector<8x128xf32> -> vector<8x128xf32>
    %288 = math.tanh %287 : vector<8x128xf32>
    %289 = arith.index_cast %c8_i32 : i32 to index
    %c0_121 = arith.constant 0 : index
    %c0_122 = arith.constant 0 : index
    %290 = vector.load %arg6[%289, %c0_121, %c0_122] : memref<16x8x128xf32, #tpu.memory_space<vmem>>, vector<1x8x128xf32>
    %291 = vector.shape_cast %290 : vector<1x8x128xf32> to vector<8x128xf32>
    %292 = vector.shape_cast %288 : vector<8x128xf32> to vector<1x8x128xf32>
    tpu.vector_store %arg6[%289, %c0_121, %c0_122], %292 {strides = array<i32>} : memref<16x8x128xf32, #tpu.memory_space<vmem>>, vector<1x8x128xf32>,
    %c0_123 = arith.constant 0 : index
    %c0_124 = arith.constant 0 : index
    %293 = vector.load %arg4[%c0_123, %c0_124] : memref<128x128xf32, #tpu.memory_space<vmem>>, vector<128x128xf32>
    %cst_125 = arith.constant dense<0.000000e+00> : vector<8x128xf32>
    %294 = tpu.matmul %288, %293, %cst_125 {dimension_numbers = #tpu.dot_dimension_numbers<[1], [0], [0], [1], [0, 0, 1, 1], [], []>} : vector<8x128xf32>, vector<128x128xf32>, vector<8x128xf32> -> vector<8x128xf32>
    %295 = vector.broadcast %4 : vector<1x128xf32> to vector<8x128xf32>
    %296 = arith.addf %294, %295 : vector<8x128xf32>
    %cst_126 = arith.constant dense<0xFF800000> : vector<8xf32>
    %297 = vector.multi_reduction <maximumf>, %296, %cst_126 [1] : vector<8x128xf32> to vector<8xf32>
    %298 = vector.shape_cast %297 : vector<8xf32> to vector<8x1xf32>
    %299 = vector.broadcast %298 : vector<8x1xf32> to vector<8x128xf32>
    %300 = arith.subf %296, %299 : vector<8x128xf32>
    %301 = math.exp %300 : vector<8x128xf32>
    %cst_127 = arith.constant dense<0.000000e+00> : vector<8xf32>
    %302 = vector.multi_reduction <add>, %301, %cst_127 [1] : vector<8x128xf32> to vector<8xf32>
    %303 = vector.shape_cast %302 : vector<8xf32> to vector<8x1xf32>
    %304 = math.log %303 : vector<8x1xf32>
    %305 = arith.addf %298, %304 : vector<8x1xf32>
    %306 = vector.broadcast %305 : vector<8x1xf32> to vector<8x128xf32>
    %307 = arith.subf %296, %306 : vector<8x128xf32>
    %308 = arith.index_cast %c8_i32 : i32 to index
    %c0_128 = arith.constant 0 : index
    %c0_129 = arith.constant 0 : index
    %309 = vector.load %arg7[%308, %c0_128, %c0_129] : memref<16x8x128xf32, #tpu.memory_space<vmem>>, vector<1x8x128xf32>
    %310 = vector.shape_cast %309 : vector<1x8x128xf32> to vector<8x128xf32>
    %311 = vector.shape_cast %307 : vector<8x128xf32> to vector<1x8x128xf32>
    tpu.vector_store %arg7[%308, %c0_128, %c0_129], %311 {strides = array<i32>} : memref<16x8x128xf32, #tpu.memory_space<vmem>>, vector<1x8x128xf32>,
    %c9_i32 = arith.constant 9 : i32
    %312 = arith.index_cast %c9_i32 : i32 to index
    %c0_130 = arith.constant 0 : index
    %c0_131 = arith.constant 0 : index
    %313 = vector.load %arg1[%312, %c0_130, %c0_131] : memref<16x8x1xi32, #tpu.memory_space<vmem>>, vector<1x8x1xi32>
    %314 = vector.shape_cast %313 : vector<1x8x1xi32> to vector<8x1xi32>
    %315 = vector.broadcast %314 : vector<8x1xi32> to vector<8x128xi32>
    %316 = arith.cmpi eq, %3, %315 : vector<8x128xi32>
    %317 = arith.extui %316 : vector<8x128xi1> to vector<8x128xi32>
    %318 = arith.sitofp %317 : vector<8x128xi32> to vector<8x128xf32>
    %319 = tpu.concatenate %318, %288 in 1 : vector<8x128xf32>, vector<8x128xf32> -> vector<8x256xf32>
    %c0_132 = arith.constant 0 : index
    %c0_133 = arith.constant 0 : index
    %320 = vector.load %arg3[%c0_132, %c0_133] : memref<256x128xf32, #tpu.memory_space<vmem>>, vector<256x128xf32>
    %cst_134 = arith.constant dense<0.000000e+00> : vector<8x128xf32>
    %321 = tpu.matmul %319, %320, %cst_134 {dimension_numbers = #tpu.dot_dimension_numbers<[1], [0], [0], [1], [0, 0, 1, 1], [], []>} : vector<8x256xf32>, vector<256x128xf32>, vector<8x128xf32> -> vector<8x128xf32>
    %322 = math.tanh %321 : vector<8x128xf32>
    %323 = arith.index_cast %c9_i32 : i32 to index
    %c0_135 = arith.constant 0 : index
    %c0_136 = arith.constant 0 : index
    %324 = vector.load %arg6[%323, %c0_135, %c0_136] : memref<16x8x128xf32, #tpu.memory_space<vmem>>, vector<1x8x128xf32>
    %325 = vector.shape_cast %324 : vector<1x8x128xf32> to vector<8x128xf32>
    %326 = vector.shape_cast %322 : vector<8x128xf32> to vector<1x8x128xf32>
    tpu.vector_store %arg6[%323, %c0_135, %c0_136], %326 {strides = array<i32>} : memref<16x8x128xf32, #tpu.memory_space<vmem>>, vector<1x8x128xf32>,
    %c0_137 = arith.constant 0 : index
    %c0_138 = arith.constant 0 : index
    %327 = vector.load %arg4[%c0_137, %c0_138] : memref<128x128xf32, #tpu.memory_space<vmem>>, vector<128x128xf32>
    %cst_139 = arith.constant dense<0.000000e+00> : vector<8x128xf32>
    %328 = tpu.matmul %322, %327, %cst_139 {dimension_numbers = #tpu.dot_dimension_numbers<[1], [0], [0], [1], [0, 0, 1, 1], [], []>} : vector<8x128xf32>, vector<128x128xf32>, vector<8x128xf32> -> vector<8x128xf32>
    %329 = vector.broadcast %4 : vector<1x128xf32> to vector<8x128xf32>
    %330 = arith.addf %328, %329 : vector<8x128xf32>
    %cst_140 = arith.constant dense<0xFF800000> : vector<8xf32>
    %331 = vector.multi_reduction <maximumf>, %330, %cst_140 [1] : vector<8x128xf32> to vector<8xf32>
    %332 = vector.shape_cast %331 : vector<8xf32> to vector<8x1xf32>
    %333 = vector.broadcast %332 : vector<8x1xf32> to vector<8x128xf32>
    %334 = arith.subf %330, %333 : vector<8x128xf32>
    %335 = math.exp %334 : vector<8x128xf32>
    %cst_141 = arith.constant dense<0.000000e+00> : vector<8xf32>
    %336 = vector.multi_reduction <add>, %335, %cst_141 [1] : vector<8x128xf32> to vector<8xf32>
    %337 = vector.shape_cast %336 : vector<8xf32> to vector<8x1xf32>
    %338 = math.log %337 : vector<8x1xf32>
    %339 = arith.addf %332, %338 : vector<8x1xf32>
    %340 = vector.broadcast %339 : vector<8x1xf32> to vector<8x128xf32>
    %341 = arith.subf %330, %340 : vector<8x128xf32>
    %342 = arith.index_cast %c9_i32 : i32 to index
    %c0_142 = arith.constant 0 : index
    %c0_143 = arith.constant 0 : index
    %343 = vector.load %arg7[%342, %c0_142, %c0_143] : memref<16x8x128xf32, #tpu.memory_space<vmem>>, vector<1x8x128xf32>
    %344 = vector.shape_cast %343 : vector<1x8x128xf32> to vector<8x128xf32>
    %345 = vector.shape_cast %341 : vector<8x128xf32> to vector<1x8x128xf32>
    tpu.vector_store %arg7[%342, %c0_142, %c0_143], %345 {strides = array<i32>} : memref<16x8x128xf32, #tpu.memory_space<vmem>>, vector<1x8x128xf32>,
    %c10_i32 = arith.constant 10 : i32
    %346 = arith.index_cast %c10_i32 : i32 to index
    %c0_144 = arith.constant 0 : index
    %c0_145 = arith.constant 0 : index
    %347 = vector.load %arg1[%346, %c0_144, %c0_145] : memref<16x8x1xi32, #tpu.memory_space<vmem>>, vector<1x8x1xi32>
    %348 = vector.shape_cast %347 : vector<1x8x1xi32> to vector<8x1xi32>
    %349 = vector.broadcast %348 : vector<8x1xi32> to vector<8x128xi32>
    %350 = arith.cmpi eq, %3, %349 : vector<8x128xi32>
    %351 = arith.extui %350 : vector<8x128xi1> to vector<8x128xi32>
    %352 = arith.sitofp %351 : vector<8x128xi32> to vector<8x128xf32>
    %353 = tpu.concatenate %352, %322 in 1 : vector<8x128xf32>, vector<8x128xf32> -> vector<8x256xf32>
    %c0_146 = arith.constant 0 : index
    %c0_147 = arith.constant 0 : index
    %354 = vector.load %arg3[%c0_146, %c0_147] : memref<256x128xf32, #tpu.memory_space<vmem>>, vector<256x128xf32>
    %cst_148 = arith.constant dense<0.000000e+00> : vector<8x128xf32>
    %355 = tpu.matmul %353, %354, %cst_148 {dimension_numbers = #tpu.dot_dimension_numbers<[1], [0], [0], [1], [0, 0, 1, 1], [], []>} : vector<8x256xf32>, vector<256x128xf32>, vector<8x128xf32> -> vector<8x128xf32>
    %356 = math.tanh %355 : vector<8x128xf32>
    %357 = arith.index_cast %c10_i32 : i32 to index
    %c0_149 = arith.constant 0 : index
    %c0_150 = arith.constant 0 : index
    %358 = vector.load %arg6[%357, %c0_149, %c0_150] : memref<16x8x128xf32, #tpu.memory_space<vmem>>, vector<1x8x128xf32>
    %359 = vector.shape_cast %358 : vector<1x8x128xf32> to vector<8x128xf32>
    %360 = vector.shape_cast %356 : vector<8x128xf32> to vector<1x8x128xf32>
    tpu.vector_store %arg6[%357, %c0_149, %c0_150], %360 {strides = array<i32>} : memref<16x8x128xf32, #tpu.memory_space<vmem>>, vector<1x8x128xf32>,
    %c0_151 = arith.constant 0 : index
    %c0_152 = arith.constant 0 : index
    %361 = vector.load %arg4[%c0_151, %c0_152] : memref<128x128xf32, #tpu.memory_space<vmem>>, vector<128x128xf32>
    %cst_153 = arith.constant dense<0.000000e+00> : vector<8x128xf32>
    %362 = tpu.matmul %356, %361, %cst_153 {dimension_numbers = #tpu.dot_dimension_numbers<[1], [0], [0], [1], [0, 0, 1, 1], [], []>} : vector<8x128xf32>, vector<128x128xf32>, vector<8x128xf32> -> vector<8x128xf32>
    %363 = vector.broadcast %4 : vector<1x128xf32> to vector<8x128xf32>
    %364 = arith.addf %362, %363 : vector<8x128xf32>
    %cst_154 = arith.constant dense<0xFF800000> : vector<8xf32>
    %365 = vector.multi_reduction <maximumf>, %364, %cst_154 [1] : vector<8x128xf32> to vector<8xf32>
    %366 = vector.shape_cast %365 : vector<8xf32> to vector<8x1xf32>
    %367 = vector.broadcast %366 : vector<8x1xf32> to vector<8x128xf32>
    %368 = arith.subf %364, %367 : vector<8x128xf32>
    %369 = math.exp %368 : vector<8x128xf32>
    %cst_155 = arith.constant dense<0.000000e+00> : vector<8xf32>
    %370 = vector.multi_reduction <add>, %369, %cst_155 [1] : vector<8x128xf32> to vector<8xf32>
    %371 = vector.shape_cast %370 : vector<8xf32> to vector<8x1xf32>
    %372 = math.log %371 : vector<8x1xf32>
    %373 = arith.addf %366, %372 : vector<8x1xf32>
    %374 = vector.broadcast %373 : vector<8x1xf32> to vector<8x128xf32>
    %375 = arith.subf %364, %374 : vector<8x128xf32>
    %376 = arith.index_cast %c10_i32 : i32 to index
    %c0_156 = arith.constant 0 : index
    %c0_157 = arith.constant 0 : index
    %377 = vector.load %arg7[%376, %c0_156, %c0_157] : memref<16x8x128xf32, #tpu.memory_space<vmem>>, vector<1x8x128xf32>
    %378 = vector.shape_cast %377 : vector<1x8x128xf32> to vector<8x128xf32>
    %379 = vector.shape_cast %375 : vector<8x128xf32> to vector<1x8x128xf32>
    tpu.vector_store %arg7[%376, %c0_156, %c0_157], %379 {strides = array<i32>} : memref<16x8x128xf32, #tpu.memory_space<vmem>>, vector<1x8x128xf32>,
    %c11_i32 = arith.constant 11 : i32
    %380 = arith.index_cast %c11_i32 : i32 to index
    %c0_158 = arith.constant 0 : index
    %c0_159 = arith.constant 0 : index
    %381 = vector.load %arg1[%380, %c0_158, %c0_159] : memref<16x8x1xi32, #tpu.memory_space<vmem>>, vector<1x8x1xi32>
    %382 = vector.shape_cast %381 : vector<1x8x1xi32> to vector<8x1xi32>
    %383 = vector.broadcast %382 : vector<8x1xi32> to vector<8x128xi32>
    %384 = arith.cmpi eq, %3, %383 : vector<8x128xi32>
    %385 = arith.extui %384 : vector<8x128xi1> to vector<8x128xi32>
    %386 = arith.sitofp %385 : vector<8x128xi32> to vector<8x128xf32>
    %387 = tpu.concatenate %386, %356 in 1 : vector<8x128xf32>, vector<8x128xf32> -> vector<8x256xf32>
    %c0_160 = arith.constant 0 : index
    %c0_161 = arith.constant 0 : index
    %388 = vector.load %arg3[%c0_160, %c0_161] : memref<256x128xf32, #tpu.memory_space<vmem>>, vector<256x128xf32>
    %cst_162 = arith.constant dense<0.000000e+00> : vector<8x128xf32>
    %389 = tpu.matmul %387, %388, %cst_162 {dimension_numbers = #tpu.dot_dimension_numbers<[1], [0], [0], [1], [0, 0, 1, 1], [], []>} : vector<8x256xf32>, vector<256x128xf32>, vector<8x128xf32> -> vector<8x128xf32>
    %390 = math.tanh %389 : vector<8x128xf32>
    %391 = arith.index_cast %c11_i32 : i32 to index
    %c0_163 = arith.constant 0 : index
    %c0_164 = arith.constant 0 : index
    %392 = vector.load %arg6[%391, %c0_163, %c0_164] : memref<16x8x128xf32, #tpu.memory_space<vmem>>, vector<1x8x128xf32>
    %393 = vector.shape_cast %392 : vector<1x8x128xf32> to vector<8x128xf32>
    %394 = vector.shape_cast %390 : vector<8x128xf32> to vector<1x8x128xf32>
    tpu.vector_store %arg6[%391, %c0_163, %c0_164], %394 {strides = array<i32>} : memref<16x8x128xf32, #tpu.memory_space<vmem>>, vector<1x8x128xf32>,
    %c0_165 = arith.constant 0 : index
    %c0_166 = arith.constant 0 : index
    %395 = vector.load %arg4[%c0_165, %c0_166] : memref<128x128xf32, #tpu.memory_space<vmem>>, vector<128x128xf32>
    %cst_167 = arith.constant dense<0.000000e+00> : vector<8x128xf32>
    %396 = tpu.matmul %390, %395, %cst_167 {dimension_numbers = #tpu.dot_dimension_numbers<[1], [0], [0], [1], [0, 0, 1, 1], [], []>} : vector<8x128xf32>, vector<128x128xf32>, vector<8x128xf32> -> vector<8x128xf32>
    %397 = vector.broadcast %4 : vector<1x128xf32> to vector<8x128xf32>
    %398 = arith.addf %396, %397 : vector<8x128xf32>
    %cst_168 = arith.constant dense<0xFF800000> : vector<8xf32>
    %399 = vector.multi_reduction <maximumf>, %398, %cst_168 [1] : vector<8x128xf32> to vector<8xf32>
    %400 = vector.shape_cast %399 : vector<8xf32> to vector<8x1xf32>
    %401 = vector.broadcast %400 : vector<8x1xf32> to vector<8x128xf32>
    %402 = arith.subf %398, %401 : vector<8x128xf32>
    %403 = math.exp %402 : vector<8x128xf32>
    %cst_169 = arith.constant dense<0.000000e+00> : vector<8xf32>
    %404 = vector.multi_reduction <add>, %403, %cst_169 [1] : vector<8x128xf32> to vector<8xf32>
    %405 = vector.shape_cast %404 : vector<8xf32> to vector<8x1xf32>
    %406 = math.log %405 : vector<8x1xf32>
    %407 = arith.addf %400, %406 : vector<8x1xf32>
    %408 = vector.broadcast %407 : vector<8x1xf32> to vector<8x128xf32>
    %409 = arith.subf %398, %408 : vector<8x128xf32>
    %410 = arith.index_cast %c11_i32 : i32 to index
    %c0_170 = arith.constant 0 : index
    %c0_171 = arith.constant 0 : index
    %411 = vector.load %arg7[%410, %c0_170, %c0_171] : memref<16x8x128xf32, #tpu.memory_space<vmem>>, vector<1x8x128xf32>
    %412 = vector.shape_cast %411 : vector<1x8x128xf32> to vector<8x128xf32>
    %413 = vector.shape_cast %409 : vector<8x128xf32> to vector<1x8x128xf32>
    tpu.vector_store %arg7[%410, %c0_170, %c0_171], %413 {strides = array<i32>} : memref<16x8x128xf32, #tpu.memory_space<vmem>>, vector<1x8x128xf32>,
    %c12_i32 = arith.constant 12 : i32
    %414 = arith.index_cast %c12_i32 : i32 to index
    %c0_172 = arith.constant 0 : index
    %c0_173 = arith.constant 0 : index
    %415 = vector.load %arg1[%414, %c0_172, %c0_173] : memref<16x8x1xi32, #tpu.memory_space<vmem>>, vector<1x8x1xi32>
    %416 = vector.shape_cast %415 : vector<1x8x1xi32> to vector<8x1xi32>
    %417 = vector.broadcast %416 : vector<8x1xi32> to vector<8x128xi32>
    %418 = arith.cmpi eq, %3, %417 : vector<8x128xi32>
    %419 = arith.extui %418 : vector<8x128xi1> to vector<8x128xi32>
    %420 = arith.sitofp %419 : vector<8x128xi32> to vector<8x128xf32>
    %421 = tpu.concatenate %420, %390 in 1 : vector<8x128xf32>, vector<8x128xf32> -> vector<8x256xf32>
    %c0_174 = arith.constant 0 : index
    %c0_175 = arith.constant 0 : index
    %422 = vector.load %arg3[%c0_174, %c0_175] : memref<256x128xf32, #tpu.memory_space<vmem>>, vector<256x128xf32>
    %cst_176 = arith.constant dense<0.000000e+00> : vector<8x128xf32>
    %423 = tpu.matmul %421, %422, %cst_176 {dimension_numbers = #tpu.dot_dimension_numbers<[1], [0], [0], [1], [0, 0, 1, 1], [], []>} : vector<8x256xf32>, vector<256x128xf32>, vector<8x128xf32> -> vector<8x128xf32>
    %424 = math.tanh %423 : vector<8x128xf32>
    %425 = arith.index_cast %c12_i32 : i32 to index
    %c0_177 = arith.constant 0 : index
    %c0_178 = arith.constant 0 : index
    %426 = vector.load %arg6[%425, %c0_177, %c0_178] : memref<16x8x128xf32, #tpu.memory_space<vmem>>, vector<1x8x128xf32>
    %427 = vector.shape_cast %426 : vector<1x8x128xf32> to vector<8x128xf32>
    %428 = vector.shape_cast %424 : vector<8x128xf32> to vector<1x8x128xf32>
    tpu.vector_store %arg6[%425, %c0_177, %c0_178], %428 {strides = array<i32>} : memref<16x8x128xf32, #tpu.memory_space<vmem>>, vector<1x8x128xf32>,
    %c0_179 = arith.constant 0 : index
    %c0_180 = arith.constant 0 : index
    %429 = vector.load %arg4[%c0_179, %c0_180] : memref<128x128xf32, #tpu.memory_space<vmem>>, vector<128x128xf32>
    %cst_181 = arith.constant dense<0.000000e+00> : vector<8x128xf32>
    %430 = tpu.matmul %424, %429, %cst_181 {dimension_numbers = #tpu.dot_dimension_numbers<[1], [0], [0], [1], [0, 0, 1, 1], [], []>} : vector<8x128xf32>, vector<128x128xf32>, vector<8x128xf32> -> vector<8x128xf32>
    %431 = vector.broadcast %4 : vector<1x128xf32> to vector<8x128xf32>
    %432 = arith.addf %430, %431 : vector<8x128xf32>
    %cst_182 = arith.constant dense<0xFF800000> : vector<8xf32>
    %433 = vector.multi_reduction <maximumf>, %432, %cst_182 [1] : vector<8x128xf32> to vector<8xf32>
    %434 = vector.shape_cast %433 : vector<8xf32> to vector<8x1xf32>
    %435 = vector.broadcast %434 : vector<8x1xf32> to vector<8x128xf32>
    %436 = arith.subf %432, %435 : vector<8x128xf32>
    %437 = math.exp %436 : vector<8x128xf32>
    %cst_183 = arith.constant dense<0.000000e+00> : vector<8xf32>
    %438 = vector.multi_reduction <add>, %437, %cst_183 [1] : vector<8x128xf32> to vector<8xf32>
    %439 = vector.shape_cast %438 : vector<8xf32> to vector<8x1xf32>
    %440 = math.log %439 : vector<8x1xf32>
    %441 = arith.addf %434, %440 : vector<8x1xf32>
    %442 = vector.broadcast %441 : vector<8x1xf32> to vector<8x128xf32>
    %443 = arith.subf %432, %442 : vector<8x128xf32>
    %444 = arith.index_cast %c12_i32 : i32 to index
    %c0_184 = arith.constant 0 : index
    %c0_185 = arith.constant 0 : index
    %445 = vector.load %arg7[%444, %c0_184, %c0_185] : memref<16x8x128xf32, #tpu.memory_space<vmem>>, vector<1x8x128xf32>
    %446 = vector.shape_cast %445 : vector<1x8x128xf32> to vector<8x128xf32>
    %447 = vector.shape_cast %443 : vector<8x128xf32> to vector<1x8x128xf32>
    tpu.vector_store %arg7[%444, %c0_184, %c0_185], %447 {strides = array<i32>} : memref<16x8x128xf32, #tpu.memory_space<vmem>>, vector<1x8x128xf32>,
    %c13_i32 = arith.constant 13 : i32
    %448 = arith.index_cast %c13_i32 : i32 to index
    %c0_186 = arith.constant 0 : index
    %c0_187 = arith.constant 0 : index
    %449 = vector.load %arg1[%448, %c0_186, %c0_187] : memref<16x8x1xi32, #tpu.memory_space<vmem>>, vector<1x8x1xi32>
    %450 = vector.shape_cast %449 : vector<1x8x1xi32> to vector<8x1xi32>
    %451 = vector.broadcast %450 : vector<8x1xi32> to vector<8x128xi32>
    %452 = arith.cmpi eq, %3, %451 : vector<8x128xi32>
    %453 = arith.extui %452 : vector<8x128xi1> to vector<8x128xi32>
    %454 = arith.sitofp %453 : vector<8x128xi32> to vector<8x128xf32>
    %455 = tpu.concatenate %454, %424 in 1 : vector<8x128xf32>, vector<8x128xf32> -> vector<8x256xf32>
    %c0_188 = arith.constant 0 : index
    %c0_189 = arith.constant 0 : index
    %456 = vector.load %arg3[%c0_188, %c0_189] : memref<256x128xf32, #tpu.memory_space<vmem>>, vector<256x128xf32>
    %cst_190 = arith.constant dense<0.000000e+00> : vector<8x128xf32>
    %457 = tpu.matmul %455, %456, %cst_190 {dimension_numbers = #tpu.dot_dimension_numbers<[1], [0], [0], [1], [0, 0, 1, 1], [], []>} : vector<8x256xf32>, vector<256x128xf32>, vector<8x128xf32> -> vector<8x128xf32>
    %458 = math.tanh %457 : vector<8x128xf32>
    %459 = arith.index_cast %c13_i32 : i32 to index
    %c0_191 = arith.constant 0 : index
    %c0_192 = arith.constant 0 : index
    %460 = vector.load %arg6[%459, %c0_191, %c0_192] : memref<16x8x128xf32, #tpu.memory_space<vmem>>, vector<1x8x128xf32>
    %461 = vector.shape_cast %460 : vector<1x8x128xf32> to vector<8x128xf32>
    %462 = vector.shape_cast %458 : vector<8x128xf32> to vector<1x8x128xf32>
    tpu.vector_store %arg6[%459, %c0_191, %c0_192], %462 {strides = array<i32>} : memref<16x8x128xf32, #tpu.memory_space<vmem>>, vector<1x8x128xf32>,
    %c0_193 = arith.constant 0 : index
    %c0_194 = arith.constant 0 : index
    %463 = vector.load %arg4[%c0_193, %c0_194] : memref<128x128xf32, #tpu.memory_space<vmem>>, vector<128x128xf32>
    %cst_195 = arith.constant dense<0.000000e+00> : vector<8x128xf32>
    %464 = tpu.matmul %458, %463, %cst_195 {dimension_numbers = #tpu.dot_dimension_numbers<[1], [0], [0], [1], [0, 0, 1, 1], [], []>} : vector<8x128xf32>, vector<128x128xf32>, vector<8x128xf32> -> vector<8x128xf32>
    %465 = vector.broadcast %4 : vector<1x128xf32> to vector<8x128xf32>
    %466 = arith.addf %464, %465 : vector<8x128xf32>
    %cst_196 = arith.constant dense<0xFF800000> : vector<8xf32>
    %467 = vector.multi_reduction <maximumf>, %466, %cst_196 [1] : vector<8x128xf32> to vector<8xf32>
    %468 = vector.shape_cast %467 : vector<8xf32> to vector<8x1xf32>
    %469 = vector.broadcast %468 : vector<8x1xf32> to vector<8x128xf32>
    %470 = arith.subf %466, %469 : vector<8x128xf32>
    %471 = math.exp %470 : vector<8x128xf32>
    %cst_197 = arith.constant dense<0.000000e+00> : vector<8xf32>
    %472 = vector.multi_reduction <add>, %471, %cst_197 [1] : vector<8x128xf32> to vector<8xf32>
    %473 = vector.shape_cast %472 : vector<8xf32> to vector<8x1xf32>
    %474 = math.log %473 : vector<8x1xf32>
    %475 = arith.addf %468, %474 : vector<8x1xf32>
    %476 = vector.broadcast %475 : vector<8x1xf32> to vector<8x128xf32>
    %477 = arith.subf %466, %476 : vector<8x128xf32>
    %478 = arith.index_cast %c13_i32 : i32 to index
    %c0_198 = arith.constant 0 : index
    %c0_199 = arith.constant 0 : index
    %479 = vector.load %arg7[%478, %c0_198, %c0_199] : memref<16x8x128xf32, #tpu.memory_space<vmem>>, vector<1x8x128xf32>
    %480 = vector.shape_cast %479 : vector<1x8x128xf32> to vector<8x128xf32>
    %481 = vector.shape_cast %477 : vector<8x128xf32> to vector<1x8x128xf32>
    tpu.vector_store %arg7[%478, %c0_198, %c0_199], %481 {strides = array<i32>} : memref<16x8x128xf32, #tpu.memory_space<vmem>>, vector<1x8x128xf32>,
    %c14_i32 = arith.constant 14 : i32
    %482 = arith.index_cast %c14_i32 : i32 to index
    %c0_200 = arith.constant 0 : index
    %c0_201 = arith.constant 0 : index
    %483 = vector.load %arg1[%482, %c0_200, %c0_201] : memref<16x8x1xi32, #tpu.memory_space<vmem>>, vector<1x8x1xi32>
    %484 = vector.shape_cast %483 : vector<1x8x1xi32> to vector<8x1xi32>
    %485 = vector.broadcast %484 : vector<8x1xi32> to vector<8x128xi32>
    %486 = arith.cmpi eq, %3, %485 : vector<8x128xi32>
    %487 = arith.extui %486 : vector<8x128xi1> to vector<8x128xi32>
    %488 = arith.sitofp %487 : vector<8x128xi32> to vector<8x128xf32>
    %489 = tpu.concatenate %488, %458 in 1 : vector<8x128xf32>, vector<8x128xf32> -> vector<8x256xf32>
    %c0_202 = arith.constant 0 : index
    %c0_203 = arith.constant 0 : index
    %490 = vector.load %arg3[%c0_202, %c0_203] : memref<256x128xf32, #tpu.memory_space<vmem>>, vector<256x128xf32>
    %cst_204 = arith.constant dense<0.000000e+00> : vector<8x128xf32>
    %491 = tpu.matmul %489, %490, %cst_204 {dimension_numbers = #tpu.dot_dimension_numbers<[1], [0], [0], [1], [0, 0, 1, 1], [], []>} : vector<8x256xf32>, vector<256x128xf32>, vector<8x128xf32> -> vector<8x128xf32>
    %492 = math.tanh %491 : vector<8x128xf32>
    %493 = arith.index_cast %c14_i32 : i32 to index
    %c0_205 = arith.constant 0 : index
    %c0_206 = arith.constant 0 : index
    %494 = vector.load %arg6[%493, %c0_205, %c0_206] : memref<16x8x128xf32, #tpu.memory_space<vmem>>, vector<1x8x128xf32>
    %495 = vector.shape_cast %494 : vector<1x8x128xf32> to vector<8x128xf32>
    %496 = vector.shape_cast %492 : vector<8x128xf32> to vector<1x8x128xf32>
    tpu.vector_store %arg6[%493, %c0_205, %c0_206], %496 {strides = array<i32>} : memref<16x8x128xf32, #tpu.memory_space<vmem>>, vector<1x8x128xf32>,
    %c0_207 = arith.constant 0 : index
    %c0_208 = arith.constant 0 : index
    %497 = vector.load %arg4[%c0_207, %c0_208] : memref<128x128xf32, #tpu.memory_space<vmem>>, vector<128x128xf32>
    %cst_209 = arith.constant dense<0.000000e+00> : vector<8x128xf32>
    %498 = tpu.matmul %492, %497, %cst_209 {dimension_numbers = #tpu.dot_dimension_numbers<[1], [0], [0], [1], [0, 0, 1, 1], [], []>} : vector<8x128xf32>, vector<128x128xf32>, vector<8x128xf32> -> vector<8x128xf32>
    %499 = vector.broadcast %4 : vector<1x128xf32> to vector<8x128xf32>
    %500 = arith.addf %498, %499 : vector<8x128xf32>
    %cst_210 = arith.constant dense<0xFF800000> : vector<8xf32>
    %501 = vector.multi_reduction <maximumf>, %500, %cst_210 [1] : vector<8x128xf32> to vector<8xf32>
    %502 = vector.shape_cast %501 : vector<8xf32> to vector<8x1xf32>
    %503 = vector.broadcast %502 : vector<8x1xf32> to vector<8x128xf32>
    %504 = arith.subf %500, %503 : vector<8x128xf32>
    %505 = math.exp %504 : vector<8x128xf32>
    %cst_211 = arith.constant dense<0.000000e+00> : vector<8xf32>
    %506 = vector.multi_reduction <add>, %505, %cst_211 [1] : vector<8x128xf32> to vector<8xf32>
    %507 = vector.shape_cast %506 : vector<8xf32> to vector<8x1xf32>
    %508 = math.log %507 : vector<8x1xf32>
    %509 = arith.addf %502, %508 : vector<8x1xf32>
    %510 = vector.broadcast %509 : vector<8x1xf32> to vector<8x128xf32>
    %511 = arith.subf %500, %510 : vector<8x128xf32>
    %512 = arith.index_cast %c14_i32 : i32 to index
    %c0_212 = arith.constant 0 : index
    %c0_213 = arith.constant 0 : index
    %513 = vector.load %arg7[%512, %c0_212, %c0_213] : memref<16x8x128xf32, #tpu.memory_space<vmem>>, vector<1x8x128xf32>
    %514 = vector.shape_cast %513 : vector<1x8x128xf32> to vector<8x128xf32>
    %515 = vector.shape_cast %511 : vector<8x128xf32> to vector<1x8x128xf32>
    tpu.vector_store %arg7[%512, %c0_212, %c0_213], %515 {strides = array<i32>} : memref<16x8x128xf32, #tpu.memory_space<vmem>>, vector<1x8x128xf32>,
    %c15_i32 = arith.constant 15 : i32
    %516 = arith.index_cast %c15_i32 : i32 to index
    %c0_214 = arith.constant 0 : index
    %c0_215 = arith.constant 0 : index
    %517 = vector.load %arg1[%516, %c0_214, %c0_215] : memref<16x8x1xi32, #tpu.memory_space<vmem>>, vector<1x8x1xi32>
    %518 = vector.shape_cast %517 : vector<1x8x1xi32> to vector<8x1xi32>
    %519 = vector.broadcast %518 : vector<8x1xi32> to vector<8x128xi32>
    %520 = arith.cmpi eq, %3, %519 : vector<8x128xi32>
    %521 = arith.extui %520 : vector<8x128xi1> to vector<8x128xi32>
    %522 = arith.sitofp %521 : vector<8x128xi32> to vector<8x128xf32>
    %523 = tpu.concatenate %522, %492 in 1 : vector<8x128xf32>, vector<8x128xf32> -> vector<8x256xf32>
    %c0_216 = arith.constant 0 : index
    %c0_217 = arith.constant 0 : index
    %524 = vector.load %arg3[%c0_216, %c0_217] : memref<256x128xf32, #tpu.memory_space<vmem>>, vector<256x128xf32>
    %cst_218 = arith.constant dense<0.000000e+00> : vector<8x128xf32>
    %525 = tpu.matmul %523, %524, %cst_218 {dimension_numbers = #tpu.dot_dimension_numbers<[1], [0], [0], [1], [0, 0, 1, 1], [], []>} : vector<8x256xf32>, vector<256x128xf32>, vector<8x128xf32> -> vector<8x128xf32>
    %526 = math.tanh %525 : vector<8x128xf32>
    %527 = arith.index_cast %c15_i32 : i32 to index
    %c0_219 = arith.constant 0 : index
    %c0_220 = arith.constant 0 : index
    %528 = vector.load %arg6[%527, %c0_219, %c0_220] : memref<16x8x128xf32, #tpu.memory_space<vmem>>, vector<1x8x128xf32>
    %529 = vector.shape_cast %528 : vector<1x8x128xf32> to vector<8x128xf32>
    %530 = vector.shape_cast %526 : vector<8x128xf32> to vector<1x8x128xf32>
    tpu.vector_store %arg6[%527, %c0_219, %c0_220], %530 {strides = array<i32>} : memref<16x8x128xf32, #tpu.memory_space<vmem>>, vector<1x8x128xf32>,
    %c0_221 = arith.constant 0 : index
    %c0_222 = arith.constant 0 : index
    %531 = vector.load %arg4[%c0_221, %c0_222] : memref<128x128xf32, #tpu.memory_space<vmem>>, vector<128x128xf32>
    %cst_223 = arith.constant dense<0.000000e+00> : vector<8x128xf32>
    %532 = tpu.matmul %526, %531, %cst_223 {dimension_numbers = #tpu.dot_dimension_numbers<[1], [0], [0], [1], [0, 0, 1, 1], [], []>} : vector<8x128xf32>, vector<128x128xf32>, vector<8x128xf32> -> vector<8x128xf32>
    %533 = vector.broadcast %4 : vector<1x128xf32> to vector<8x128xf32>
    %534 = arith.addf %532, %533 : vector<8x128xf32>
    %cst_224 = arith.constant dense<0xFF800000> : vector<8xf32>
    %535 = vector.multi_reduction <maximumf>, %534, %cst_224 [1] : vector<8x128xf32> to vector<8xf32>
    %536 = vector.shape_cast %535 : vector<8xf32> to vector<8x1xf32>
    %537 = vector.broadcast %536 : vector<8x1xf32> to vector<8x128xf32>
    %538 = arith.subf %534, %537 : vector<8x128xf32>
    %539 = math.exp %538 : vector<8x128xf32>
    %cst_225 = arith.constant dense<0.000000e+00> : vector<8xf32>
    %540 = vector.multi_reduction <add>, %539, %cst_225 [1] : vector<8x128xf32> to vector<8xf32>
    %541 = vector.shape_cast %540 : vector<8xf32> to vector<8x1xf32>
    %542 = math.log %541 : vector<8x1xf32>
    %543 = arith.addf %536, %542 : vector<8x1xf32>
    %544 = vector.broadcast %543 : vector<8x1xf32> to vector<8x128xf32>
    %545 = arith.subf %534, %544 : vector<8x128xf32>
    %546 = arith.index_cast %c15_i32 : i32 to index
    %c0_226 = arith.constant 0 : index
    %c0_227 = arith.constant 0 : index
    %547 = vector.load %arg7[%546, %c0_226, %c0_227] : memref<16x8x128xf32, #tpu.memory_space<vmem>>, vector<1x8x128xf32>
    %548 = vector.shape_cast %547 : vector<1x8x128xf32> to vector<8x128xf32>
    %549 = vector.shape_cast %545 : vector<8x128xf32> to vector<1x8x128xf32>
    tpu.vector_store %arg7[%546, %c0_226, %c0_227], %549 {strides = array<i32>} : memref<16x8x128xf32, #tpu.memory_space<vmem>>, vector<1x8x128xf32>,
    %c16_i32 = arith.constant 16 : i32
    %c0_228 = arith.constant 0 : index
    %c0_229 = arith.constant 0 : index
    %550 = vector.load %arg8[%c0_228, %c0_229] : memref<8x128xf32, #tpu.memory_space<vmem>>, vector<8x128xf32>
    tpu.vector_store %arg8[%c0_228, %c0_229], %526 {strides = array<i32>} : memref<8x128xf32, #tpu.memory_space<vmem>>, vector<8x128xf32>,
    return
  }
  func.func @transform_0(%arg0: i32) -> (i32, i32, i32) {
    %c0_i32 = arith.constant 0 : i32
    %c0_i32_0 = arith.constant 0 : i32
    %c0_i32_1 = arith.constant 0 : i32
    return %arg0, %c0_i32, %c0_i32_0 : i32, i32, i32
  }
  func.func @transform_1(%arg0: i32) -> (i32, i32) {
    %c0_i32 = arith.constant 0 : i32
    %c0_i32_0 = arith.constant 0 : i32
    %c0_i32_1 = arith.constant 0 : i32
    return %c0_i32, %c0_i32_0 : i32, i32
  }
  func.func @transform_2(%arg0: i32) -> (i32, i32) {
    %c0_i32 = arith.constant 0 : i32
    %c0_i32_0 = arith.constant 0 : i32
    %c0_i32_1 = arith.constant 0 : i32
    return %c0_i32, %c0_i32_0 : i32, i32
  }
  func.func @transform_3(%arg0: i32) -> (i32, i32) {
    %c0_i32 = arith.constant 0 : i32
    %c0_i32_0 = arith.constant 0 : i32
    %c0_i32_1 = arith.constant 0 : i32
    return %c0_i32, %c0_i32_0 : i32, i32
  }
  func.func @transform_4(%arg0: i32) -> (i32, i32) {
    %c0_i32 = arith.constant 0 : i32
    %c0_i32_0 = arith.constant 0 : i32
    %c0_i32_1 = arith.constant 0 : i32
    return %c0_i32, %c0_i32_0 : i32, i32
  }
  func.func @transform_5(%arg0: i32) -> (i32, i32, i32) {
    %c0_i32 = arith.constant 0 : i32
    %c0_i32_0 = arith.constant 0 : i32
    %c0_i32_1 = arith.constant 0 : i32
    return %arg0, %c0_i32, %c0_i32_0 : i32, i32, i32
  }
  func.func @transform_6(%arg0: i32) -> (i32, i32, i32) {
    %c0_i32 = arith.constant 0 : i32
    %c0_i32_0 = arith.constant 0 : i32
    %c0_i32_1 = arith.constant 0 : i32
    return %arg0, %c0_i32, %c0_i32_0 : i32, i32, i32
  }
}

</mosaic_0001>

<bundles_post_ra>
// kernel: tpu_custom_call.1
= control target key start
LH: loop header
LB: loop body
LE: loop exit
PB: predicated region body
PF: predicated region fallthrough
CT: control target
= control target key end

     0   :  { %12 = vsyncpa [#allocation4], 0  ;;  %s7056_s0 = inlined_call_operand.vmem [shape: s32[16,8,1], index: 0, kind: input, shape index: {}]   ;;  %s7057_s1 = inlined_call_operand.vmem [shape: f32[8,128], index: 1, kind: input, shape index: {}]   ;;  %s7058_s2 = inlined_call_operand.hbm [shape: f32[256,128], index: 2, kind: input, shape index: {}]   ;;  %s7059_s3 = inlined_call_operand.vmem [shape: f32[128,128], index: 3, kind: input, shape index: {}]   ;;  %s7060_s4 = inlined_call_operand.vmem [shape: f32[1,128], index: 4, kind: input, shape index: {}]   ;;  %s7061_s5 = inlined_call_operand.hbm [shape: f32[16,8,128], index: 5, kind: output, shape index: {0}]   ;;  %s7062_s6 = inlined_call_operand.hbm [shape: f32[16,8,128], index: 6, kind: output, shape index: {1}]  }
   0x1   :  { %13 = vsyncpa [#allocation5], 0 }
   0x2   :  { %14 = vsyncpa [#allocation8], 0  ;;  %s5092_s21 = smov [#allocation3]  }
   0x3   :  { %s24_s22 = sshll.u32 %s5092_s21, 4  ;;  %s25_s22 = int_to_ptr.vmem [resolvable:$true] %s24_s22 }
   0x4   :  { %s5034_s23 = scalar_lea.vmem %s25_s22, 4096  ;;  %p5039_p1 = scmp.lt.s32.totalorder %s25_s22, %s25_s22 }
   0x5   :  { %p5035_p0 = scmp.ne.s32.totalorder %s25_s22, %s5034_s23  ;;  %p5040_p2 = scmp.lt.s32.totalorder %s5034_s23, %s5034_s23 }
   0x7   :  { %p5041_p3 = por %p5040_p2, %p5039_p1 }
   0x9   :  { %p5042_p4 = pnand %p5041_p3, %p5035_p0 }
   0xb   :  { %5045 = shalt.err (!%p5042_p4)
}
   0xc   :  { %s5093_s24 = smov 128   ;;  %s5094_s25 = smov 8  }
   0xd   :  { %30 = dma.hbm_to_vmem [thread:$0]  %s7058_s2, 4096, %s25_s22, [#allocation4], %s5093_s24, %s5093_s24, %s5094_s25  }
   0xe   :  { %5086 = dma.done.wait [#allocation4], 4096  }
   0xf   :  { %5087 = vsyncadd [#allocation4], 4294963200  ;;  %v5095_v0 = vmov 0   ;;  %v48_v1 = vld [vmem:[%s7056_s0] sm:$0xff]  ;;  %v3480_v2 = vld [vmem:[%s7056_s0 + $0x8] sm:$0xff]  ;;  %v7065_v38 = vmov 0.0   ;;  %v44_v49 = vlaneseq }
  0x10   :  { %4926 = vset.pattern.permute.xlu0 %v5095_v0  ;;  %4927 = vset.pattern.permute.xlu1 %v5095_v0  ;;  %v5148_v3 = vld [vmem:[#allocation3 + $0xf8] sm:$0xff]  ;;  %v5153_v5 = vld [vmem:[#allocation3 + $0xf0] sm:$0xff]  ;;  %v5158_v7 = vld [vmem:[#allocation3 + $0xe8] sm:$0xff]  ;;  %v7063_v52 = vmov 1.0   ;;  %vm5098_vm1 = vmmov 0  }
  0x11   :  { %50 = vperm.xlu0 %4926, %v48_v1   ;;  %3525 = vmatprep.subr.mxu0 %v5148_v3  ;;  %v5151_v4 = vld [vmem:[#allocation3 + $0x78] sm:$0xff]  ;;  %v5155_v6 = vld [vmem:[#allocation3 + $0x70] sm:$0xff]  ;;  %v5161_v8 = vld [vmem:[#allocation3 + $0x68] sm:$0xff]  ;;  %v5309_v50 = vand.u32 127, %v44_v49 }
  0x12   :  { %3526 = vmatpush3.msra.mxu0 %v5151_v4  ;;  %v3489_v9 = vld [vmem:[%s7056_s0 + $0x20] sm:$0xff]  ;;  %v5173_v12 = vld [vmem:[#allocation3 + $0xd8] sm:$0xff]  ;;  %v3495_v14 = vld [vmem:[%s7056_s0 + $0x30] sm:$0xff]  ;;  %4357 = vmatprep.subr.mxu1 %v7065_v38 }
  0x13   :  { %3527 = vmatprep.subr.mxu0 %v5153_v5  ;;  %v5167_v10 = vld [vmem:[#allocation3 + $0xe0] sm:$0xff]  ;;  %v5176_v13 = vld [vmem:[#allocation3 + $0x58] sm:$0xff]  ;;  %v5182_v15 = vld [vmem:[#allocation3 + $0xd0] sm:$0xff]  ;;  %4389 = vmatprep.mubr.msk.f32.mxu1 %vm5098_vm1, %v7065_v38 }
  0x14   :  { %3528 = vmatpush3.msra.mxu0 %v5155_v6  ;;  %v5170_v11 = vld [vmem:[#allocation3 + $0x60] sm:$0xff]  ;;  %v5185_v16 = vld [vmem:[#allocation3 + $0x50] sm:$0xff]  ;;  %v5188_v17 = vld [vmem:[#allocation3 + $0xc8] sm:$0xff] }
  0x15   :  { %266 = vperm.xlu0 %4926, %v3480_v2   ;;  %3529 = vmatprep.subr.mxu0 %v5158_v7  ;;  %v5191_v18 = vld [vmem:[#allocation3 + $0x48] sm:$0xff]  ;;  %v42_v19 = vld [vmem:[%s7057_s1] sm:$0xff]  ;;  %v5206_v23 = vld [vmem:[#allocation3 + $0xb8] sm:$0xff] }
  0x16   :  { %3530 = vmatpush3.msra.mxu0 %v5161_v8  ;;  %v3501_v20 = vld [vmem:[%s7056_s0 + $0x40] sm:$0xff]  ;;  %151 = vmatprep.mubr.f32.mxu0 %v42_v19  ;;  %v5209_v24 = vld [vmem:[#allocation3 + $0x38] sm:$0xff]  ;;  %v3507_v25 = vld [vmem:[%s7056_s0 + $0x50] sm:$0xff] }
  0x17   :  { %3531 = vmatprep.subr.mxu0 %v5167_v10  ;;  %v5200_v21 = vld [vmem:[#allocation3 + $0xc0] sm:$0xff]  ;;  %v5215_v26 = vld [vmem:[#allocation3 + $0xb0] sm:$0xff]  ;;  %v5221_v28 = vld [vmem:[#allocation3 + $0xa8] sm:$0xff] }
  0x18   :  { %3532 = vmatpush3.msra.mxu0 %v5170_v11  ;;  %v5203_v22 = vld [vmem:[#allocation3 + $0x40] sm:$0xff]  ;;  %v5218_v27 = vld [vmem:[#allocation3 + $0x30] sm:$0xff]  ;;  %v5224_v29 = vld [vmem:[#allocation3 + $0x28] sm:$0xff] }
  0x19   :  { %902 = vperm.xlu0 %4926, %v3489_v9   ;;  %3533 = vmatprep.subr.mxu0 %v5173_v12  ;;  %v3513_v30 = vld [vmem:[%s7056_s0 + $0x60] sm:$0xff]  ;;  %v5236_v33 = vld [vmem:[#allocation3 + $0x98] sm:$0xff]  ;;  %v3519_v36 = vld [vmem:[%s7056_s0 + $0x70] sm:$0xff] }
  0x1a   :  { %3534 = vmatpush3.msra.mxu0 %v5176_v13  ;;  %v5230_v31 = vld [vmem:[#allocation3 + $0xa0] sm:$0xff]  ;;  %v5239_v34 = vld [vmem:[#allocation3 + $0x18] sm:$0xff]  ;;  %v5250_v37 = vld [vmem:[#allocation3 + $0x90] sm:$0xff] }
  0x1b   :  { %3535 = vmatprep.subr.mxu0 %v5182_v15  ;;  %v5233_v32 = vld [vmem:[#allocation3 + $0x20] sm:$0xff]  ;;  %v5244_v35 = vld [vmem:[%s7059_s3 + $0x78] sm:$0xff]  ;;  %v5254_v39 = vld [vmem:[#allocation3 + $0x10] sm:$0xff] }
  0x1c   :  { %3536 = vmatpush3.msra.mxu0 %v5185_v16  ;;  %4358 = vmatpush3.msra.mxu1 %v5244_v35  ;;  %v5260_v40 = vld [vmem:[%s7059_s3 + $0x70] sm:$0xff]  ;;  %v5263_v41 = vld [vmem:[#allocation3 + $0x88] sm:$0xff]  ;;  %v5275_v44 = vld [vmem:[#allocation3 + $0x80] sm:$0xff] }
  0x1d   :  { %1326 = vperm.xlu0 %4926, %v3495_v14   ;;  %3537 = vmatprep.subr.mxu0 %v5188_v17  ;;  %v5267_v42 = vld [vmem:[#allocation3 + $0x8] sm:$0xff]  ;;  %v5279_v45 = vld [vmem:[#allocation3] sm:$0xff]  ;;  %v5294_v47 = vld [vmem:[%s7059_s3 + $0x58] sm:$0xff] }
  0x1e   :  { %3538 = vmatpush3.msra.mxu0 %v5191_v18  ;;  %4359 = vmatprep.subr.mxu1 %v7065_v38  ;;  %v5272_v43 = vld [vmem:[%s7059_s3 + $0x68] sm:$0xff]  ;;  %v5285_v46 = vld [vmem:[%s7059_s3 + $0x60] sm:$0xff]  ;;  %v5303_v48 = vld [vmem:[%s7059_s3 + $0x50] sm:$0xff] }
  0x1f   :  { %3539 = vmatprep.subr.mxu0 %v5200_v21  ;;  %4360 = vmatpush3.msra.mxu1 %v5260_v40  ;;  %v5348_v53 = vld [vmem:[%s7059_s3 + $0x48] sm:$0xff]  ;;  %v5355_v54 = vld [vmem:[%s7059_s3 + $0x40] sm:$0xff]  ;;  %v5362_v55 = vld [vmem:[%s7059_s3 + $0x38] sm:$0xff] }
  0x20   :  { %3540 = vmatpush3.msra.mxu0 %v5203_v22  ;;  %4361 = vmatprep.subr.mxu1 %v7065_v38  ;;  %v5369_v56 = vld [vmem:[%s7059_s3 + $0x30] sm:$0xff]  ;;  %v5376_v57 = vld [vmem:[%s7059_s3 + $0x28] sm:$0xff]  ;;  %v5383_v58 = vld [vmem:[%s7059_s3 + $0x20] sm:$0xff] }
  0x21   :  { %1750 = vperm.xlu0 %4926, %v3501_v20   ;;  %3541 = vmatprep.subr.mxu0 %v5206_v23  ;;  %v5390_v59 = vld [vmem:[%s7059_s3 + $0x18] sm:$0xff]  ;;  %v5397_v60 = vld [vmem:[%s7059_s3 + $0x10] sm:$0xff]  ;;  %v5404_v61 = vld [vmem:[%s7059_s3 + $0x8] sm:$0xff] }
  0x22   :  { %3542 = vmatpush3.msra.mxu0 %v5209_v24  ;;  %4362 = vmatpush3.msra.mxu1 %v5272_v43  ;;  %v5411_v62 = vld [vmem:[%s7059_s3] sm:$0xff]  ;;  %v3483_v63 = vld [vmem:[%s7056_s0 + $0x10] sm:$0xff]  ;;  %v3486_v0 = vld [vmem:[%s7056_s0 + $0x18] sm:$0xff] }
  0x23   :  { %3543 = vmatprep.subr.mxu0 %v5215_v26  ;;  %4363 = vmatprep.subr.mxu1 %v7065_v38  ;;  %v3492_v1 = vld [vmem:[%s7056_s0 + $0x28] sm:$0xff]  ;;  %v3498_v2 = vld [vmem:[%s7056_s0 + $0x38] sm:$0xff] }
  0x24   :  { %3544 = vmatpush3.msra.mxu0 %v5218_v27  ;;  %4364 = vmatpush3.msra.mxu1 %v5285_v46  ;;  %v3504_v9 = vld [vmem:[%s7056_s0 + $0x48] sm:$0xff]  ;;  %v3510_v14 = vld [vmem:[%s7056_s0 + $0x58] sm:$0xff] }
  0x25   :  { %2174 = vperm.xlu0 %4926, %v3507_v25   ;;  %3545 = vmatprep.subr.mxu0 %v5221_v28  ;;  %v3516_v19 = vld [vmem:[%s7056_s0 + $0x68] sm:$0xff]  ;;  %v3522_v20 = vld [vmem:[%s7056_s0 + $0x78] sm:$0xff] }
  0x26   :  { %3546 = vmatpush3.msra.mxu0 %v5224_v29  ;;  %4365 = vmatprep.subr.mxu1 %v7065_v38 }
  0x27   :  { %3547 = vmatprep.subr.mxu0 %v5230_v31  ;;  %4366 = vmatpush3.msra.mxu1 %v5294_v47 }
  0x28   :  { %3548 = vmatpush3.msra.mxu0 %v5233_v32  ;;  %4367 = vmatprep.subr.mxu1 %v7065_v38 }
  0x29   :  { %2598 = vperm.xlu0 %4926, %v3513_v30   ;;  %3549 = vmatprep.subr.mxu0 %v5236_v33 }
  0x2a   :  { %3550 = vmatpush3.msra.mxu0 %v5239_v34  ;;  %4368 = vmatpush3.msra.mxu1 %v5303_v48 }
  0x2b   :  { %3551 = vmatprep.subr.mxu0 %v5250_v37  ;;  %4369 = vmatprep.subr.mxu1 %v7065_v38 }
  0x2c   :  { %3552 = vmatpush3.msra.mxu0 %v5254_v39  ;;  %4370 = vmatpush3.msra.mxu1 %v5348_v53 }
  0x2d   :  { %3022 = vperm.xlu0 %4926, %v3519_v36   ;;  %3553 = vmatprep.subr.mxu0 %v5263_v41 }
  0x2e   :  { %3554 = vmatpush3.msra.mxu0 %v5267_v42  ;;  %4371 = vmatprep.subr.mxu1 %v7065_v38 }
  0x2f   :  { %3555 = vmatprep.subr.mxu0 %v5275_v44  ;;  %4372 = vmatpush3.msra.mxu1 %v5355_v54 }
  0x30   :  { %3556 = vmatpush3.msra.mxu0 %v5279_v45  ;;  %4373 = vmatprep.subr.mxu1 %v7065_v38 }
  0x31   :  { %3577 = vmatprep.subr.mxu0 %v5148_v3  ;;  %4374 = vmatpush3.msra.mxu1 %v5362_v55 }
  0x32   :  { %4375 = vmatprep.subr.mxu1 %v7065_v38  ;;  %478 = vperm.xlu1 %4927, %v3483_v63   ;;  %v5512_v63 = vld [vmem:[%s7060_s4] ss:$0 sm:$0xff] }
  0x33   :  { %4376 = vmatpush3.msra.mxu1 %v5369_v56 }
  0x34   :  { %4377 = vmatprep.subr.mxu1 %v7065_v38 }
  0x35   :  { %4378 = vmatpush3.msra.mxu1 %v5376_v57 }
  0x36   :  { %4379 = vmatprep.subr.mxu1 %v7065_v38  ;;  %690 = vperm.xlu1 %4927, %v3486_v0  }
  0x37   :  { %4380 = vmatpush3.msra.mxu1 %v5383_v58 }
  0x38   :  { %4381 = vmatprep.subr.mxu1 %v7065_v38 }
  0x39   :  { %4382 = vmatpush3.msra.mxu1 %v5390_v59 }
  0x3a   :  { %4383 = vmatprep.subr.mxu1 %v7065_v38  ;;  %1114 = vperm.xlu1 %4927, %v3492_v1  }
  0x3b   :  { %4384 = vmatpush3.msra.mxu1 %v5397_v60 }
  0x3c   :  { %4385 = vmatprep.subr.mxu1 %v7065_v38 }
  0x3d   :  { %4386 = vmatpush3.msra.mxu1 %v5404_v61 }
  0x3e   :  { %4387 = vmatprep.subr.mxu1 %v7065_v38  ;;  %1538 = vperm.xlu1 %4927, %v3498_v2  }
  0x3f   :  { %4388 = vmatpush3.msra.mxu1 %v5411_v62 }
  0x40   :  { %4392 = vmatprep.subr.mxu1 %v7065_v38 }
  0x42   :  { %1962 = vperm.xlu1 %4927, %v3504_v9  }
  0x46   :  { %2386 = vperm.xlu1 %4927, %v3510_v14  }
  0x4a   :  { %2810 = vperm.xlu1 %4927, %v3516_v19  }
  0x4e   :  { %3234 = vperm.xlu1 %4927, %v3522_v20  }
  0x8c   :  { %v51_v51 = vpop.permute.xlu0 %50 }
  0x8d   :  { %vm52_vm0 = vcmp.eq.s32.totalorder %v5309_v50, %v51_v51 }
  0x8e   :  { %3478 = vmatmul.mubr.msk.f32.vlgmr.msra.gmra.mxu0 %vm52_vm0, %v7063_v52 }
  0x8f   :  { %3578 = vmatpush3.msra.mxu0 %v5151_v4 }
  0x90   :  { %3579 = vmatprep.subr.mxu0 %v5153_v5  ;;  %v267_v49 = vpop.permute.xlu0 %266 }
  0x91   :  { %3580 = vmatpush3.msra.mxu0 %v5155_v6  ;;  %vm268_vm2 = vcmp.eq.s32.totalorder %v5309_v50, %v267_v49 }
  0x92   :  { %3581 = vmatprep.subr.mxu0 %v5158_v7 }
  0x93   :  { %3582 = vmatpush3.msra.mxu0 %v5161_v8 }
  0x94   :  { %3583 = vmatprep.subr.mxu0 %v5167_v10 }
  0x95   :  { %3584 = vmatpush3.msra.mxu0 %v5170_v11 }
  0x96   :  { %3585 = vmatprep.subr.mxu0 %v5173_v12 }
  0x97   :  { %3586 = vmatpush3.msra.mxu0 %v5176_v13 }
  0x98   :  { %3587 = vmatprep.subr.mxu0 %v5182_v15 }
  0x99   :  { %3588 = vmatpush3.msra.mxu0 %v5185_v16 }
  0x9a   :  { %3589 = vmatprep.subr.mxu0 %v5188_v17 }
  0x9b   :  { %3590 = vmatpush3.msra.mxu0 %v5191_v18 }
  0x9c   :  { %3591 = vmatprep.subr.mxu0 %v5200_v21 }
  0x9d   :  { %3592 = vmatpush3.msra.mxu0 %v5203_v22 }
  0x9e   :  { %3593 = vmatprep.subr.mxu0 %v5206_v23 }
  0x9f   :  { %3594 = vmatpush3.msra.mxu0 %v5209_v24 }
  0xa0   :  { %3595 = vmatprep.subr.mxu0 %v5215_v26 }
  0xa1   :  { %3596 = vmatpush3.msra.mxu0 %v5218_v27 }
  0xa2   :  { %3597 = vmatprep.subr.mxu0 %v5221_v28 }
  0xa3   :  { %3598 = vmatpush3.msra.mxu0 %v5224_v29 }
  0xa4   :  { %3599 = vmatprep.subr.mxu0 %v5230_v31 }
  0xa5   :  { %3600 = vmatpush3.msra.mxu0 %v5233_v32 }
  0xa6   :  { %3601 = vmatprep.subr.mxu0 %v5236_v33 }
  0xa7   :  { %3602 = vmatpush3.msra.mxu0 %v5239_v34 }
  0xa8   :  { %3603 = vmatprep.subr.mxu0 %v5250_v37 }
  0xa9   :  { %3604 = vmatpush3.msra.mxu0 %v5254_v39 }
  0xaa   :  { %3605 = vmatprep.subr.mxu0 %v5263_v41 }
  0xab   :  { %3606 = vmatpush3.msra.mxu0 %v5267_v42 }
  0xac   :  { %3607 = vmatprep.subr.mxu0 %v5275_v44 }
  0xad   :  { %3608 = vmatpush3.msra.mxu0 %v5279_v45  ;;  %v479_v20 = vpop.permute.xlu1 %478 }
  0xae   :  { %3629 = vmatprep.subr.mxu0 %v5148_v3  ;;  %vm480_vm3 = vcmp.eq.s32.totalorder %v5309_v50, %v479_v20  ;;  %v5742_v20 = vld [vmem:[#allocation3 + $0x80] sm:$0xff] }
  0xaf   :  { %7088 = vst [vmem:[#allocation21_spill] sm:$0xff] %v5742_v20 }
 0x14e   :  { %v3557_v25 = vpop.f32.mrf.mxu0 }
 0x150   :  { %v3558_v30 = vpop.f32.mrf.mxu0 }
 0x151   :  { %v3559_v36 = vadd.f32 %v3558_v30, %v3557_v25  ;;  %v5723_v30 = vld [vmem:[#allocation3 + $0x98] sm:$0xff] }
 0x153   :  { %4928 = vtanh.f32 %v3559_v36  ;;  %v5726_v36 = vld [vmem:[#allocation3 + $0x18] sm:$0xff] }
 0x160   :  { %v4929_v51 = vpop.eup %4928 }
 0x161   :  { %158 = vst [vmem:[#allocation6] sm:$0xff] %v4929_v51  ;;  %4390 = vmatmul.mubr.f32.vlgmr.msra.gmra.mxu1 %v4929_v51  ;;  %367 = vmatprep.mubr.f32.mxu0 %v4929_v51  ;;  %v5729_v51 = vld [vmem:[#allocation3 + $0x90] sm:$0xff] }
 0x162   :  { %3482 = vmatmul.mubr.msk.f32.vlgmr.msra.gmra.mxu0 %vm268_vm2, %v7063_v52  ;;  %4393 = vmatpush3.msra.mxu1 %v5244_v35 }
 0x163   :  { %4394 = vmatprep.subr.mxu1 %v7065_v38  ;;  %3630 = vmatpush3.msra.mxu0 %v5151_v4 }
 0x164   :  { %4395 = vmatpush3.msra.mxu1 %v5260_v40  ;;  %3631 = vmatprep.subr.mxu0 %v5153_v5 }
 0x165   :  { %4396 = vmatprep.subr.mxu1 %v7065_v38  ;;  %3632 = vmatpush3.msra.mxu0 %v5155_v6 }
 0x166   :  { %4397 = vmatpush3.msra.mxu1 %v5272_v43  ;;  %3633 = vmatprep.subr.mxu0 %v5158_v7 }
 0x167   :  { %4398 = vmatprep.subr.mxu1 %v7065_v38  ;;  %3634 = vmatpush3.msra.mxu0 %v5161_v8 }
 0x168   :  { %4399 = vmatpush3.msra.mxu1 %v5285_v46  ;;  %3635 = vmatprep.subr.mxu0 %v5167_v10 }
 0x169   :  { %4400 = vmatprep.subr.mxu1 %v7065_v38  ;;  %3636 = vmatpush3.msra.mxu0 %v5170_v11 }
 0x16a   :  { %4401 = vmatpush3.msra.mxu1 %v5294_v47  ;;  %3637 = vmatprep.subr.mxu0 %v5173_v12 }
 0x16b   :  { %4402 = vmatprep.subr.mxu1 %v7065_v38  ;;  %3638 = vmatpush3.msra.mxu0 %v5176_v13 }
 0x16c   :  { %4403 = vmatpush3.msra.mxu1 %v5303_v48  ;;  %3639 = vmatprep.subr.mxu0 %v5182_v15 }
 0x16d   :  { %4404 = vmatprep.subr.mxu1 %v7065_v38  ;;  %3640 = vmatpush3.msra.mxu0 %v5185_v16 }
 0x16e   :  { %4405 = vmatpush3.msra.mxu1 %v5348_v53  ;;  %3641 = vmatprep.subr.mxu0 %v5188_v17 }
 0x16f   :  { %4406 = vmatprep.subr.mxu1 %v7065_v38  ;;  %3642 = vmatpush3.msra.mxu0 %v5191_v18 }
 0x170   :  { %4407 = vmatpush3.msra.mxu1 %v5355_v54  ;;  %3643 = vmatprep.subr.mxu0 %v5200_v21 }
 0x171   :  { %4408 = vmatprep.subr.mxu1 %v7065_v38  ;;  %3644 = vmatpush3.msra.mxu0 %v5203_v22 }
 0x172   :  { %4409 = vmatpush3.msra.mxu1 %v5362_v55  ;;  %3645 = vmatprep.subr.mxu0 %v5206_v23 }
 0x173   :  { %4410 = vmatprep.subr.mxu1 %v7065_v38  ;;  %3646 = vmatpush3.msra.mxu0 %v5209_v24 }
 0x174   :  { %4411 = vmatpush3.msra.mxu1 %v5369_v56  ;;  %3647 = vmatprep.subr.mxu0 %v5215_v26 }
 0x175   :  { %4412 = vmatprep.subr.mxu1 %v7065_v38  ;;  %3648 = vmatpush3.msra.mxu0 %v5218_v27 }
 0x176   :  { %4413 = vmatpush3.msra.mxu1 %v5376_v57  ;;  %3649 = vmatprep.subr.mxu0 %v5221_v28 }
 0x177   :  { %4414 = vmatprep.subr.mxu1 %v7065_v38  ;;  %3650 = vmatpush3.msra.mxu0 %v5224_v29 }
 0x178   :  { %4415 = vmatpush3.msra.mxu1 %v5383_v58  ;;  %3651 = vmatprep.subr.mxu0 %v5230_v31 }
 0x179   :  { %4416 = vmatprep.subr.mxu1 %v7065_v38  ;;  %3652 = vmatpush3.msra.mxu0 %v5233_v32 }
 0x17a   :  { %4417 = vmatpush3.msra.mxu1 %v5390_v59  ;;  %3653 = vmatprep.subr.mxu0 %v5236_v33 }
 0x17b   :  { %4418 = vmatprep.subr.mxu1 %v7065_v38  ;;  %3654 = vmatpush3.msra.mxu0 %v5239_v34 }
 0x17c   :  { %4419 = vmatpush3.msra.mxu1 %v5397_v60  ;;  %3655 = vmatprep.subr.mxu0 %v5250_v37 }
 0x17d   :  { %4420 = vmatprep.subr.mxu1 %v7065_v38  ;;  %3656 = vmatpush3.msra.mxu0 %v5254_v39 }
 0x17e   :  { %4421 = vmatpush3.msra.mxu1 %v5404_v61  ;;  %3657 = vmatprep.subr.mxu0 %v5263_v41 }
 0x17f   :  { %4422 = vmatprep.subr.mxu1 %v7065_v38  ;;  %3658 = vmatpush3.msra.mxu0 %v5267_v42 }
 0x180   :  { %4423 = vmatpush3.msra.mxu1 %v5411_v62  ;;  %4424 = vmatprep.mubr.msk.f32.mxu1 %vm5098_vm1, %v7065_v38 }
 0x181   :  { %3659 = vmatprep.subr.mxu0 %v5275_v44  ;;  %4427 = vmatprep.subr.mxu1 %v7065_v38 }
 0x182   :  { %3660 = vmatpush3.msra.mxu0 %v5279_v45 }
 0x183   :  { %3681 = vmatprep.subr.mxu0 %v5148_v3 }
 0x221   :  { %v247_v0 = vpop.f32.mrf.mxu1 }
 0x222   :  { %v5515_v1 = vadd.f32 %v5512_v63, %v247_v0  ;;  %v3609_v2 = vpop.f32.mrf.mxu0 }
 0x223   :  { %v4391_v9 = vpop.f32.mrf.mxu1 }
 0x224   :  { %v3610_v14 = vpop.f32.mrf.mxu0  ;;  %251 = vmax.xlane.f32.xlu0 %v5515_v1  ;;  %v5735_v9 = vld [vmem:[#allocation3 + $0x88] sm:$0xff] }
 0x225   :  { %v3611_v19 = vadd.f32 %v3610_v14, %v3609_v2  ;;  %v5732_v2 = vld [vmem:[#allocation3 + $0x10] sm:$0xff] }
 0x227   :  { %4930 = vtanh.f32 %v3611_v19  ;;  %v5739_v19 = vld [vmem:[#allocation3 + $0x8] sm:$0xff] }
 0x234   :  { %v4931_v25 = vpop.eup %4930 }
 0x235   :  { %375 = vst [vmem:[#allocation6 + $0x8] sm:$0xff] %v4931_v25  ;;  %4425 = vmatmul.mubr.f32.vlgmr.msra.gmra.mxu1 %v4931_v25  ;;  %579 = vmatprep.mubr.f32.mxu0 %v4931_v25 }
 0x236   :  { %3485 = vmatmul.mubr.msk.f32.vlgmr.msra.gmra.mxu0 %vm480_vm3, %v7063_v52  ;;  %4428 = vmatpush3.msra.mxu1 %v5244_v35 }
 0x237   :  { %4429 = vmatprep.subr.mxu1 %v7065_v38  ;;  %3682 = vmatpush3.msra.mxu0 %v5151_v4  ;;  %v5586_v4 = vpop.permute.xlu0 %902 }
 0x238   :  { %4430 = vmatpush3.msra.mxu1 %v5260_v40  ;;  %3683 = vmatprep.subr.mxu0 %v5153_v5  ;;  %vm904_vm5 = vcmp.eq.s32.totalorder %v5309_v50, %v5586_v4  ;;  %v5781_v4 = vld [vmem:[%s7059_s3 + $0x68] sm:$0xff] }
 0x239   :  { %4431 = vmatprep.subr.mxu1 %v7065_v38  ;;  %3684 = vmatpush3.msra.mxu0 %v5155_v6 }
 0x23a   :  { %4432 = vmatpush3.msra.mxu1 %v5272_v43  ;;  %3685 = vmatprep.subr.mxu0 %v5158_v7 }
 0x23b   :  { %4433 = vmatprep.subr.mxu1 %v7065_v38  ;;  %3686 = vmatpush3.msra.mxu0 %v5161_v8  ;;  %v5588_v5 = vpop.permute.xlu0 %1326 }
 0x23c   :  { %4434 = vmatpush3.msra.mxu1 %v5285_v46  ;;  %3687 = vmatprep.subr.mxu0 %v5167_v10  ;;  %vm1328_vm7 = vcmp.eq.s32.totalorder %v5309_v50, %v5588_v5  ;;  %v7095_v5 = vld [vmem:[#allocation21_spill] sm:$0xff] }
 0x23d   :  { %4435 = vmatprep.subr.mxu1 %v7065_v38  ;;  %3688 = vmatpush3.msra.mxu0 %v5170_v11 }
 0x23e   :  { %4436 = vmatpush3.msra.mxu1 %v5294_v47  ;;  %3689 = vmatprep.subr.mxu0 %v5173_v12 }
 0x23f   :  { %4437 = vmatprep.subr.mxu1 %v7065_v38  ;;  %3690 = vmatpush3.msra.mxu0 %v5176_v13  ;;  %v5590_v6 = vpop.permute.xlu0 %1750 }
 0x240   :  { %4438 = vmatpush3.msra.mxu1 %v5303_v48  ;;  %3691 = vmatprep.subr.mxu0 %v5182_v15  ;;  %7079 = vst [vmem:[#allocation12_spill] sm:$0xff] %v5590_v6 }
 0x241   :  { %4439 = vmatprep.subr.mxu1 %v7065_v38  ;;  %3692 = vmatpush3.msra.mxu0 %v5185_v16 }
 0x242   :  { %4440 = vmatpush3.msra.mxu1 %v5348_v53  ;;  %3693 = vmatprep.subr.mxu0 %v5188_v17 }
 0x243   :  { %4441 = vmatprep.subr.mxu1 %v7065_v38  ;;  %3694 = vmatpush3.msra.mxu0 %v5191_v18  ;;  %v5592_v7 = vpop.permute.xlu0 %2174 }
 0x244   :  { %4442 = vmatpush3.msra.mxu1 %v5355_v54  ;;  %3695 = vmatprep.subr.mxu0 %v5200_v21  ;;  %7080 = vst [vmem:[#allocation13_spill] sm:$0xff] %v5592_v7 }
 0x245   :  { %4443 = vmatprep.subr.mxu1 %v7065_v38  ;;  %3696 = vmatpush3.msra.mxu0 %v5203_v22 }
 0x246   :  { %4444 = vmatpush3.msra.mxu1 %v5362_v55  ;;  %3697 = vmatprep.subr.mxu0 %v5206_v23 }
 0x247   :  { %4445 = vmatprep.subr.mxu1 %v7065_v38  ;;  %3698 = vmatpush3.msra.mxu0 %v5209_v24  ;;  %v5594_v8 = vpop.permute.xlu0 %2598  ;;  %v691_v24 = vpop.permute.xlu1 %690 }
 0x248   :  { %4446 = vmatpush3.msra.mxu1 %v5369_v56  ;;  %3699 = vmatprep.subr.mxu0 %v5215_v26  ;;  %7081 = vst [vmem:[#allocation14_spill] sm:$0xff] %v5594_v8  ;;  %vm692_vm4 = vcmp.eq.s32.totalorder %v5309_v50, %v691_v24  ;;  %v5620_v26 = vld [vmem:[#allocation3 + $0x78] sm:$0xff]  ;;  %v5906_v8 = vld [vmem:[%s7059_s3] sm:$0xff] }
 0x249   :  { %4447 = vmatprep.subr.mxu1 %v7065_v38  ;;  %3700 = vmatpush3.msra.mxu0 %v5218_v27  ;;  %v5622_v27 = vld [vmem:[#allocation3 + $0xf0] sm:$0xff]  ;;  %7091 = vst [vmem:[#allocation24_spill] sm:$0xff] %v5906_v8 }
 0x24a   :  { %4448 = vmatpush3.msra.mxu1 %v5376_v57  ;;  %3701 = vmatprep.subr.mxu0 %v5221_v28  ;;  %v5624_v28 = vld [vmem:[#allocation3 + $0x70] sm:$0xff] }
 0x24b   :  { %4449 = vmatprep.subr.mxu1 %v7065_v38  ;;  %3702 = vmatpush3.msra.mxu0 %v5224_v29  ;;  %v5596_v10 = vpop.permute.xlu0 %3022  ;;  %v5628_v29 = vld [vmem:[#allocation3 + $0xe8] sm:$0xff] }
 0x24c   :  { %4450 = vmatpush3.msra.mxu1 %v5383_v58  ;;  %3703 = vmatprep.subr.mxu0 %v5230_v31  ;;  %7082 = vst [vmem:[#allocation15_spill] sm:$0xff] %v5596_v10  ;;  %v5632_v31 = vld [vmem:[#allocation3 + $0x68] sm:$0xff] }
 0x24d   :  { %4451 = vmatprep.subr.mxu1 %v7065_v38  ;;  %3704 = vmatpush3.msra.mxu0 %v5233_v32  ;;  %v5636_v32 = vld [vmem:[#allocation3 + $0xe0] sm:$0xff]  ;;  %v5898_v10 = vld [vmem:[%s7059_s3 + $0x8] sm:$0xff] }
 0x24e   :  { %4452 = vmatpush3.msra.mxu1 %v5390_v59  ;;  %3705 = vmatprep.subr.mxu0 %v5236_v33  ;;  %v5640_v33 = vld [vmem:[#allocation3 + $0x60] sm:$0xff] }
 0x24f   :  { %4453 = vmatprep.subr.mxu1 %v7065_v38  ;;  %3706 = vmatpush3.msra.mxu0 %v5239_v34  ;;  %v5644_v34 = vld [vmem:[#allocation3 + $0xd8] sm:$0xff] }
 0x250   :  { %4454 = vmatpush3.msra.mxu1 %v5397_v60  ;;  %3707 = vmatprep.subr.mxu0 %v5250_v37  ;;  %v5652_v37 = vld [vmem:[#allocation3 + $0xd0] sm:$0xff] }
 0x251   :  { %4455 = vmatprep.subr.mxu1 %v7065_v38  ;;  %3708 = vmatpush3.msra.mxu0 %v5254_v39  ;;  %v5669_v39 = vpop.permute.xlu1 %1114 }
 0x252   :  { %4456 = vmatpush3.msra.mxu1 %v5404_v61  ;;  %3709 = vmatprep.subr.mxu0 %v5263_v41  ;;  %vm1116_vm6 = vcmp.eq.s32.totalorder %v5309_v50, %v5669_v39 }
 0x253   :  { %4457 = vmatprep.subr.mxu1 %v7065_v38  ;;  %3710 = vmatpush3.msra.mxu0 %v5267_v42 }
 0x254   :  { %4458 = vmatpush3.msra.mxu1 %v5411_v62  ;;  %4459 = vmatprep.mubr.msk.f32.mxu1 %vm5098_vm1, %v7065_v38 }
 0x255   :  { %3711 = vmatprep.subr.mxu0 %v5275_v44  ;;  %4462 = vmatprep.subr.mxu1 %v7065_v38 }
 0x256   :  { %3712 = vmatpush3.msra.mxu0 %v5279_v45  ;;  %v5684_v45 = vld [vmem:[#allocation3 + $0x50] sm:$0xff] }
 0x257   :  { %3733 = vmatprep.subr.mxu0 %v5148_v3 }
 0x2ad   :  { %v5598_v11 = vpop.xlane.xlu0 %251 }
 0x2ae   :  { %v253_v12 = vsub.f32 %v5515_v1, %v5598_v11 }
 0x2b0   :  { %v254_v13 = vmul.f32 1.442695, %v253_v12  ;;  %v5746_v12 = vld [vmem:[#allocation3] sm:$0xff] }
 0x2b1   :  { %7089 = vst [vmem:[#allocation22_spill] sm:$0xff] %v5746_v12 }
 0x2b2   :  { %4932 = vpow2.f32 %v254_v13 }
 0x2bf   :  { %v4933_v3 = vpop.eup %4932 }
 0x2c0   :  { %256 = vadd.xlane.f32.xlu1 %v4933_v3 }
 0x2f5   :  { %v458_v15 = vpop.f32.mrf.mxu1 }
 0x2f6   :  { %v5603_v16 = vadd.f32 %v5512_v63, %v458_v15  ;;  %v3661_v17 = vpop.f32.mrf.mxu0 }
 0x2f7   :  { %v4426_v18 = vpop.f32.mrf.mxu1 }
 0x2f8   :  { %v3662_v21 = vpop.f32.mrf.mxu0  ;;  %462 = vmax.xlane.f32.xlu0 %v5603_v16 }
 0x2f9   :  { %v3663_v22 = vadd.f32 %v3662_v21, %v3661_v17 }
 0x2fb   :  { %4934 = vtanh.f32 %v3663_v22 }
 0x308   :  { %v4935_v23 = vpop.eup %4934 }
 0x309   :  { %587 = vst [vmem:[#allocation6 + $0x10] sm:$0xff] %v4935_v23  ;;  %4460 = vmatmul.mubr.f32.vlgmr.msra.gmra.mxu1 %v4935_v23  ;;  %791 = vmatprep.mubr.f32.mxu0 %v4935_v23 }
 0x30a   :  { %3488 = vmatmul.mubr.msk.f32.vlgmr.msra.gmra.mxu0 %vm692_vm4, %v7063_v52  ;;  %4463 = vmatpush3.msra.mxu1 %v5244_v35  ;;  %v5648_v35 = vld [vmem:[#allocation3 + $0x58] sm:$0xff] }
 0x30b   :  { %4464 = vmatprep.subr.mxu1 %v7065_v38  ;;  %4494 = vmatprep.mubr.msk.f32.mxu1 %vm5098_vm1, %v7065_v38 }
 0x30c   :  { %4465 = vmatpush3.msra.mxu1 %v5260_v40  ;;  %3734 = vmatpush3.msra.mxu0 %v5620_v26  ;;  %v5674_v40 = vpop.permute.xlu1 %1538 }
 0x30d   :  { %4466 = vmatprep.subr.mxu1 %v7065_v38  ;;  %3735 = vmatprep.subr.mxu0 %v5622_v27  ;;  %7083 = vst [vmem:[#allocation16_spill] sm:$0xff] %v5674_v40 }
 0x30e   :  { %4467 = vmatpush3.msra.mxu1 %v5272_v43  ;;  %3736 = vmatpush3.msra.mxu0 %v5624_v28 }
 0x30f   :  { %4468 = vmatprep.subr.mxu1 %v7065_v38  ;;  %3737 = vmatprep.subr.mxu0 %v5628_v29 }
 0x310   :  { %4469 = vmatpush3.msra.mxu1 %v5285_v46  ;;  %3738 = vmatpush3.msra.mxu0 %v5632_v31  ;;  %v5676_v41 = vpop.permute.xlu1 %1962 }
 0x311   :  { %4470 = vmatprep.subr.mxu1 %v7065_v38  ;;  %3739 = vmatprep.subr.mxu0 %v5636_v32  ;;  %7084 = vst [vmem:[#allocation17_spill] sm:$0xff] %v5676_v41 }
 0x312   :  { %4471 = vmatpush3.msra.mxu1 %v5294_v47  ;;  %3740 = vmatpush3.msra.mxu0 %v5640_v33  ;;  %v5687_v47 = vld [vmem:[#allocation3 + $0xc8] sm:$0xff] }
 0x313   :  { %4472 = vmatprep.subr.mxu1 %v7065_v38  ;;  %3741 = vmatprep.subr.mxu0 %v5644_v34 }
 0x314   :  { %4473 = vmatpush3.msra.mxu1 %v5303_v48  ;;  %3742 = vmatpush3.msra.mxu0 %v5648_v35  ;;  %v5678_v42 = vpop.permute.xlu1 %2386  ;;  %v5690_v48 = vld [vmem:[#allocation3 + $0x48] sm:$0xff] }
 0x315   :  { %4474 = vmatprep.subr.mxu1 %v7065_v38  ;;  %3743 = vmatprep.subr.mxu0 %v5652_v37  ;;  %7085 = vst [vmem:[#allocation18_spill] sm:$0xff] %v5678_v42 }
 0x316   :  { %4475 = vmatpush3.msra.mxu1 %v5348_v53  ;;  %3744 = vmatpush3.msra.mxu0 %v5684_v45  ;;  %v5693_v53 = vld [vmem:[#allocation3 + $0xc0] sm:$0xff] }
 0x317   :  { %4476 = vmatprep.subr.mxu1 %v7065_v38  ;;  %3745 = vmatprep.subr.mxu0 %v5687_v47 }
 0x318   :  { %4477 = vmatpush3.msra.mxu1 %v5355_v54  ;;  %v5680_v43 = vpop.permute.xlu1 %2810  ;;  %3746 = vmatpush3.msra.mxu0 %v5690_v48  ;;  %v5696_v54 = vld [vmem:[#allocation3 + $0x40] sm:$0xff] }
 0x319   :  { %4478 = vmatprep.subr.mxu1 %v7065_v38  ;;  %7086 = vst [vmem:[#allocation19_spill] sm:$0xff] %v5680_v43  ;;  %3747 = vmatprep.subr.mxu0 %v5693_v53 }
 0x31a   :  { %4479 = vmatpush3.msra.mxu1 %v5362_v55  ;;  %3748 = vmatpush3.msra.mxu0 %v5696_v54  ;;  %v5699_v55 = vld [vmem:[#allocation3 + $0xb8] sm:$0xff] }
 0x31b   :  { %4480 = vmatprep.subr.mxu1 %v7065_v38  ;;  %3749 = vmatprep.subr.mxu0 %v5699_v55 }
 0x31c   :  { %4481 = vmatpush3.msra.mxu1 %v5369_v56  ;;  %v5682_v44 = vpop.permute.xlu1 %3234  ;;  %v5702_v56 = vld [vmem:[#allocation3 + $0x38] sm:$0xff] }
 0x31d   :  { %4482 = vmatprep.subr.mxu1 %v7065_v38  ;;  %7087 = vst [vmem:[#allocation20_spill] sm:$0xff] %v5682_v44  ;;  %3750 = vmatpush3.msra.mxu0 %v5702_v56 }
 0x31e   :  { %4483 = vmatpush3.msra.mxu1 %v5376_v57  ;;  %v5705_v57 = vld [vmem:[#allocation3 + $0xb0] sm:$0xff] }
 0x31f   :  { %4484 = vmatprep.subr.mxu1 %v7065_v38  ;;  %3751 = vmatprep.subr.mxu0 %v5705_v57 }
 0x320   :  { %4485 = vmatpush3.msra.mxu1 %v5383_v58  ;;  %v5708_v58 = vld [vmem:[#allocation3 + $0x30] sm:$0xff] }
 0x321   :  { %4486 = vmatprep.subr.mxu1 %v7065_v38  ;;  %3752 = vmatpush3.msra.mxu0 %v5708_v58 }
 0x322   :  { %4487 = vmatpush3.msra.mxu1 %v5390_v59  ;;  %v5711_v59 = vld [vmem:[#allocation3 + $0xa8] sm:$0xff] }
 0x323   :  { %4488 = vmatprep.subr.mxu1 %v7065_v38  ;;  %3753 = vmatprep.subr.mxu0 %v5711_v59 }
 0x324   :  { %4489 = vmatpush3.msra.mxu1 %v5397_v60  ;;  %v5714_v60 = vld [vmem:[#allocation3 + $0x28] sm:$0xff] }
 0x325   :  { %4490 = vmatprep.subr.mxu1 %v7065_v38  ;;  %3754 = vmatpush3.msra.mxu0 %v5714_v60 }
 0x326   :  { %4491 = vmatpush3.msra.mxu1 %v5404_v61  ;;  %v5717_v61 = vld [vmem:[#allocation3 + $0xa0] sm:$0xff] }
 0x327   :  { %4492 = vmatprep.subr.mxu1 %v7065_v38  ;;  %3755 = vmatprep.subr.mxu0 %v5717_v61 }
 0x328   :  { %4493 = vmatpush3.msra.mxu1 %v5411_v62  ;;  %v5720_v62 = vld [vmem:[#allocation3 + $0x20] sm:$0xff] }
 0x329   :  { %4497 = vmatprep.subr.mxu1 %v7065_v38  ;;  %3756 = vmatpush3.msra.mxu0 %v5720_v62 }
 0x32a   :  { %3757 = vmatprep.subr.mxu0 %v5723_v30 }
 0x32b   :  { %3758 = vmatpush3.msra.mxu0 %v5726_v36 }
 0x32c   :  { %3759 = vmatprep.subr.mxu0 %v5729_v51 }
 0x32d   :  { %3760 = vmatpush3.msra.mxu0 %v5732_v2 }
 0x32e   :  { %3761 = vmatprep.subr.mxu0 %v5735_v9 }
 0x32f   :  { %3762 = vmatpush3.msra.mxu0 %v5739_v19 }
 0x330   :  { %3763 = vmatprep.subr.mxu0 %v5742_v20 }
 0x331   :  { %3764 = vmatpush3.msra.mxu0 %v5746_v12 }
 0x349   :  { %v257_v46 = vpop.xlane.xlu1 %256 }
 0x34a   :  { %4936 = vlog2.f32 %v257_v46  ;;  %v5765_v46 = vld [vmem:[%s7059_s3 + $0x78] sm:$0xff] }
 0x357   :  { %v4937_v49 = vpop.eup %4936 }
 0x358   :  { %v259_v0 = vmul.f32 0.6931472, %v4937_v49  ;;  %v5767_v49 = vld [vmem:[#allocation3 + $0xf8] sm:$0xff] }
 0x359   :  { %7090 = vst [vmem:[#allocation23_spill] sm:$0xff] %v5767_v49  ;;  %3785 = vmatprep.subr.mxu0 %v5767_v49 }
 0x35a   :  { %v260_v14 = vadd.f32 %v259_v0, %v5598_v11  ;;  %v5772_v0 = vld [vmem:[%s7059_s3 + $0x70] sm:$0xff] }
 0x35c   :  { %v261_v25 = vsub.f32 %v5515_v1, %v260_v14  ;;  %v5790_v14 = vld [vmem:[%s7059_s3 + $0x60] sm:$0xff] }
 0x35e   :  { %262 = vst [vmem:[#allocation7] sm:$0xff] %v261_v25  ;;  %v5799_v25 = vld [vmem:[%s7059_s3 + $0x58] sm:$0xff] }
 0x381   :  { %v5749_v13 = vpop.xlane.xlu0 %462 }
 0x382   :  { %v464_v11 = vsub.f32 %v5603_v16, %v5749_v13 }
 0x384   :  { %v465_v3 = vmul.f32 1.442695, %v464_v11  ;;  %v5808_v11 = vld [vmem:[%s7059_s3 + $0x50] sm:$0xff] }
 0x386   :  { %4938 = vpow2.f32 %v465_v3 }
 0x393   :  { %v4939_v15 = vpop.eup %4938 }
 0x394   :  { %467 = vadd.xlane.f32.xlu0 %v4939_v15  ;;  %v5842_v15 = vld [vmem:[%s7059_s3 + $0x48] sm:$0xff] }
 0x3c9   :  { %v670_v17 = vpop.f32.mrf.mxu1 }
 0x3ca   :  { %v5754_v18 = vadd.f32 %v5512_v63, %v670_v17  ;;  %v3713_v1 = vpop.f32.mrf.mxu0  ;;  %v5849_v17 = vld [vmem:[%s7059_s3 + $0x40] sm:$0xff] }
 0x3cb   :  { %v4461_v21 = vpop.f32.mrf.mxu1 }
 0x3cc   :  { %v3714_v22 = vpop.f32.mrf.mxu0  ;;  %674 = vmax.xlane.f32.xlu1 %v5754_v18  ;;  %v5863_v21 = vld [vmem:[%s7059_s3 + $0x30] sm:$0xff] }
 0x3cd   :  { %v3715_v23 = vadd.f32 %v3714_v22, %v3713_v1  ;;  %v5856_v1 = vld [vmem:[%s7059_s3 + $0x38] sm:$0xff]  ;;  %v5870_v22 = vld [vmem:[%s7059_s3 + $0x28] sm:$0xff] }
 0x3cf   :  { %4940 = vtanh.f32 %v3715_v23  ;;  %v5877_v23 = vld [vmem:[%s7059_s3 + $0x20] sm:$0xff] }
 0x3dc   :  { %v4941_v24 = vpop.eup %4940 }
 0x3dd   :  { %799 = vst [vmem:[#allocation6 + $0x18] sm:$0xff] %v4941_v24  ;;  %4495 = vmatmul.mubr.f32.vlgmr.msra.gmra.mxu1 %v4941_v24  ;;  %1003 = vmatprep.mubr.f32.mxu0 %v4941_v24  ;;  %v5884_v24 = vld [vmem:[%s7059_s3 + $0x18] sm:$0xff] }
 0x3de   :  { %3491 = vmatmul.mubr.msk.f32.vlgmr.msra.gmra.mxu0 %vm904_vm5, %v7063_v52  ;;  %4529 = vmatprep.mubr.msk.f32.mxu1 %vm5098_vm1, %v7065_v38  ;;  %v5891_v52 = vld [vmem:[%s7059_s3 + $0x10] sm:$0xff] }
 0x3df   :  { %4498 = vmatpush3.msra.mxu1 %v5765_v46  ;;  %3786 = vmatpush3.msra.mxu0 %v5620_v26 }
 0x3e0   :  { %4499 = vmatprep.subr.mxu1 %v7065_v38  ;;  %3787 = vmatprep.subr.mxu0 %v5622_v27 }
 0x3e1   :  { %4500 = vmatpush3.msra.mxu1 %v5772_v0  ;;  %3788 = vmatpush3.msra.mxu0 %v5624_v28 }
 0x3e2   :  { %4501 = vmatprep.subr.mxu1 %v7065_v38  ;;  %3789 = vmatprep.subr.mxu0 %v5628_v29 }
 0x3e3   :  { %4502 = vmatpush3.msra.mxu1 %v5781_v4  ;;  %3790 = vmatpush3.msra.mxu0 %v5632_v31 }
 0x3e4   :  { %4503 = vmatprep.subr.mxu1 %v7065_v38  ;;  %3791 = vmatprep.subr.mxu0 %v5636_v32 }
 0x3e5   :  { %4504 = vmatpush3.msra.mxu1 %v5790_v14  ;;  %3792 = vmatpush3.msra.mxu0 %v5640_v33 }
 0x3e6   :  { %4505 = vmatprep.subr.mxu1 %v7065_v38  ;;  %3793 = vmatprep.subr.mxu0 %v5644_v34 }
 0x3e7   :  { %4506 = vmatpush3.msra.mxu1 %v5799_v25  ;;  %3794 = vmatpush3.msra.mxu0 %v5648_v35 }
 0x3e8   :  { %4507 = vmatprep.subr.mxu1 %v7065_v38  ;;  %3795 = vmatprep.subr.mxu0 %v5652_v37 }
 0x3e9   :  { %4508 = vmatpush3.msra.mxu1 %v5808_v11  ;;  %3796 = vmatpush3.msra.mxu0 %v5684_v45 }
 0x3ea   :  { %4509 = vmatprep.subr.mxu1 %v7065_v38  ;;  %3797 = vmatprep.subr.mxu0 %v5687_v47 }
 0x3eb   :  { %3798 = vmatpush3.msra.mxu0 %v5690_v48  ;;  %4510 = vmatpush3.msra.mxu1 %v5842_v15 }
 0x3ec   :  { %3799 = vmatprep.subr.mxu0 %v5693_v53  ;;  %4511 = vmatprep.subr.mxu1 %v7065_v38 }
 0x3ed   :  { %3800 = vmatpush3.msra.mxu0 %v5696_v54  ;;  %4512 = vmatpush3.msra.mxu1 %v5849_v17 }
 0x3ee   :  { %3801 = vmatprep.subr.mxu0 %v5699_v55  ;;  %4513 = vmatprep.subr.mxu1 %v7065_v38 }
 0x3ef   :  { %3802 = vmatpush3.msra.mxu0 %v5702_v56  ;;  %4514 = vmatpush3.msra.mxu1 %v5856_v1 }
 0x3f0   :  { %3803 = vmatprep.subr.mxu0 %v5705_v57  ;;  %4515 = vmatprep.subr.mxu1 %v7065_v38 }
 0x3f1   :  { %3804 = vmatpush3.msra.mxu0 %v5708_v58  ;;  %4516 = vmatpush3.msra.mxu1 %v5863_v21 }
 0x3f2   :  { %3805 = vmatprep.subr.mxu0 %v5711_v59  ;;  %4517 = vmatprep.subr.mxu1 %v7065_v38 }
 0x3f3   :  { %3806 = vmatpush3.msra.mxu0 %v5714_v60  ;;  %4518 = vmatpush3.msra.mxu1 %v5870_v22 }
 0x3f4   :  { %3807 = vmatprep.subr.mxu0 %v5717_v61  ;;  %4519 = vmatprep.subr.mxu1 %v7065_v38 }
 0x3f5   :  { %3808 = vmatpush3.msra.mxu0 %v5720_v62  ;;  %4520 = vmatpush3.msra.mxu1 %v5877_v23 }
 0x3f6   :  { %3809 = vmatprep.subr.mxu0 %v5723_v30  ;;  %4521 = vmatprep.subr.mxu1 %v7065_v38 }
 0x3f7   :  { %3810 = vmatpush3.msra.mxu0 %v5726_v36  ;;  %4522 = vmatpush3.msra.mxu1 %v5884_v24 }
 0x3f8   :  { %3811 = vmatprep.subr.mxu0 %v5729_v51  ;;  %4523 = vmatprep.subr.mxu1 %v7065_v38 }
 0x3f9   :  { %3812 = vmatpush3.msra.mxu0 %v5732_v2  ;;  %4524 = vmatpush3.msra.mxu1 %v5891_v52 }
 0x3fa   :  { %3813 = vmatprep.subr.mxu0 %v5735_v9  ;;  %4525 = vmatprep.subr.mxu1 %v7065_v38 }
 0x3fb   :  { %3814 = vmatpush3.msra.mxu0 %v5739_v19  ;;  %4526 = vmatpush3.msra.mxu1 %v5898_v10 }
 0x3fc   :  { %3815 = vmatprep.subr.mxu0 %v5742_v20  ;;  %4527 = vmatprep.subr.mxu1 %v7065_v38 }
 0x3fd   :  { %3816 = vmatpush3.msra.mxu0 %v5746_v12  ;;  %4528 = vmatpush3.msra.mxu1 %v5906_v8 }
 0x3fe   :  { %3837 = vmatprep.subr.mxu0 %v5767_v49  ;;  %4532 = vmatprep.subr.mxu1 %v7065_v38 }
 0x41d   :  { %v468_v3 = vpop.xlane.xlu0 %467 }
 0x41e   :  { %4942 = vlog2.f32 %v468_v3 }
 0x42b   :  { %v4943_v3 = vpop.eup %4942 }
 0x42c   :  { %v470_v44 = vmul.f32 0.6931472, %v4943_v3 }
 0x42e   :  { %v471_v43 = vadd.f32 %v470_v44, %v5749_v13 }
 0x430   :  { %v472_v3 = vsub.f32 %v5603_v16, %v471_v43 }
 0x432   :  { %474 = vst [vmem:[#allocation7 + $0x8] sm:$0xff] %v472_v3 }
 0x455   :  { %v5911_v42 = vpop.xlane.xlu1 %674 }
 0x456   :  { %v676_v44 = vsub.f32 %v5754_v18, %v5911_v42 }
 0x458   :  { %v677_v13 = vmul.f32 1.442695, %v676_v44  ;;  %v7092_v44 = vmov 1.0  }
 0x45a   :  { %4944 = vpow2.f32 %v677_v13 }
 0x467   :  { %v4945_v7 = vpop.eup %4944 }
 0x468   :  { %679 = vadd.xlane.f32.xlu0 %v4945_v7  ;;  %v7093_v7 = vmov 0.0  }
 0x49d   :  { %v882_v41 = vpop.f32.mrf.mxu1 }
 0x49e   :  { %v5916_v6 = vadd.f32 %v5512_v63, %v882_v41  ;;  %v3765_v40 = vpop.f32.mrf.mxu0 }
 0x49f   :  { %v4496_v16 = vpop.f32.mrf.mxu1 }
 0x4a0   :  { %v3766_v43 = vpop.f32.mrf.mxu0  ;;  %886 = vmax.xlane.f32.xlu1 %v5916_v6 }
 0x4a1   :  { %v3767_v38 = vadd.f32 %v3766_v43, %v3765_v40 }
 0x4a3   :  { %4946 = vtanh.f32 %v3767_v38 }
 0x4b0   :  { %v4947_v3 = vpop.eup %4946 }
 0x4b1   :  { %1011 = vst [vmem:[#allocation6 + $0x20] sm:$0xff] %v4947_v3  ;;  %4530 = vmatmul.mubr.f32.vlgmr.msra.gmra.mxu1 %v4947_v3  ;;  %1215 = vmatprep.mubr.f32.mxu0 %v4947_v3 }
 0x4b2   :  { %3494 = vmatmul.mubr.msk.f32.vlgmr.msra.gmra.mxu0 %vm1116_vm6, %v7092_v44  ;;  %4533 = vmatpush3.msra.mxu1 %v5765_v46 }
 0x4b3   :  { %4534 = vmatprep.subr.mxu1 %v7093_v7  ;;  %3838 = vmatpush3.msra.mxu0 %v5620_v26 }
 0x4b4   :  { %4535 = vmatpush3.msra.mxu1 %v5772_v0  ;;  %3839 = vmatprep.subr.mxu0 %v5622_v27 }
 0x4b5   :  { %4536 = vmatprep.subr.mxu1 %v7093_v7  ;;  %3840 = vmatpush3.msra.mxu0 %v5624_v28 }
 0x4b6   :  { %4537 = vmatpush3.msra.mxu1 %v5781_v4  ;;  %3841 = vmatprep.subr.mxu0 %v5628_v29 }
 0x4b7   :  { %4538 = vmatprep.subr.mxu1 %v7093_v7  ;;  %3842 = vmatpush3.msra.mxu0 %v5632_v31 }
 0x4b8   :  { %4539 = vmatpush3.msra.mxu1 %v5790_v14  ;;  %3843 = vmatprep.subr.mxu0 %v5636_v32 }
 0x4b9   :  { %4540 = vmatprep.subr.mxu1 %v7093_v7  ;;  %3844 = vmatpush3.msra.mxu0 %v5640_v33 }
 0x4ba   :  { %4541 = vmatpush3.msra.mxu1 %v5799_v25  ;;  %3845 = vmatprep.subr.mxu0 %v5644_v34 }
 0x4bb   :  { %4542 = vmatprep.subr.mxu1 %v7093_v7  ;;  %3846 = vmatpush3.msra.mxu0 %v5648_v35 }
 0x4bc   :  { %4543 = vmatpush3.msra.mxu1 %v5808_v11  ;;  %3847 = vmatprep.subr.mxu0 %v5652_v37 }
 0x4bd   :  { %4544 = vmatprep.subr.mxu1 %v7093_v7  ;;  %3848 = vmatpush3.msra.mxu0 %v5684_v45 }
 0x4be   :  { %4545 = vmatpush3.msra.mxu1 %v5842_v15  ;;  %3849 = vmatprep.subr.mxu0 %v5687_v47 }
 0x4bf   :  { %4546 = vmatprep.subr.mxu1 %v7093_v7  ;;  %3850 = vmatpush3.msra.mxu0 %v5690_v48 }
 0x4c0   :  { %4547 = vmatpush3.msra.mxu1 %v5849_v17  ;;  %3851 = vmatprep.subr.mxu0 %v5693_v53 }
 0x4c1   :  { %4548 = vmatprep.subr.mxu1 %v7093_v7  ;;  %3852 = vmatpush3.msra.mxu0 %v5696_v54 }
 0x4c2   :  { %4549 = vmatpush3.msra.mxu1 %v5856_v1  ;;  %3853 = vmatprep.subr.mxu0 %v5699_v55 }
 0x4c3   :  { %4550 = vmatprep.subr.mxu1 %v7093_v7  ;;  %3854 = vmatpush3.msra.mxu0 %v5702_v56 }
 0x4c4   :  { %4551 = vmatpush3.msra.mxu1 %v5863_v21  ;;  %3855 = vmatprep.subr.mxu0 %v5705_v57 }
 0x4c5   :  { %4552 = vmatprep.subr.mxu1 %v7093_v7  ;;  %3856 = vmatpush3.msra.mxu0 %v5708_v58 }
 0x4c6   :  { %4553 = vmatpush3.msra.mxu1 %v5870_v22  ;;  %3857 = vmatprep.subr.mxu0 %v5711_v59 }
 0x4c7   :  { %4554 = vmatprep.subr.mxu1 %v7093_v7  ;;  %3858 = vmatpush3.msra.mxu0 %v5714_v60 }
 0x4c8   :  { %4555 = vmatpush3.msra.mxu1 %v5877_v23  ;;  %3859 = vmatprep.subr.mxu0 %v5717_v61 }
 0x4c9   :  { %4556 = vmatprep.subr.mxu1 %v7093_v7  ;;  %3860 = vmatpush3.msra.mxu0 %v5720_v62 }
 0x4ca   :  { %4557 = vmatpush3.msra.mxu1 %v5884_v24  ;;  %3861 = vmatprep.subr.mxu0 %v5723_v30 }
 0x4cb   :  { %4558 = vmatprep.subr.mxu1 %v7093_v7  ;;  %3862 = vmatpush3.msra.mxu0 %v5726_v36 }
 0x4cc   :  { %4559 = vmatpush3.msra.mxu1 %v5891_v52  ;;  %3863 = vmatprep.subr.mxu0 %v5729_v51 }
 0x4cd   :  { %4560 = vmatprep.subr.mxu1 %v7093_v7  ;;  %3864 = vmatpush3.msra.mxu0 %v5732_v2 }
 0x4ce   :  { %4561 = vmatpush3.msra.mxu1 %v5898_v10  ;;  %3865 = vmatprep.subr.mxu0 %v5735_v9 }
 0x4cf   :  { %4562 = vmatprep.subr.mxu1 %v7093_v7  ;;  %3866 = vmatpush3.msra.mxu0 %v5739_v19 }
 0x4d0   :  { %4563 = vmatpush3.msra.mxu1 %v5906_v8  ;;  %4564 = vmatprep.mubr.msk.f32.mxu1 %vm5098_vm1, %v7093_v7 }
 0x4d1   :  { %3867 = vmatprep.subr.mxu0 %v5742_v20  ;;  %4567 = vmatprep.subr.mxu1 %v7093_v7 }
 0x4d2   :  { %3868 = vmatpush3.msra.mxu0 %v5746_v12 }
 0x4d3   :  { %3889 = vmatprep.subr.mxu0 %v5767_v49 }
 0x4f1   :  { %v680_v38 = vpop.xlane.xlu0 %679 }
 0x4f2   :  { %4948 = vlog2.f32 %v680_v38 }
 0x4ff   :  { %v4949_v39 = vpop.eup %4948 }
 0x500   :  { %v682_v40 = vmul.f32 0.6931472, %v4949_v39 }
 0x502   :  { %v683_v41 = vadd.f32 %v682_v40, %v5911_v42 }
 0x504   :  { %v684_v13 = vsub.f32 %v5754_v18, %v683_v41  ;;  %v6197_v41 = vld [vmem:[#allocation3 + $0x10] sm:$0xff] }
 0x506   :  { %686 = vst [vmem:[#allocation7 + $0x10] sm:$0xff] %v684_v13  ;;  %v6200_v13 = vld [vmem:[#allocation3 + $0x88] sm:$0xff] }
 0x529   :  { %v5990_v16 = vpop.xlane.xlu1 %886 }
 0x52a   :  { %v888_v43 = vsub.f32 %v5916_v6, %v5990_v16 }
 0x52c   :  { %v889_v3 = vmul.f32 1.442695, %v888_v43  ;;  %v6204_v43 = vld [vmem:[#allocation3 + $0x8] sm:$0xff] }
 0x52e   :  { %4950 = vpow2.f32 %v889_v3  ;;  %v6207_v3 = vld [vmem:[#allocation3 + $0x80] sm:$0xff] }
 0x53b   :  { %v4951_v20 = vpop.eup %4950 }
 0x53c   :  { %891 = vadd.xlane.f32.xlu0 %v4951_v20 }
 0x571   :  { %v1094_v12 = vpop.f32.mrf.mxu1 }
 0x572   :  { %v5995_v49 = vadd.f32 %v5512_v63, %v1094_v12  ;;  %v3817_v38 = vpop.f32.mrf.mxu0  ;;  %v7094_v63 = vld [vmem:[#allocation24_spill] sm:$0xff]  ;;  %v6152_v12 = vld [vmem:[#allocation3 + $0xc8] sm:$0xff] }
 0x573   :  { %v4531_v39 = vpop.f32.mrf.mxu1  ;;  %7099 = vst [vmem:[#allocation24_spill] sm:$0xff] %v6207_v3 }
 0x574   :  { %v3818_v8 = vpop.f32.mrf.mxu0  ;;  %1098 = vmax.xlane.f32.xlu1 %v5995_v49  ;;  %v6211_v39 = vld [vmem:[#allocation3] sm:$0xff] }
 0x575   :  { %v3819_v42 = vadd.f32 %v3818_v8, %v3817_v38  ;;  %v7096_v8 = vld [vmem:[#allocation22_spill] sm:$0xff]  ;;  %7100 = vst [vmem:[#allocation21_spill] sm:$0xff] %v6211_v39 }
 0x577   :  { %4952 = vtanh.f32 %v3819_v42 }
 0x584   :  { %v4953_v18 = vpop.eup %4952 }
 0x585   :  { %1223 = vst [vmem:[#allocation6 + $0x28] sm:$0xff] %v4953_v18  ;;  %4565 = vmatmul.mubr.f32.vlgmr.msra.gmra.mxu1 %v4953_v18  ;;  %1427 = vmatprep.mubr.f32.mxu0 %v4953_v18 }
 0x586   :  { %3497 = vmatmul.mubr.msk.f32.vlgmr.msra.gmra.mxu0 %vm1328_vm7, %v7092_v44  ;;  %4568 = vmatpush3.msra.mxu1 %v5765_v46 }
 0x587   :  { %4569 = vmatprep.subr.mxu1 %v7093_v7  ;;  %3890 = vmatpush3.msra.mxu0 %v5620_v26  ;;  %v7097_v26 = vld [vmem:[#allocation23_spill] sm:$0xff] }
 0x588   :  { %4570 = vmatpush3.msra.mxu1 %v5772_v0  ;;  %3891 = vmatprep.subr.mxu0 %v5622_v27 }
 0x589   :  { %4571 = vmatprep.subr.mxu1 %v7093_v7  ;;  %3892 = vmatpush3.msra.mxu0 %v5624_v28 }
 0x58a   :  { %4572 = vmatpush3.msra.mxu1 %v5781_v4  ;;  %3893 = vmatprep.subr.mxu0 %v5628_v29 }
 0x58b   :  { %4573 = vmatprep.subr.mxu1 %v7093_v7  ;;  %3894 = vmatpush3.msra.mxu0 %v5632_v31 }
 0x58c   :  { %4574 = vmatpush3.msra.mxu1 %v5790_v14  ;;  %3895 = vmatprep.subr.mxu0 %v5636_v32 }
 0x58d   :  { %4575 = vmatprep.subr.mxu1 %v7093_v7  ;;  %3896 = vmatpush3.msra.mxu0 %v5640_v33 }
 0x58e   :  { %4576 = vmatpush3.msra.mxu1 %v5799_v25  ;;  %3897 = vmatprep.subr.mxu0 %v5644_v34 }
 0x58f   :  { %4577 = vmatprep.subr.mxu1 %v7093_v7  ;;  %3898 = vmatpush3.msra.mxu0 %v5648_v35 }
 0x590   :  { %4578 = vmatpush3.msra.mxu1 %v5808_v11  ;;  %3899 = vmatprep.subr.mxu0 %v5652_v37 }
 0x591   :  { %4579 = vmatprep.subr.mxu1 %v7093_v7  ;;  %3900 = vmatpush3.msra.mxu0 %v5684_v45 }
 0x592   :  { %4580 = vmatpush3.msra.mxu1 %v5842_v15  ;;  %3901 = vmatprep.subr.mxu0 %v5687_v47  ;;  %v6076_v47 = vld [vmem:[%s7060_s4] ss:$0 sm:$0xff] }
 0x593   :  { %4581 = vmatprep.subr.mxu1 %v7093_v7  ;;  %3902 = vmatpush3.msra.mxu0 %v5690_v48 }
 0x594   :  { %4582 = vmatpush3.msra.mxu1 %v5849_v17  ;;  %3903 = vmatprep.subr.mxu0 %v5693_v53 }
 0x595   :  { %4583 = vmatprep.subr.mxu1 %v7093_v7  ;;  %3904 = vmatpush3.msra.mxu0 %v5696_v54 }
 0x596   :  { %4584 = vmatpush3.msra.mxu1 %v5856_v1  ;;  %3905 = vmatprep.subr.mxu0 %v5699_v55 }
 0x597   :  { %4585 = vmatprep.subr.mxu1 %v7093_v7  ;;  %3906 = vmatpush3.msra.mxu0 %v5702_v56 }
 0x598   :  { %4586 = vmatpush3.msra.mxu1 %v5863_v21  ;;  %3907 = vmatprep.subr.mxu0 %v5705_v57  ;;  %v7098_v57 = vld [vmem:[#allocation16_spill] sm:$0xff] }
 0x599   :  { %4587 = vmatprep.subr.mxu1 %v7093_v7  ;;  %3908 = vmatpush3.msra.mxu0 %v5708_v58  ;;  %vm1540_vm8 = vcmp.eq.s32.totalorder %v5309_v50, %v7098_v57  ;;  %v6097_v58 = vld [vmem:[#allocation3 + $0x78] sm:$0xff] }
 0x59a   :  { %4588 = vmatpush3.msra.mxu1 %v5870_v22  ;;  %3909 = vmatprep.subr.mxu0 %v5711_v59  ;;  %v6099_v59 = vld [vmem:[#allocation3 + $0xf0] sm:$0xff]  ;;  %v6321_v57 = vld [vmem:[%s7059_s3 + $0x38] sm:$0xff] }
 0x59b   :  { %4589 = vmatprep.subr.mxu1 %v7093_v7  ;;  %3910 = vmatpush3.msra.mxu0 %v5714_v60  ;;  %v6101_v60 = vld [vmem:[#allocation3 + $0x70] sm:$0xff] }
 0x59c   :  { %4590 = vmatpush3.msra.mxu1 %v5877_v23  ;;  %3911 = vmatprep.subr.mxu0 %v5717_v61  ;;  %v6105_v61 = vld [vmem:[#allocation3 + $0xe8] sm:$0xff] }
 0x59d   :  { %4591 = vmatprep.subr.mxu1 %v7093_v7  ;;  %3912 = vmatpush3.msra.mxu0 %v5720_v62  ;;  %v6109_v62 = vld [vmem:[#allocation3 + $0x68] sm:$0xff] }
 0x59e   :  { %4592 = vmatpush3.msra.mxu1 %v5884_v24  ;;  %3913 = vmatprep.subr.mxu0 %v5723_v30  ;;  %v6113_v30 = vld [vmem:[#allocation3 + $0xe0] sm:$0xff] }
 0x59f   :  { %4593 = vmatprep.subr.mxu1 %v7093_v7  ;;  %3914 = vmatpush3.msra.mxu0 %v5726_v36  ;;  %v6117_v36 = vld [vmem:[#allocation3 + $0x60] sm:$0xff] }
 0x5a0   :  { %4594 = vmatpush3.msra.mxu1 %v5891_v52  ;;  %3915 = vmatprep.subr.mxu0 %v5729_v51  ;;  %v6121_v51 = vld [vmem:[#allocation3 + $0xd8] sm:$0xff] }
 0x5a1   :  { %4595 = vmatprep.subr.mxu1 %v7093_v7  ;;  %3916 = vmatpush3.msra.mxu0 %v5732_v2  ;;  %v6125_v2 = vld [vmem:[#allocation3 + $0x58] sm:$0xff] }
 0x5a2   :  { %4596 = vmatpush3.msra.mxu1 %v5898_v10  ;;  %3917 = vmatprep.subr.mxu0 %v5735_v9  ;;  %v6129_v9 = vld [vmem:[#allocation3 + $0xd0] sm:$0xff] }
 0x5a3   :  { %4597 = vmatprep.subr.mxu1 %v7093_v7  ;;  %3918 = vmatpush3.msra.mxu0 %v5739_v19  ;;  %v6149_v19 = vld [vmem:[#allocation3 + $0x50] sm:$0xff] }
 0x5a4   :  { %4598 = vmatpush3.msra.mxu1 %v7094_v63  ;;  %4599 = vmatprep.mubr.msk.f32.mxu1 %vm5098_vm1, %v7093_v7 }
 0x5a5   :  { %3919 = vmatprep.subr.mxu0 %v7095_v5  ;;  %4602 = vmatprep.subr.mxu1 %v7093_v7 }
 0x5a6   :  { %3920 = vmatpush3.msra.mxu0 %v7096_v8 }
 0x5a7   :  { %3941 = vmatprep.subr.mxu0 %v7097_v26 }
 0x5c5   :  { %v892_v27 = vpop.xlane.xlu0 %891 }
 0x5c6   :  { %4954 = vlog2.f32 %v892_v27 }
 0x5d3   :  { %v4955_v28 = vpop.eup %4954 }
 0x5d4   :  { %v894_v29 = vmul.f32 0.6931472, %v4955_v28 }
 0x5d6   :  { %v895_v31 = vadd.f32 %v894_v29, %v5990_v16 }
 0x5d8   :  { %v896_v32 = vsub.f32 %v5916_v6, %v895_v31 }
 0x5da   :  { %898 = vst [vmem:[#allocation7 + $0x18] sm:$0xff] %v896_v32  ;;  %v7101_v32 = vld [vmem:[#allocation12_spill] sm:$0xff] }
 0x5db   :  { %vm1752_vm9 = vcmp.eq.s32.totalorder %v5309_v50, %v7101_v32 }
 0x5fd   :  { %v6069_v33 = vpop.xlane.xlu1 %1098 }
 0x5fe   :  { %v1100_v34 = vsub.f32 %v5995_v49, %v6069_v33 }
 0x600   :  { %v1101_v35 = vmul.f32 1.442695, %v1100_v34  ;;  %v6232_v34 = vld [vmem:[#allocation3 + $0xf8] sm:$0xff] }
 0x601   :  { %7102 = vst [vmem:[#allocation22_spill] sm:$0xff] %v6232_v34 }
 0x602   :  { %4956 = vpow2.f32 %v1101_v35  ;;  %v6237_v35 = vld [vmem:[%s7059_s3 + $0x70] sm:$0xff] }
 0x60f   :  { %v4957_v37 = vpop.eup %4956 }
 0x610   :  { %1103 = vadd.xlane.f32.xlu0 %v4957_v37  ;;  %v6246_v37 = vld [vmem:[%s7059_s3 + $0x68] sm:$0xff] }
 0x645   :  { %v1306_v45 = vpop.f32.mrf.mxu1 }
 0x646   :  { %v6079_v48 = vadd.f32 %v6076_v47, %v1306_v45  ;;  %v3869_v6 = vpop.f32.mrf.mxu0  ;;  %v6255_v45 = vld [vmem:[%s7059_s3 + $0x60] sm:$0xff] }
 0x647   :  { %v4566_v53 = vpop.f32.mrf.mxu1 }
 0x648   :  { %v3870_v54 = vpop.f32.mrf.mxu0  ;;  %1310 = vmax.xlane.f32.xlu1 %v6079_v48  ;;  %v6273_v53 = vld [vmem:[%s7059_s3 + $0x50] sm:$0xff] }
 0x649   :  { %v3871_v55 = vadd.f32 %v3870_v54, %v3869_v6  ;;  %v6264_v6 = vld [vmem:[%s7059_s3 + $0x58] sm:$0xff] }
 0x64b   :  { %4958 = vtanh.f32 %v3871_v55  ;;  %v6307_v55 = vld [vmem:[%s7059_s3 + $0x48] sm:$0xff] }
 0x658   :  { %v4959_v56 = vpop.eup %4958 }
 0x659   :  { %1435 = vst [vmem:[#allocation6 + $0x30] sm:$0xff] %v4959_v56  ;;  %4600 = vmatmul.mubr.f32.vlgmr.msra.gmra.mxu1 %v4959_v56  ;;  %1639 = vmatprep.mubr.f32.mxu0 %v4959_v56  ;;  %v6314_v56 = vld [vmem:[%s7059_s3 + $0x40] sm:$0xff] }
 0x65a   :  { %3500 = vmatmul.mubr.msk.f32.vlgmr.msra.gmra.mxu0 %vm1540_vm8, %v7092_v44  ;;  %4603 = vmatpush3.msra.mxu1 %v5765_v46  ;;  %v6161_v46 = vld [vmem:[#allocation3 + $0x40] sm:$0xff] }
 0x65b   :  { %4604 = vmatprep.subr.mxu1 %v7093_v7  ;;  %4634 = vmatprep.mubr.msk.f32.mxu1 %vm5098_vm1, %v7093_v7 }
 0x65c   :  { %4605 = vmatpush3.msra.mxu1 %v5772_v0  ;;  %3942 = vmatpush3.msra.mxu0 %v6097_v58  ;;  %v6164_v0 = vld [vmem:[#allocation3 + $0xb8] sm:$0xff] }
 0x65d   :  { %4606 = vmatprep.subr.mxu1 %v7093_v7  ;;  %3943 = vmatprep.subr.mxu0 %v6099_v59 }
 0x65e   :  { %4607 = vmatpush3.msra.mxu1 %v5781_v4  ;;  %3944 = vmatpush3.msra.mxu0 %v6101_v60  ;;  %v6167_v4 = vld [vmem:[#allocation3 + $0x38] sm:$0xff] }
 0x65f   :  { %4608 = vmatprep.subr.mxu1 %v7093_v7  ;;  %3945 = vmatprep.subr.mxu0 %v6105_v61 }
 0x660   :  { %4609 = vmatpush3.msra.mxu1 %v5790_v14  ;;  %3946 = vmatpush3.msra.mxu0 %v6109_v62  ;;  %v6170_v14 = vld [vmem:[#allocation3 + $0xb0] sm:$0xff] }
 0x661   :  { %4610 = vmatprep.subr.mxu1 %v7093_v7  ;;  %3947 = vmatprep.subr.mxu0 %v6113_v30 }
 0x662   :  { %4611 = vmatpush3.msra.mxu1 %v5799_v25  ;;  %3948 = vmatpush3.msra.mxu0 %v6117_v36  ;;  %v6173_v25 = vld [vmem:[#allocation3 + $0x30] sm:$0xff] }
 0x663   :  { %4612 = vmatprep.subr.mxu1 %v7093_v7  ;;  %3949 = vmatprep.subr.mxu0 %v6121_v51 }
 0x664   :  { %4613 = vmatpush3.msra.mxu1 %v5808_v11  ;;  %3950 = vmatpush3.msra.mxu0 %v6125_v2  ;;  %v6176_v11 = vld [vmem:[#allocation3 + $0xa8] sm:$0xff] }
 0x665   :  { %4614 = vmatprep.subr.mxu1 %v7093_v7  ;;  %3951 = vmatprep.subr.mxu0 %v6129_v9 }
 0x666   :  { %4615 = vmatpush3.msra.mxu1 %v5842_v15  ;;  %3952 = vmatpush3.msra.mxu0 %v6149_v19  ;;  %v6179_v15 = vld [vmem:[#allocation3 + $0x28] sm:$0xff] }
 0x667   :  { %4616 = vmatprep.subr.mxu1 %v7093_v7  ;;  %3953 = vmatprep.subr.mxu0 %v6152_v12 }
 0x668   :  { %4617 = vmatpush3.msra.mxu1 %v5849_v17  ;;  %v6182_v17 = vld [vmem:[#allocation3 + $0xa0] sm:$0xff] }
 0x669   :  { %4618 = vmatprep.subr.mxu1 %v7093_v7 }
 0x66a   :  { %4619 = vmatpush3.msra.mxu1 %v5856_v1  ;;  %v6185_v1 = vld [vmem:[#allocation3 + $0x20] sm:$0xff] }
 0x66b   :  { %4620 = vmatprep.subr.mxu1 %v7093_v7 }
 0x66c   :  { %4621 = vmatpush3.msra.mxu1 %v5863_v21  ;;  %v6188_v21 = vld [vmem:[#allocation3 + $0x98] sm:$0xff] }
 0x66d   :  { %4622 = vmatprep.subr.mxu1 %v7093_v7 }
 0x66e   :  { %4623 = vmatpush3.msra.mxu1 %v5870_v22  ;;  %v6191_v22 = vld [vmem:[#allocation3 + $0x18] sm:$0xff] }
 0x66f   :  { %4624 = vmatprep.subr.mxu1 %v7093_v7 }
 0x670   :  { %4625 = vmatpush3.msra.mxu1 %v5877_v23 }
 0x671   :  { %4626 = vmatprep.subr.mxu1 %v7093_v7 }
 0x672   :  { %4627 = vmatpush3.msra.mxu1 %v5884_v24  ;;  %v6194_v24 = vld [vmem:[#allocation3 + $0x90] sm:$0xff] }
 0x673   :  { %4628 = vmatprep.subr.mxu1 %v7093_v7 }
 0x674   :  { %4629 = vmatpush3.msra.mxu1 %v5891_v52  ;;  %v6155_v52 = vld [vmem:[#allocation3 + $0x48] sm:$0xff] }
 0x675   :  { %4630 = vmatprep.subr.mxu1 %v7093_v7  ;;  %3954 = vmatpush3.msra.mxu0 %v6155_v52 }
 0x676   :  { %4631 = vmatpush3.msra.mxu1 %v5898_v10  ;;  %v6158_v10 = vld [vmem:[#allocation3 + $0xc0] sm:$0xff] }
 0x677   :  { %4632 = vmatprep.subr.mxu1 %v7093_v7  ;;  %3955 = vmatprep.subr.mxu0 %v6158_v10 }
 0x678   :  { %4633 = vmatpush3.msra.mxu1 %v7094_v63  ;;  %3956 = vmatpush3.msra.mxu0 %v6161_v46 }
 0x679   :  { %4637 = vmatprep.subr.mxu1 %v7093_v7  ;;  %3957 = vmatprep.subr.mxu0 %v6164_v0 }
 0x67a   :  { %3958 = vmatpush3.msra.mxu0 %v6167_v4 }
 0x67b   :  { %3959 = vmatprep.subr.mxu0 %v6170_v14 }
 0x67c   :  { %3960 = vmatpush3.msra.mxu0 %v6173_v25 }
 0x67d   :  { %3961 = vmatprep.subr.mxu0 %v6176_v11 }
 0x67e   :  { %3962 = vmatpush3.msra.mxu0 %v6179_v15 }
 0x67f   :  { %3963 = vmatprep.subr.mxu0 %v6182_v17 }
 0x680   :  { %3964 = vmatpush3.msra.mxu0 %v6185_v1 }
 0x681   :  { %3965 = vmatprep.subr.mxu0 %v6188_v21 }
 0x682   :  { %3966 = vmatpush3.msra.mxu0 %v6191_v22 }
 0x683   :  { %3967 = vmatprep.subr.mxu0 %v6194_v24 }
 0x684   :  { %3968 = vmatpush3.msra.mxu0 %v6197_v41 }
 0x685   :  { %3969 = vmatprep.subr.mxu0 %v6200_v13 }
 0x686   :  { %3970 = vmatpush3.msra.mxu0 %v6204_v43 }
 0x687   :  { %3971 = vmatprep.subr.mxu0 %v6207_v3 }
 0x688   :  { %3972 = vmatpush3.msra.mxu0 %v6211_v39 }
 0x689   :  { %3993 = vmatprep.subr.mxu0 %v6232_v34 }
 0x699   :  { %v1104_v20 = vpop.xlane.xlu0 %1103 }
 0x69a   :  { %4960 = vlog2.f32 %v1104_v20  ;;  %v6328_v20 = vld [vmem:[%s7059_s3 + $0x30] sm:$0xff] }
 0x6a7   :  { %v4961_v23 = vpop.eup %4960 }
 0x6a8   :  { %v1106_v40 = vmul.f32 0.6931472, %v4961_v23  ;;  %v6335_v23 = vld [vmem:[%s7059_s3 + $0x28] sm:$0xff] }
 0x6aa   :  { %v1107_v16 = vadd.f32 %v1106_v40, %v6069_v33  ;;  %v6230_v33 = vld [vmem:[%s7059_s3 + $0x78] sm:$0xff]  ;;  %v6342_v40 = vld [vmem:[%s7059_s3 + $0x20] sm:$0xff] }
 0x6ac   :  { %v1108_v38 = vsub.f32 %v5995_v49, %v1107_v16  ;;  %v6349_v16 = vld [vmem:[%s7059_s3 + $0x18] sm:$0xff] }
 0x6ae   :  { %1110 = vst [vmem:[#allocation7 + $0x20] sm:$0xff] %v1108_v38 }
 0x6d1   :  { %v6214_v42 = vpop.xlane.xlu1 %1310 }
 0x6d2   :  { %v1312_v18 = vsub.f32 %v6079_v48, %v6214_v42 }
 0x6d4   :  { %v1313_v63 = vmul.f32 1.442695, %v1312_v18  ;;  %v6356_v18 = vld [vmem:[%s7059_s3 + $0x10] sm:$0xff] }
 0x6d6   :  { %4962 = vpow2.f32 %v1313_v63 }
 0x6e3   :  { %v4963_v5 = vpop.eup %4962 }
 0x6e4   :  { %1315 = vadd.xlane.f32.xlu0 %v4963_v5  ;;  %v6363_v5 = vld [vmem:[%s7059_s3 + $0x8] sm:$0xff] }
 0x719   :  { %v1518_v8 = vpop.f32.mrf.mxu1 }
 0x71a   :  { %v6219_v26 = vadd.f32 %v6076_v47, %v1518_v8  ;;  %v3921_v49 = vpop.f32.mrf.mxu0 }
 0x71b   :  { %v4601_v27 = vpop.f32.mrf.mxu1 }
 0x71c   :  { %v3922_v28 = vpop.f32.mrf.mxu0  ;;  %1522 = vmax.xlane.f32.xlu1 %v6219_v26 }
 0x71d   :  { %v3923_v29 = vadd.f32 %v3922_v28, %v3921_v49  ;;  %v6371_v49 = vld [vmem:[%s7059_s3] sm:$0xff] }
 0x71f   :  { %4964 = vtanh.f32 %v3923_v29 }
 0x72c   :  { %v4965_v31 = vpop.eup %4964 }
 0x72d   :  { %1647 = vst [vmem:[#allocation6 + $0x38] sm:$0xff] %v4965_v31  ;;  %4635 = vmatmul.mubr.f32.vlgmr.msra.gmra.mxu1 %v4965_v31  ;;  %1851 = vmatprep.mubr.f32.mxu0 %v4965_v31 }
 0x72e   :  { %3503 = vmatmul.mubr.msk.f32.vlgmr.msra.gmra.mxu0 %vm1752_vm9, %v7092_v44  ;;  %4669 = vmatprep.mubr.msk.f32.mxu1 %vm5098_vm1, %v7093_v7 }
 0x72f   :  { %4638 = vmatpush3.msra.mxu1 %v6230_v33  ;;  %3994 = vmatpush3.msra.mxu0 %v6097_v58 }
 0x730   :  { %4639 = vmatprep.subr.mxu1 %v7093_v7  ;;  %3995 = vmatprep.subr.mxu0 %v6099_v59 }
 0x731   :  { %4640 = vmatpush3.msra.mxu1 %v6237_v35  ;;  %3996 = vmatpush3.msra.mxu0 %v6101_v60 }
 0x732   :  { %4641 = vmatprep.subr.mxu1 %v7093_v7  ;;  %3997 = vmatprep.subr.mxu0 %v6105_v61 }
 0x733   :  { %4642 = vmatpush3.msra.mxu1 %v6246_v37  ;;  %3998 = vmatpush3.msra.mxu0 %v6109_v62 }
 0x734   :  { %4643 = vmatprep.subr.mxu1 %v7093_v7  ;;  %3999 = vmatprep.subr.mxu0 %v6113_v30 }
 0x735   :  { %4644 = vmatpush3.msra.mxu1 %v6255_v45  ;;  %4000 = vmatpush3.msra.mxu0 %v6117_v36 }
 0x736   :  { %4645 = vmatprep.subr.mxu1 %v7093_v7  ;;  %4001 = vmatprep.subr.mxu0 %v6121_v51 }
 0x737   :  { %4646 = vmatpush3.msra.mxu1 %v6264_v6  ;;  %4002 = vmatpush3.msra.mxu0 %v6125_v2 }
 0x738   :  { %4647 = vmatprep.subr.mxu1 %v7093_v7  ;;  %4003 = vmatprep.subr.mxu0 %v6129_v9 }
 0x739   :  { %4648 = vmatpush3.msra.mxu1 %v6273_v53  ;;  %4004 = vmatpush3.msra.mxu0 %v6149_v19 }
 0x73a   :  { %4649 = vmatprep.subr.mxu1 %v7093_v7  ;;  %4005 = vmatprep.subr.mxu0 %v6152_v12 }
 0x73b   :  { %4006 = vmatpush3.msra.mxu0 %v6155_v52  ;;  %4650 = vmatpush3.msra.mxu1 %v6307_v55 }
 0x73c   :  { %4007 = vmatprep.subr.mxu0 %v6158_v10  ;;  %4651 = vmatprep.subr.mxu1 %v7093_v7 }
 0x73d   :  { %4008 = vmatpush3.msra.mxu0 %v6161_v46  ;;  %4652 = vmatpush3.msra.mxu1 %v6314_v56 }
 0x73e   :  { %4009 = vmatprep.subr.mxu0 %v6164_v0  ;;  %4653 = vmatprep.subr.mxu1 %v7093_v7 }
 0x73f   :  { %4010 = vmatpush3.msra.mxu0 %v6167_v4  ;;  %4654 = vmatpush3.msra.mxu1 %v6321_v57 }
 0x740   :  { %4011 = vmatprep.subr.mxu0 %v6170_v14  ;;  %4655 = vmatprep.subr.mxu1 %v7093_v7 }
 0x741   :  { %4012 = vmatpush3.msra.mxu0 %v6173_v25  ;;  %4656 = vmatpush3.msra.mxu1 %v6328_v20 }
 0x742   :  { %4013 = vmatprep.subr.mxu0 %v6176_v11  ;;  %4657 = vmatprep.subr.mxu1 %v7093_v7 }
 0x743   :  { %4014 = vmatpush3.msra.mxu0 %v6179_v15  ;;  %4658 = vmatpush3.msra.mxu1 %v6335_v23 }
 0x744   :  { %4015 = vmatprep.subr.mxu0 %v6182_v17  ;;  %4659 = vmatprep.subr.mxu1 %v7093_v7 }
 0x745   :  { %4016 = vmatpush3.msra.mxu0 %v6185_v1  ;;  %4660 = vmatpush3.msra.mxu1 %v6342_v40 }
 0x746   :  { %4017 = vmatprep.subr.mxu0 %v6188_v21  ;;  %4661 = vmatprep.subr.mxu1 %v7093_v7 }
 0x747   :  { %4018 = vmatpush3.msra.mxu0 %v6191_v22  ;;  %4662 = vmatpush3.msra.mxu1 %v6349_v16 }
 0x748   :  { %4019 = vmatprep.subr.mxu0 %v6194_v24  ;;  %4663 = vmatprep.subr.mxu1 %v7093_v7 }
 0x749   :  { %4020 = vmatpush3.msra.mxu0 %v6197_v41  ;;  %4664 = vmatpush3.msra.mxu1 %v6356_v18 }
 0x74a   :  { %4021 = vmatprep.subr.mxu0 %v6200_v13  ;;  %4665 = vmatprep.subr.mxu1 %v7093_v7 }
 0x74b   :  { %4022 = vmatpush3.msra.mxu0 %v6204_v43  ;;  %4666 = vmatpush3.msra.mxu1 %v6363_v5 }
 0x74c   :  { %4023 = vmatprep.subr.mxu0 %v6207_v3  ;;  %4667 = vmatprep.subr.mxu1 %v7093_v7 }
 0x74d   :  { %4024 = vmatpush3.msra.mxu0 %v6211_v39  ;;  %4668 = vmatpush3.msra.mxu1 %v6371_v49 }
 0x74e   :  { %4045 = vmatprep.subr.mxu0 %v6232_v34  ;;  %4672 = vmatprep.subr.mxu1 %v7093_v7  ;;  %v7103_v34 = vld [vmem:[#allocation17_spill] sm:$0xff] }
 0x74f   :  { %vm1964_vm10 = vcmp.eq.s32.totalorder %v5309_v50, %v7103_v34  ;;  %v7104_v34 = vld [vmem:[#allocation22_spill] sm:$0xff] }
 0x76d   :  { %v1316_v54 = vpop.xlane.xlu0 %1315 }
 0x76e   :  { %4966 = vlog2.f32 %v1316_v54 }
 0x77b   :  { %v4967_v38 = vpop.eup %4966 }
 0x77c   :  { %v1318_v63 = vmul.f32 0.6931472, %v4967_v38 }
 0x77e   :  { %v1319_v8 = vadd.f32 %v1318_v63, %v6214_v42 }
 0x780   :  { %v1320_v27 = vsub.f32 %v6079_v48, %v1319_v8 }
 0x782   :  { %1322 = vst [vmem:[#allocation7 + $0x28] sm:$0xff] %v1320_v27 }
 0x7a5   :  { %v6376_v28 = vpop.xlane.xlu1 %1522 }
 0x7a6   :  { %v1524_v42 = vsub.f32 %v6219_v26, %v6376_v28 }
 0x7a8   :  { %v1525_v29 = vmul.f32 1.442695, %v1524_v42 }
 0x7aa   :  { %4968 = vpow2.f32 %v1525_v29 }
 0x7b7   :  { %v4969_v31 = vpop.eup %4968 }
 0x7b8   :  { %1527 = vadd.xlane.f32.xlu0 %v4969_v31 }
 0x7ed   :  { %v1730_v32 = vpop.f32.mrf.mxu1 }
 0x7ee   :  { %v6381_v54 = vadd.f32 %v6076_v47, %v1730_v32  ;;  %v3973_v38 = vpop.f32.mrf.mxu0 }
 0x7ef   :  { %v4636_v48 = vpop.f32.mrf.mxu1 }
 0x7f0   :  { %v3974_v63 = vpop.f32.mrf.mxu0  ;;  %1734 = vmax.xlane.f32.xlu1 %v6381_v54 }
 0x7f1   :  { %v3975_v8 = vadd.f32 %v3974_v63, %v3973_v38 }
 0x7f3   :  { %4970 = vtanh.f32 %v3975_v8 }
 0x800   :  { %v4971_v27 = vpop.eup %4970 }
 0x801   :  { %1859 = vst [vmem:[#allocation6 + $0x40] sm:$0xff] %v4971_v27  ;;  %4670 = vmatmul.mubr.f32.vlgmr.msra.gmra.mxu1 %v4971_v27  ;;  %2063 = vmatprep.mubr.f32.mxu0 %v4971_v27 }
 0x802   :  { %3506 = vmatmul.mubr.msk.f32.vlgmr.msra.gmra.mxu0 %vm1964_vm10, %v7092_v44  ;;  %4673 = vmatpush3.msra.mxu1 %v6230_v33 }
 0x803   :  { %4674 = vmatprep.subr.mxu1 %v7093_v7  ;;  %4046 = vmatpush3.msra.mxu0 %v6097_v58 }
 0x804   :  { %4675 = vmatpush3.msra.mxu1 %v6237_v35  ;;  %4047 = vmatprep.subr.mxu0 %v6099_v59 }
 0x805   :  { %4676 = vmatprep.subr.mxu1 %v7093_v7  ;;  %4048 = vmatpush3.msra.mxu0 %v6101_v60 }
 0x806   :  { %4677 = vmatpush3.msra.mxu1 %v6246_v37  ;;  %4049 = vmatprep.subr.mxu0 %v6105_v61 }
 0x807   :  { %4678 = vmatprep.subr.mxu1 %v7093_v7  ;;  %4050 = vmatpush3.msra.mxu0 %v6109_v62 }
 0x808   :  { %4679 = vmatpush3.msra.mxu1 %v6255_v45  ;;  %4051 = vmatprep.subr.mxu0 %v6113_v30 }
 0x809   :  { %4680 = vmatprep.subr.mxu1 %v7093_v7  ;;  %4052 = vmatpush3.msra.mxu0 %v6117_v36 }
 0x80a   :  { %4681 = vmatpush3.msra.mxu1 %v6264_v6  ;;  %4053 = vmatprep.subr.mxu0 %v6121_v51 }
 0x80b   :  { %4682 = vmatprep.subr.mxu1 %v7093_v7  ;;  %4054 = vmatpush3.msra.mxu0 %v6125_v2 }
 0x80c   :  { %4683 = vmatpush3.msra.mxu1 %v6273_v53  ;;  %4055 = vmatprep.subr.mxu0 %v6129_v9 }
 0x80d   :  { %4684 = vmatprep.subr.mxu1 %v7093_v7  ;;  %4056 = vmatpush3.msra.mxu0 %v6149_v19 }
 0x80e   :  { %4685 = vmatpush3.msra.mxu1 %v6307_v55  ;;  %4057 = vmatprep.subr.mxu0 %v6152_v12 }
 0x80f   :  { %4686 = vmatprep.subr.mxu1 %v7093_v7  ;;  %4058 = vmatpush3.msra.mxu0 %v6155_v52 }
 0x810   :  { %4687 = vmatpush3.msra.mxu1 %v6314_v56  ;;  %4059 = vmatprep.subr.mxu0 %v6158_v10 }
 0x811   :  { %4688 = vmatprep.subr.mxu1 %v7093_v7  ;;  %4060 = vmatpush3.msra.mxu0 %v6161_v46 }
 0x812   :  { %4689 = vmatpush3.msra.mxu1 %v6321_v57  ;;  %4061 = vmatprep.subr.mxu0 %v6164_v0 }
 0x813   :  { %4690 = vmatprep.subr.mxu1 %v7093_v7  ;;  %4062 = vmatpush3.msra.mxu0 %v6167_v4 }
 0x814   :  { %4691 = vmatpush3.msra.mxu1 %v6328_v20  ;;  %4063 = vmatprep.subr.mxu0 %v6170_v14 }
 0x815   :  { %4692 = vmatprep.subr.mxu1 %v7093_v7  ;;  %4064 = vmatpush3.msra.mxu0 %v6173_v25 }
 0x816   :  { %4693 = vmatpush3.msra.mxu1 %v6335_v23  ;;  %4065 = vmatprep.subr.mxu0 %v6176_v11 }
 0x817   :  { %4694 = vmatprep.subr.mxu1 %v7093_v7  ;;  %4066 = vmatpush3.msra.mxu0 %v6179_v15 }
 0x818   :  { %4695 = vmatpush3.msra.mxu1 %v6342_v40  ;;  %4067 = vmatprep.subr.mxu0 %v6182_v17 }
 0x819   :  { %4696 = vmatprep.subr.mxu1 %v7093_v7  ;;  %4068 = vmatpush3.msra.mxu0 %v6185_v1 }
 0x81a   :  { %4697 = vmatpush3.msra.mxu1 %v6349_v16  ;;  %4069 = vmatprep.subr.mxu0 %v6188_v21 }
 0x81b   :  { %4698 = vmatprep.subr.mxu1 %v7093_v7  ;;  %4070 = vmatpush3.msra.mxu0 %v6191_v22 }
 0x81c   :  { %4699 = vmatpush3.msra.mxu1 %v6356_v18  ;;  %4071 = vmatprep.subr.mxu0 %v6194_v24 }
 0x81d   :  { %4700 = vmatprep.subr.mxu1 %v7093_v7  ;;  %4072 = vmatpush3.msra.mxu0 %v6197_v41 }
 0x81e   :  { %4701 = vmatpush3.msra.mxu1 %v6363_v5  ;;  %4073 = vmatprep.subr.mxu0 %v6200_v13 }
 0x81f   :  { %4702 = vmatprep.subr.mxu1 %v7093_v7  ;;  %4074 = vmatpush3.msra.mxu0 %v6204_v43 }
 0x820   :  { %4703 = vmatpush3.msra.mxu1 %v6371_v49  ;;  %4704 = vmatprep.mubr.msk.f32.mxu1 %vm5098_vm1, %v7093_v7 }
 0x821   :  { %4075 = vmatprep.subr.mxu0 %v6207_v3  ;;  %4707 = vmatprep.subr.mxu1 %v7093_v7 }
 0x822   :  { %4076 = vmatpush3.msra.mxu0 %v6211_v39 }
 0x823   :  { %4097 = vmatprep.subr.mxu0 %v7104_v34 }
 0x841   :  { %v1528_v42 = vpop.xlane.xlu0 %1527 }
 0x842   :  { %4972 = vlog2.f32 %v1528_v42 }
 0x84f   :  { %v4973_v29 = vpop.eup %4972 }
 0x850   :  { %v1530_v31 = vmul.f32 0.6931472, %v4973_v29 }
 0x852   :  { %v1531_v32 = vadd.f32 %v1530_v31, %v6376_v28  ;;  %v7105_v31 = vld [vmem:[#allocation13_spill] sm:$0xff] }
 0x853   :  { %vm2176_vm11 = vcmp.eq.s32.totalorder %v5309_v50, %v7105_v31 }
 0x854   :  { %v1532_v38 = vsub.f32 %v6219_v26, %v1531_v32  ;;  %v6657_v32 = vld [vmem:[#allocation3 + $0x10] sm:$0xff] }
 0x856   :  { %1534 = vst [vmem:[#allocation7 + $0x30] sm:$0xff] %v1532_v38  ;;  %v6660_v38 = vld [vmem:[#allocation3 + $0x88] sm:$0xff] }
 0x879   :  { %v6455_v48 = vpop.xlane.xlu1 %1734 }
 0x87a   :  { %v1736_v63 = vsub.f32 %v6381_v54, %v6455_v48 }
 0x87c   :  { %v1737_v8 = vmul.f32 1.442695, %v1736_v63  ;;  %v6664_v63 = vld [vmem:[#allocation3 + $0x8] sm:$0xff] }
 0x87e   :  { %4974 = vpow2.f32 %v1737_v8  ;;  %v6667_v8 = vld [vmem:[#allocation3 + $0x80] sm:$0xff] }
 0x87f   :  { %7110 = vst [vmem:[#allocation23_spill] sm:$0xff] %v6667_v8 }
 0x88b   :  { %v4975_v27 = vpop.eup %4974 }
 0x88c   :  { %1739 = vadd.xlane.f32.xlu0 %v4975_v27 }
 0x8c1   :  { %v1942_v39 = vpop.f32.mrf.mxu1 }
 0x8c2   :  { %v6460_v34 = vadd.f32 %v6076_v47, %v1942_v39  ;;  %v4025_v42 = vpop.f32.mrf.mxu0 }
 0x8c3   :  { %v4671_v29 = vpop.f32.mrf.mxu1 }
 0x8c4   :  { %v4026_v3 = vpop.f32.mrf.mxu0  ;;  %1946 = vmax.xlane.f32.xlu1 %v6460_v34 }
 0x8c5   :  { %v4027_v26 = vadd.f32 %v4026_v3, %v4025_v42  ;;  %v6609_v3 = vld [vmem:[#allocation3 + $0x50] sm:$0xff]  ;;  %v6671_v42 = vld [vmem:[#allocation3] sm:$0xff] }
 0x8c6   :  { %7111 = vst [vmem:[#allocation16_spill] sm:$0xff] %v6671_v42 }
 0x8c7   :  { %4976 = vtanh.f32 %v4027_v26 }
 0x8d4   :  { %v4977_v28 = vpop.eup %4976 }
 0x8d5   :  { %2071 = vst [vmem:[#allocation6 + $0x48] sm:$0xff] %v4977_v28  ;;  %4705 = vmatmul.mubr.f32.vlgmr.msra.gmra.mxu1 %v4977_v28  ;;  %2275 = vmatprep.mubr.f32.mxu0 %v4977_v28 }
 0x8d6   :  { %3509 = vmatmul.mubr.msk.f32.vlgmr.msra.gmra.mxu0 %vm2176_vm11, %v7092_v44  ;;  %4708 = vmatpush3.msra.mxu1 %v6230_v33 }
 0x8d7   :  { %4709 = vmatprep.subr.mxu1 %v7093_v7  ;;  %4098 = vmatpush3.msra.mxu0 %v6097_v58  ;;  %v7106_v58 = vld [vmem:[#allocation24_spill] sm:$0xff] }
 0x8d8   :  { %4710 = vmatpush3.msra.mxu1 %v6237_v35  ;;  %4099 = vmatprep.subr.mxu0 %v6099_v59  ;;  %v7107_v59 = vld [vmem:[#allocation21_spill] sm:$0xff] }
 0x8d9   :  { %4711 = vmatprep.subr.mxu1 %v7093_v7  ;;  %4100 = vmatpush3.msra.mxu0 %v6101_v60  ;;  %v7108_v60 = vld [vmem:[#allocation22_spill] sm:$0xff] }
 0x8da   :  { %4712 = vmatpush3.msra.mxu1 %v6246_v37  ;;  %4101 = vmatprep.subr.mxu0 %v6105_v61 }
 0x8db   :  { %4713 = vmatprep.subr.mxu1 %v7093_v7  ;;  %4102 = vmatpush3.msra.mxu0 %v6109_v62 }
 0x8dc   :  { %4714 = vmatpush3.msra.mxu1 %v6255_v45  ;;  %4103 = vmatprep.subr.mxu0 %v6113_v30 }
 0x8dd   :  { %4715 = vmatprep.subr.mxu1 %v7093_v7  ;;  %4104 = vmatpush3.msra.mxu0 %v6117_v36 }
 0x8de   :  { %4716 = vmatpush3.msra.mxu1 %v6264_v6  ;;  %4105 = vmatprep.subr.mxu0 %v6121_v51 }
 0x8df   :  { %4717 = vmatprep.subr.mxu1 %v7093_v7  ;;  %4106 = vmatpush3.msra.mxu0 %v6125_v2 }
 0x8e0   :  { %4718 = vmatpush3.msra.mxu1 %v6273_v53  ;;  %4107 = vmatprep.subr.mxu0 %v6129_v9 }
 0x8e1   :  { %4719 = vmatprep.subr.mxu1 %v7093_v7  ;;  %4108 = vmatpush3.msra.mxu0 %v6149_v19 }
 0x8e2   :  { %4720 = vmatpush3.msra.mxu1 %v6307_v55  ;;  %4109 = vmatprep.subr.mxu0 %v6152_v12 }
 0x8e3   :  { %4721 = vmatprep.subr.mxu1 %v7093_v7  ;;  %4110 = vmatpush3.msra.mxu0 %v6155_v52 }
 0x8e4   :  { %4722 = vmatpush3.msra.mxu1 %v6314_v56  ;;  %4111 = vmatprep.subr.mxu0 %v6158_v10 }
 0x8e5   :  { %4723 = vmatprep.subr.mxu1 %v7093_v7  ;;  %4112 = vmatpush3.msra.mxu0 %v6161_v46 }
 0x8e6   :  { %4724 = vmatpush3.msra.mxu1 %v6321_v57  ;;  %4113 = vmatprep.subr.mxu0 %v6164_v0 }
 0x8e7   :  { %4725 = vmatprep.subr.mxu1 %v7093_v7  ;;  %4114 = vmatpush3.msra.mxu0 %v6167_v4 }
 0x8e8   :  { %4726 = vmatpush3.msra.mxu1 %v6328_v20  ;;  %4115 = vmatprep.subr.mxu0 %v6170_v14 }
 0x8e9   :  { %4727 = vmatprep.subr.mxu1 %v7093_v7  ;;  %4116 = vmatpush3.msra.mxu0 %v6173_v25 }
 0x8ea   :  { %4728 = vmatpush3.msra.mxu1 %v6335_v23  ;;  %4117 = vmatprep.subr.mxu0 %v6176_v11  ;;  %v7109_v11 = vld [vmem:[#allocation18_spill] sm:$0xff] }
 0x8eb   :  { %4729 = vmatprep.subr.mxu1 %v7093_v7  ;;  %4118 = vmatpush3.msra.mxu0 %v6179_v15  ;;  %vm2388_vm12 = vcmp.eq.s32.totalorder %v5309_v50, %v7109_v11  ;;  %v6559_v15 = vld [vmem:[#allocation3 + $0xf0] sm:$0xff]  ;;  %v6786_v11 = vld [vmem:[%s7059_s3 + $0x38] sm:$0xff] }
 0x8ec   :  { %4730 = vmatpush3.msra.mxu1 %v6342_v40  ;;  %4119 = vmatprep.subr.mxu0 %v6182_v17  ;;  %v6561_v17 = vld [vmem:[#allocation3 + $0x70] sm:$0xff] }
 0x8ed   :  { %4731 = vmatprep.subr.mxu1 %v7093_v7  ;;  %4120 = vmatpush3.msra.mxu0 %v6185_v1  ;;  %v6565_v1 = vld [vmem:[#allocation3 + $0xe8] sm:$0xff] }
 0x8ee   :  { %4732 = vmatpush3.msra.mxu1 %v6349_v16  ;;  %4121 = vmatprep.subr.mxu0 %v6188_v21  ;;  %v6569_v21 = vld [vmem:[#allocation3 + $0x68] sm:$0xff] }
 0x8ef   :  { %4733 = vmatprep.subr.mxu1 %v7093_v7  ;;  %4122 = vmatpush3.msra.mxu0 %v6191_v22  ;;  %v6573_v22 = vld [vmem:[#allocation3 + $0xe0] sm:$0xff] }
 0x8f0   :  { %4734 = vmatpush3.msra.mxu1 %v6356_v18  ;;  %4123 = vmatprep.subr.mxu0 %v6194_v24  ;;  %v6577_v24 = vld [vmem:[#allocation3 + $0x60] sm:$0xff] }
 0x8f1   :  { %4735 = vmatprep.subr.mxu1 %v7093_v7  ;;  %4124 = vmatpush3.msra.mxu0 %v6197_v41  ;;  %v6581_v41 = vld [vmem:[#allocation3 + $0xd8] sm:$0xff] }
 0x8f2   :  { %4736 = vmatpush3.msra.mxu1 %v6363_v5  ;;  %4125 = vmatprep.subr.mxu0 %v6200_v13  ;;  %v6585_v13 = vld [vmem:[#allocation3 + $0x58] sm:$0xff] }
 0x8f3   :  { %4737 = vmatprep.subr.mxu1 %v7093_v7  ;;  %4126 = vmatpush3.msra.mxu0 %v6204_v43  ;;  %v6589_v43 = vld [vmem:[#allocation3 + $0xd0] sm:$0xff] }
 0x8f4   :  { %4738 = vmatpush3.msra.mxu1 %v6371_v49  ;;  %4739 = vmatprep.mubr.msk.f32.mxu1 %vm5098_vm1, %v7093_v7 }
 0x8f5   :  { %4127 = vmatprep.subr.mxu0 %v7106_v58  ;;  %4742 = vmatprep.subr.mxu1 %v7093_v7 }
 0x8f6   :  { %4128 = vmatpush3.msra.mxu0 %v7107_v59 }
 0x8f7   :  { %4149 = vmatprep.subr.mxu0 %v7108_v60 }
 0x915   :  { %v1740_v61 = vpop.xlane.xlu0 %1739 }
 0x916   :  { %4978 = vlog2.f32 %v1740_v61 }
 0x923   :  { %v4979_v62 = vpop.eup %4978 }
 0x924   :  { %v1742_v30 = vmul.f32 0.6931472, %v4979_v62 }
 0x926   :  { %v1743_v36 = vadd.f32 %v1742_v30, %v6455_v48 }
 0x928   :  { %v1744_v51 = vsub.f32 %v6381_v54, %v1743_v36 }
 0x92a   :  { %1746 = vst [vmem:[#allocation7 + $0x38] sm:$0xff] %v1744_v51  ;;  %v7112_v51 = vld [vmem:[#allocation14_spill] sm:$0xff] }
 0x92b   :  { %vm2600_vm13 = vcmp.eq.s32.totalorder %v5309_v50, %v7112_v51 }
 0x94d   :  { %v6534_v2 = vpop.xlane.xlu1 %1946 }
 0x94e   :  { %v1948_v9 = vsub.f32 %v6460_v34, %v6534_v2 }
 0x950   :  { %v1949_v19 = vmul.f32 1.442695, %v1948_v9  ;;  %v6697_v9 = vld [vmem:[#allocation3 + $0xf8] sm:$0xff] }
 0x951   :  { %7113 = vst [vmem:[#allocation12_spill] sm:$0xff] %v6697_v9 }
 0x952   :  { %4980 = vpow2.f32 %v1949_v19  ;;  %v6702_v19 = vld [vmem:[%s7059_s3 + $0x70] sm:$0xff] }
 0x95f   :  { %v4981_v12 = vpop.eup %4980 }
 0x960   :  { %1951 = vadd.xlane.f32.xlu0 %v4981_v12  ;;  %v6711_v12 = vld [vmem:[%s7059_s3 + $0x68] sm:$0xff] }
 0x995   :  { %v2154_v52 = vpop.f32.mrf.mxu1 }
 0x996   :  { %v6539_v10 = vadd.f32 %v6076_v47, %v2154_v52  ;;  %v4077_v46 = vpop.f32.mrf.mxu0  ;;  %v6557_v47 = vld [vmem:[#allocation3 + $0x78] sm:$0xff]  ;;  %v6720_v52 = vld [vmem:[%s7059_s3 + $0x60] sm:$0xff] }
 0x997   :  { %v4706_v0 = vpop.f32.mrf.mxu1 }
 0x998   :  { %v4078_v4 = vpop.f32.mrf.mxu0  ;;  %2158 = vmax.xlane.f32.xlu1 %v6539_v10  ;;  %v6738_v0 = vld [vmem:[%s7059_s3 + $0x50] sm:$0xff] }
 0x999   :  { %v4079_v14 = vadd.f32 %v4078_v4, %v4077_v46  ;;  %v6729_v46 = vld [vmem:[%s7059_s3 + $0x58] sm:$0xff] }
 0x99b   :  { %4982 = vtanh.f32 %v4079_v14  ;;  %v6772_v14 = vld [vmem:[%s7059_s3 + $0x48] sm:$0xff] }
 0x9a8   :  { %v4983_v25 = vpop.eup %4982 }
 0x9a9   :  { %2283 = vst [vmem:[#allocation6 + $0x50] sm:$0xff] %v4983_v25  ;;  %4740 = vmatmul.mubr.f32.vlgmr.msra.gmra.mxu1 %v4983_v25  ;;  %2487 = vmatprep.mubr.f32.mxu0 %v4983_v25  ;;  %v6779_v25 = vld [vmem:[%s7059_s3 + $0x40] sm:$0xff] }
 0x9aa   :  { %3512 = vmatmul.mubr.msk.f32.vlgmr.msra.gmra.mxu0 %vm2388_vm12, %v7092_v44  ;;  %4743 = vmatpush3.msra.mxu1 %v6230_v33  ;;  %v6612_v33 = vld [vmem:[#allocation3 + $0xc8] sm:$0xff] }
 0x9ab   :  { %4744 = vmatprep.subr.mxu1 %v7093_v7  ;;  %4774 = vmatprep.mubr.msk.f32.mxu1 %vm5098_vm1, %v7093_v7 }
 0x9ac   :  { %4745 = vmatpush3.msra.mxu1 %v6237_v35  ;;  %4150 = vmatpush3.msra.mxu0 %v6557_v47  ;;  %v6615_v35 = vld [vmem:[#allocation3 + $0x48] sm:$0xff] }
 0x9ad   :  { %4746 = vmatprep.subr.mxu1 %v7093_v7  ;;  %4151 = vmatprep.subr.mxu0 %v6559_v15 }
 0x9ae   :  { %4747 = vmatpush3.msra.mxu1 %v6246_v37  ;;  %4152 = vmatpush3.msra.mxu0 %v6561_v17  ;;  %v6618_v37 = vld [vmem:[#allocation3 + $0xc0] sm:$0xff] }
 0x9af   :  { %4748 = vmatprep.subr.mxu1 %v7093_v7  ;;  %4153 = vmatprep.subr.mxu0 %v6565_v1 }
 0x9b0   :  { %4749 = vmatpush3.msra.mxu1 %v6255_v45  ;;  %4154 = vmatpush3.msra.mxu0 %v6569_v21  ;;  %v6621_v45 = vld [vmem:[#allocation3 + $0x40] sm:$0xff] }
 0x9b1   :  { %4750 = vmatprep.subr.mxu1 %v7093_v7  ;;  %4155 = vmatprep.subr.mxu0 %v6573_v22 }
 0x9b2   :  { %4751 = vmatpush3.msra.mxu1 %v6264_v6  ;;  %4156 = vmatpush3.msra.mxu0 %v6577_v24  ;;  %v6624_v6 = vld [vmem:[#allocation3 + $0xb8] sm:$0xff] }
 0x9b3   :  { %4752 = vmatprep.subr.mxu1 %v7093_v7  ;;  %4157 = vmatprep.subr.mxu0 %v6581_v41 }
 0x9b4   :  { %4753 = vmatpush3.msra.mxu1 %v6273_v53  ;;  %4158 = vmatpush3.msra.mxu0 %v6585_v13  ;;  %v6627_v53 = vld [vmem:[#allocation3 + $0x38] sm:$0xff] }
 0x9b5   :  { %4754 = vmatprep.subr.mxu1 %v7093_v7  ;;  %4159 = vmatprep.subr.mxu0 %v6589_v43 }
 0x9b6   :  { %4755 = vmatpush3.msra.mxu1 %v6307_v55  ;;  %4160 = vmatpush3.msra.mxu0 %v6609_v3  ;;  %v6630_v55 = vld [vmem:[#allocation3 + $0xb0] sm:$0xff] }
 0x9b7   :  { %4756 = vmatprep.subr.mxu1 %v7093_v7  ;;  %4161 = vmatprep.subr.mxu0 %v6612_v33 }
 0x9b8   :  { %4757 = vmatpush3.msra.mxu1 %v6314_v56  ;;  %4162 = vmatpush3.msra.mxu0 %v6615_v35  ;;  %v6633_v56 = vld [vmem:[#allocation3 + $0x30] sm:$0xff] }
 0x9b9   :  { %4758 = vmatprep.subr.mxu1 %v7093_v7  ;;  %4163 = vmatprep.subr.mxu0 %v6618_v37 }
 0x9ba   :  { %4759 = vmatpush3.msra.mxu1 %v6321_v57  ;;  %4164 = vmatpush3.msra.mxu0 %v6621_v45  ;;  %v6636_v57 = vld [vmem:[#allocation3 + $0xa8] sm:$0xff] }
 0x9bb   :  { %4760 = vmatprep.subr.mxu1 %v7093_v7  ;;  %4165 = vmatprep.subr.mxu0 %v6624_v6 }
 0x9bc   :  { %4761 = vmatpush3.msra.mxu1 %v6328_v20  ;;  %4166 = vmatpush3.msra.mxu0 %v6627_v53  ;;  %v6639_v20 = vld [vmem:[#allocation3 + $0x28] sm:$0xff] }
 0x9bd   :  { %4762 = vmatprep.subr.mxu1 %v7093_v7  ;;  %4167 = vmatprep.subr.mxu0 %v6630_v55 }
 0x9be   :  { %4763 = vmatpush3.msra.mxu1 %v6335_v23  ;;  %4168 = vmatpush3.msra.mxu0 %v6633_v56  ;;  %v6642_v23 = vld [vmem:[#allocation3 + $0xa0] sm:$0xff] }
 0x9bf   :  { %4764 = vmatprep.subr.mxu1 %v7093_v7  ;;  %4169 = vmatprep.subr.mxu0 %v6636_v57 }
 0x9c0   :  { %4765 = vmatpush3.msra.mxu1 %v6342_v40  ;;  %4170 = vmatpush3.msra.mxu0 %v6639_v20  ;;  %v6645_v40 = vld [vmem:[#allocation3 + $0x20] sm:$0xff] }
 0x9c1   :  { %4766 = vmatprep.subr.mxu1 %v7093_v7  ;;  %4171 = vmatprep.subr.mxu0 %v6642_v23 }
 0x9c2   :  { %4767 = vmatpush3.msra.mxu1 %v6349_v16  ;;  %4172 = vmatpush3.msra.mxu0 %v6645_v40  ;;  %v6648_v16 = vld [vmem:[#allocation3 + $0x98] sm:$0xff] }
 0x9c3   :  { %4768 = vmatprep.subr.mxu1 %v7093_v7  ;;  %4173 = vmatprep.subr.mxu0 %v6648_v16 }
 0x9c4   :  { %4769 = vmatpush3.msra.mxu1 %v6356_v18  ;;  %v6651_v18 = vld [vmem:[#allocation3 + $0x18] sm:$0xff] }
 0x9c5   :  { %4770 = vmatprep.subr.mxu1 %v7093_v7  ;;  %4174 = vmatpush3.msra.mxu0 %v6651_v18 }
 0x9c6   :  { %4771 = vmatpush3.msra.mxu1 %v6363_v5 }
 0x9c7   :  { %4772 = vmatprep.subr.mxu1 %v7093_v7 }
 0x9c8   :  { %4773 = vmatpush3.msra.mxu1 %v6371_v49  ;;  %v6654_v49 = vld [vmem:[#allocation3 + $0x90] sm:$0xff] }
 0x9c9   :  { %4777 = vmatprep.subr.mxu1 %v7093_v7  ;;  %4175 = vmatprep.subr.mxu0 %v6654_v49 }
 0x9ca   :  { %4176 = vmatpush3.msra.mxu0 %v6657_v32 }
 0x9cb   :  { %4177 = vmatprep.subr.mxu0 %v6660_v38 }
 0x9cc   :  { %4178 = vmatpush3.msra.mxu0 %v6664_v63 }
 0x9cd   :  { %4179 = vmatprep.subr.mxu0 %v6667_v8 }
 0x9ce   :  { %4180 = vmatpush3.msra.mxu0 %v6671_v42 }
 0x9cf   :  { %4201 = vmatprep.subr.mxu0 %v6697_v9 }
 0x9e9   :  { %v1952_v39 = vpop.xlane.xlu0 %1951 }
 0x9ea   :  { %4984 = vlog2.f32 %v1952_v39  ;;  %v6793_v39 = vld [vmem:[%s7059_s3 + $0x30] sm:$0xff] }
 0x9f7   :  { %v4985_v5 = vpop.eup %4984 }
 0x9f8   :  { %v1954_v54 = vmul.f32 0.6931472, %v4985_v5  ;;  %v6800_v5 = vld [vmem:[%s7059_s3 + $0x28] sm:$0xff] }
 0x9fa   :  { %v1955_v48 = vadd.f32 %v1954_v54, %v6534_v2  ;;  %v6695_v2 = vld [vmem:[%s7059_s3 + $0x78] sm:$0xff]  ;;  %v6807_v54 = vld [vmem:[%s7059_s3 + $0x20] sm:$0xff] }
 0x9fc   :  { %v1956_v27 = vsub.f32 %v6460_v34, %v1955_v48  ;;  %v6681_v34 = vld [vmem:[%s7060_s4] ss:$0 sm:$0xff]  ;;  %v6814_v48 = vld [vmem:[%s7059_s3 + $0x18] sm:$0xff] }
 0x9fe   :  { %1958 = vst [vmem:[#allocation7 + $0x40] sm:$0xff] %v1956_v27 }
 0xa21   :  { %v6674_v29 = vpop.xlane.xlu1 %2158 }
 0xa22   :  { %v2160_v26 = vsub.f32 %v6539_v10, %v6674_v29 }
 0xa24   :  { %v2161_v28 = vmul.f32 1.442695, %v2160_v26  ;;  %v6821_v26 = vld [vmem:[%s7059_s3 + $0x10] sm:$0xff] }
 0xa26   :  { %4986 = vpow2.f32 %v2161_v28 }
 0xa33   :  { %v4987_v31 = vpop.eup %4986 }
 0xa34   :  { %2163 = vadd.xlane.f32.xlu0 %v4987_v31  ;;  %v6828_v31 = vld [vmem:[%s7059_s3 + $0x8] sm:$0xff] }
 0xa69   :  { %v2366_v58 = vpop.f32.mrf.mxu1 }
 0xa6a   :  { %v6684_v59 = vadd.f32 %v6681_v34, %v2366_v58  ;;  %v4129_v60 = vpop.f32.mrf.mxu0 }
 0xa6b   :  { %v4741_v61 = vpop.f32.mrf.mxu1 }
 0xa6c   :  { %v4130_v62 = vpop.f32.mrf.mxu0  ;;  %2370 = vmax.xlane.f32.xlu1 %v6684_v59 }
 0xa6d   :  { %v4131_v30 = vadd.f32 %v4130_v62, %v4129_v60  ;;  %v6836_v60 = vld [vmem:[%s7059_s3] sm:$0xff]  ;;  %s5099_s3 = smov [#allocation6]  }
 0xa6e   :  { %s3449_s0 = sshll.u32 %s5099_s3, 4  ;;  %s3450_s0 = int_to_ptr.vmem [resolvable:$true] %s3449_s0 }
 0xa6f   :  { %4988 = vtanh.f32 %v4131_v30  ;;  %s5046_s20 = scalar_lea.vmem %s3450_s0, 2048  ;;  %p5051_p6 = scmp.lt.s32.totalorder %s3450_s0, %s3450_s0 }
 0xa70   :  { %p5047_p5 = scmp.ne.s32.totalorder %s3450_s0, %s5046_s20  ;;  %p5052_p7 = scmp.lt.s32.totalorder %s5046_s20, %s5046_s20 }
 0xa72   :  { %p5053_p8 = por %p5052_p7, %p5051_p6 }
 0xa74   :  { %p5054_p9 = pnand %p5053_p8, %p5047_p5 }
 0xa7c   :  { %v4989_v36 = vpop.eup %4988 }
 0xa7d   :  { %2495 = vst [vmem:[#allocation6 + $0x58] sm:$0xff] %v4989_v36  ;;  %4775 = vmatmul.mubr.f32.vlgmr.msra.gmra.mxu1 %v4989_v36  ;;  %2699 = vmatprep.mubr.f32.mxu0 %v4989_v36 }
 0xa7e   :  { %3515 = vmatmul.mubr.msk.f32.vlgmr.msra.gmra.mxu0 %vm2600_vm13, %v7092_v44  ;;  %4809 = vmatprep.mubr.msk.f32.mxu1 %vm5098_vm1, %v7093_v7 }
 0xa7f   :  { %4778 = vmatpush3.msra.mxu1 %v6695_v2  ;;  %4202 = vmatpush3.msra.mxu0 %v6557_v47 }
 0xa80   :  { %4779 = vmatprep.subr.mxu1 %v7093_v7  ;;  %4203 = vmatprep.subr.mxu0 %v6559_v15 }
 0xa81   :  { %4780 = vmatpush3.msra.mxu1 %v6702_v19  ;;  %4204 = vmatpush3.msra.mxu0 %v6561_v17 }
 0xa82   :  { %4781 = vmatprep.subr.mxu1 %v7093_v7  ;;  %4205 = vmatprep.subr.mxu0 %v6565_v1 }
 0xa83   :  { %4782 = vmatpush3.msra.mxu1 %v6711_v12  ;;  %4206 = vmatpush3.msra.mxu0 %v6569_v21 }
 0xa84   :  { %4783 = vmatprep.subr.mxu1 %v7093_v7  ;;  %4207 = vmatprep.subr.mxu0 %v6573_v22 }
 0xa85   :  { %4784 = vmatpush3.msra.mxu1 %v6720_v52  ;;  %4208 = vmatpush3.msra.mxu0 %v6577_v24 }
 0xa86   :  { %4785 = vmatprep.subr.mxu1 %v7093_v7  ;;  %4209 = vmatprep.subr.mxu0 %v6581_v41 }
 0xa87   :  { %4786 = vmatpush3.msra.mxu1 %v6729_v46  ;;  %4210 = vmatpush3.msra.mxu0 %v6585_v13 }
 0xa88   :  { %4787 = vmatprep.subr.mxu1 %v7093_v7  ;;  %4211 = vmatprep.subr.mxu0 %v6589_v43 }
 0xa89   :  { %4788 = vmatpush3.msra.mxu1 %v6738_v0  ;;  %4212 = vmatpush3.msra.mxu0 %v6609_v3 }
 0xa8a   :  { %4789 = vmatprep.subr.mxu1 %v7093_v7  ;;  %4213 = vmatprep.subr.mxu0 %v6612_v33 }
 0xa8b   :  { %4214 = vmatpush3.msra.mxu0 %v6615_v35  ;;  %4790 = vmatpush3.msra.mxu1 %v6772_v14 }
 0xa8c   :  { %4215 = vmatprep.subr.mxu0 %v6618_v37  ;;  %4791 = vmatprep.subr.mxu1 %v7093_v7 }
 0xa8d   :  { %4216 = vmatpush3.msra.mxu0 %v6621_v45  ;;  %4792 = vmatpush3.msra.mxu1 %v6779_v25 }
 0xa8e   :  { %4217 = vmatprep.subr.mxu0 %v6624_v6  ;;  %4793 = vmatprep.subr.mxu1 %v7093_v7 }
 0xa8f   :  { %4218 = vmatpush3.msra.mxu0 %v6627_v53  ;;  %4794 = vmatpush3.msra.mxu1 %v6786_v11 }
 0xa90   :  { %4219 = vmatprep.subr.mxu0 %v6630_v55  ;;  %4795 = vmatprep.subr.mxu1 %v7093_v7 }
 0xa91   :  { %4220 = vmatpush3.msra.mxu0 %v6633_v56  ;;  %4796 = vmatpush3.msra.mxu1 %v6793_v39 }
 0xa92   :  { %4221 = vmatprep.subr.mxu0 %v6636_v57  ;;  %4797 = vmatprep.subr.mxu1 %v7093_v7 }
 0xa93   :  { %4222 = vmatpush3.msra.mxu0 %v6639_v20  ;;  %4798 = vmatpush3.msra.mxu1 %v6800_v5 }
 0xa94   :  { %4223 = vmatprep.subr.mxu0 %v6642_v23  ;;  %4799 = vmatprep.subr.mxu1 %v7093_v7 }
 0xa95   :  { %4224 = vmatpush3.msra.mxu0 %v6645_v40  ;;  %4800 = vmatpush3.msra.mxu1 %v6807_v54 }
 0xa96   :  { %4225 = vmatprep.subr.mxu0 %v6648_v16  ;;  %4801 = vmatprep.subr.mxu1 %v7093_v7 }
 0xa97   :  { %4226 = vmatpush3.msra.mxu0 %v6651_v18  ;;  %4802 = vmatpush3.msra.mxu1 %v6814_v48 }
 0xa98   :  { %4227 = vmatprep.subr.mxu0 %v6654_v49  ;;  %4803 = vmatprep.subr.mxu1 %v7093_v7 }
 0xa99   :  { %4228 = vmatpush3.msra.mxu0 %v6657_v32  ;;  %4804 = vmatpush3.msra.mxu1 %v6821_v26 }
 0xa9a   :  { %4229 = vmatprep.subr.mxu0 %v6660_v38  ;;  %4805 = vmatprep.subr.mxu1 %v7093_v7 }
 0xa9b   :  { %4230 = vmatpush3.msra.mxu0 %v6664_v63  ;;  %4806 = vmatpush3.msra.mxu1 %v6828_v31 }
 0xa9c   :  { %4231 = vmatprep.subr.mxu0 %v6667_v8  ;;  %4807 = vmatprep.subr.mxu1 %v7093_v7 }
 0xa9d   :  { %4232 = vmatpush3.msra.mxu0 %v6671_v42  ;;  %4808 = vmatpush3.msra.mxu1 %v6836_v60 }
 0xa9e   :  { %4253 = vmatprep.subr.mxu0 %v6697_v9  ;;  %4812 = vmatprep.subr.mxu1 %v7093_v7  ;;  %v7114_v9 = vld [vmem:[#allocation19_spill] sm:$0xff] }
 0xa9f   :  { %vm2812_vm14 = vcmp.eq.s32.totalorder %v5309_v50, %v7114_v9  ;;  %v7115_v9 = vld [vmem:[#allocation12_spill] sm:$0xff] }
 0xabd   :  { %v2164_v4 = vpop.xlane.xlu0 %2163 }
 0xabe   :  { %4990 = vlog2.f32 %v2164_v4 }
 0xacb   :  { %v4991_v27 = vpop.eup %4990 }
 0xacc   :  { %v2166_v28 = vmul.f32 0.6931472, %v4991_v27 }
 0xace   :  { %v2167_v58 = vadd.f32 %v2166_v28, %v6674_v29 }
 0xad0   :  { %v2168_v61 = vsub.f32 %v6539_v10, %v2167_v58 }
 0xad2   :  { %2170 = vst [vmem:[#allocation7 + $0x48] sm:$0xff] %v2168_v61 }
 0xaf5   :  { %v6841_v62 = vpop.xlane.xlu1 %2370 }
 0xaf6   :  { %v2372_v29 = vsub.f32 %v6684_v59, %v6841_v62 }
 0xaf8   :  { %v2373_v30 = vmul.f32 1.442695, %v2372_v29 }
 0xafa   :  { %4992 = vpow2.f32 %v2373_v30 }
 0xb07   :  { %v4993_v36 = vpop.eup %4992 }
 0xb08   :  { %2375 = vadd.xlane.f32.xlu0 %v4993_v36 }
 0xb3d   :  { %v2578_v51 = vpop.f32.mrf.mxu1 }
 0xb3e   :  { %v6846_v4 = vadd.f32 %v6681_v34, %v2578_v51  ;;  %v4181_v27 = vpop.f32.mrf.mxu0 }
 0xb3f   :  { %v4776_v10 = vpop.f32.mrf.mxu1 }
 0xb40   :  { %v4182_v28 = vpop.f32.mrf.mxu0  ;;  %2582 = vmax.xlane.f32.xlu1 %v6846_v4 }
 0xb41   :  { %v4183_v58 = vadd.f32 %v4182_v28, %v4181_v27 }
 0xb43   :  { %4994 = vtanh.f32 %v4183_v58 }
 0xb50   :  { %v4995_v61 = vpop.eup %4994 }
 0xb51   :  { %2707 = vst [vmem:[#allocation6 + $0x60] sm:$0xff] %v4995_v61  ;;  %4810 = vmatmul.mubr.f32.vlgmr.msra.gmra.mxu1 %v4995_v61  ;;  %2911 = vmatprep.mubr.f32.mxu0 %v4995_v61 }
 0xb52   :  { %3518 = vmatmul.mubr.msk.f32.vlgmr.msra.gmra.mxu0 %vm2812_vm14, %v7092_v44  ;;  %4813 = vmatpush3.msra.mxu1 %v6695_v2 }
 0xb53   :  { %4814 = vmatprep.subr.mxu1 %v7093_v7  ;;  %4254 = vmatpush3.msra.mxu0 %v6557_v47 }
 0xb54   :  { %4815 = vmatpush3.msra.mxu1 %v6702_v19  ;;  %4255 = vmatprep.subr.mxu0 %v6559_v15 }
 0xb55   :  { %4816 = vmatprep.subr.mxu1 %v7093_v7  ;;  %4256 = vmatpush3.msra.mxu0 %v6561_v17 }
 0xb56   :  { %4817 = vmatpush3.msra.mxu1 %v6711_v12  ;;  %4257 = vmatprep.subr.mxu0 %v6565_v1 }
 0xb57   :  { %4818 = vmatprep.subr.mxu1 %v7093_v7  ;;  %4258 = vmatpush3.msra.mxu0 %v6569_v21 }
 0xb58   :  { %4819 = vmatpush3.msra.mxu1 %v6720_v52  ;;  %4259 = vmatprep.subr.mxu0 %v6573_v22 }
 0xb59   :  { %4820 = vmatprep.subr.mxu1 %v7093_v7  ;;  %4260 = vmatpush3.msra.mxu0 %v6577_v24 }
 0xb5a   :  { %4821 = vmatpush3.msra.mxu1 %v6729_v46  ;;  %4261 = vmatprep.subr.mxu0 %v6581_v41 }
 0xb5b   :  { %4822 = vmatprep.subr.mxu1 %v7093_v7  ;;  %4262 = vmatpush3.msra.mxu0 %v6585_v13 }
 0xb5c   :  { %4823 = vmatpush3.msra.mxu1 %v6738_v0  ;;  %4263 = vmatprep.subr.mxu0 %v6589_v43 }
 0xb5d   :  { %4824 = vmatprep.subr.mxu1 %v7093_v7  ;;  %4264 = vmatpush3.msra.mxu0 %v6609_v3 }
 0xb5e   :  { %4825 = vmatpush3.msra.mxu1 %v6772_v14  ;;  %4265 = vmatprep.subr.mxu0 %v6612_v33 }
 0xb5f   :  { %4826 = vmatprep.subr.mxu1 %v7093_v7  ;;  %4266 = vmatpush3.msra.mxu0 %v6615_v35 }
 0xb60   :  { %4827 = vmatpush3.msra.mxu1 %v6779_v25  ;;  %4267 = vmatprep.subr.mxu0 %v6618_v37 }
 0xb61   :  { %4828 = vmatprep.subr.mxu1 %v7093_v7  ;;  %4268 = vmatpush3.msra.mxu0 %v6621_v45 }
 0xb62   :  { %4829 = vmatpush3.msra.mxu1 %v6786_v11  ;;  %4269 = vmatprep.subr.mxu0 %v6624_v6 }
 0xb63   :  { %4830 = vmatprep.subr.mxu1 %v7093_v7  ;;  %4270 = vmatpush3.msra.mxu0 %v6627_v53 }
 0xb64   :  { %4831 = vmatpush3.msra.mxu1 %v6793_v39  ;;  %4271 = vmatprep.subr.mxu0 %v6630_v55 }
 0xb65   :  { %4832 = vmatprep.subr.mxu1 %v7093_v7  ;;  %4272 = vmatpush3.msra.mxu0 %v6633_v56 }
 0xb66   :  { %4833 = vmatpush3.msra.mxu1 %v6800_v5  ;;  %4273 = vmatprep.subr.mxu0 %v6636_v57 }
 0xb67   :  { %4834 = vmatprep.subr.mxu1 %v7093_v7  ;;  %4274 = vmatpush3.msra.mxu0 %v6639_v20 }
 0xb68   :  { %4835 = vmatpush3.msra.mxu1 %v6807_v54  ;;  %4275 = vmatprep.subr.mxu0 %v6642_v23 }
 0xb69   :  { %4836 = vmatprep.subr.mxu1 %v7093_v7  ;;  %4276 = vmatpush3.msra.mxu0 %v6645_v40 }
 0xb6a   :  { %4837 = vmatpush3.msra.mxu1 %v6814_v48  ;;  %4277 = vmatprep.subr.mxu0 %v6648_v16 }
 0xb6b   :  { %4838 = vmatprep.subr.mxu1 %v7093_v7  ;;  %4278 = vmatpush3.msra.mxu0 %v6651_v18 }
 0xb6c   :  { %4839 = vmatpush3.msra.mxu1 %v6821_v26  ;;  %4279 = vmatprep.subr.mxu0 %v6654_v49 }
 0xb6d   :  { %4840 = vmatprep.subr.mxu1 %v7093_v7  ;;  %4280 = vmatpush3.msra.mxu0 %v6657_v32 }
 0xb6e   :  { %4841 = vmatpush3.msra.mxu1 %v6828_v31  ;;  %4281 = vmatprep.subr.mxu0 %v6660_v38 }
 0xb6f   :  { %4842 = vmatprep.subr.mxu1 %v7093_v7  ;;  %4282 = vmatpush3.msra.mxu0 %v6664_v63 }
 0xb70   :  { %4843 = vmatpush3.msra.mxu1 %v6836_v60  ;;  %4844 = vmatprep.mubr.msk.f32.mxu1 %vm5098_vm1, %v7093_v7 }
 0xb71   :  { %4283 = vmatprep.subr.mxu0 %v6667_v8  ;;  %4847 = vmatprep.subr.mxu1 %v7093_v7 }
 0xb72   :  { %4284 = vmatpush3.msra.mxu0 %v6671_v42 }
 0xb73   :  { %4305 = vmatprep.subr.mxu0 %v7115_v9 }
 0xb91   :  { %v2376_v29 = vpop.xlane.xlu0 %2375 }
 0xb92   :  { %4996 = vlog2.f32 %v2376_v29 }
 0xb9f   :  { %v4997_v30 = vpop.eup %4996 }
 0xba0   :  { %v2378_v36 = vmul.f32 0.6931472, %v4997_v30 }
 0xba2   :  { %v2379_v51 = vadd.f32 %v2378_v36, %v6841_v62  ;;  %v7116_v36 = vld [vmem:[#allocation15_spill] sm:$0xff] }
 0xba3   :  { %vm3024_vm15 = vcmp.eq.s32.totalorder %v5309_v50, %v7116_v36 }
 0xba4   :  { %v2380_v27 = vsub.f32 %v6684_v59, %v2379_v51 }
 0xba6   :  { %2382 = vst [vmem:[#allocation7 + $0x50] sm:$0xff] %v2380_v27 }
 0xbc9   :  { %v6920_v10 = vpop.xlane.xlu1 %2582 }
 0xbca   :  { %v2584_v28 = vsub.f32 %v6846_v4, %v6920_v10 }
 0xbcc   :  { %v2585_v58 = vmul.f32 1.442695, %v2584_v28 }
 0xbce   :  { %4998 = vpow2.f32 %v2585_v58 }
 0xbdb   :  { %v4999_v61 = vpop.eup %4998 }
 0xbdc   :  { %2587 = vadd.xlane.f32.xlu0 %v4999_v61 }
 0xc11   :  { %v2790_v42 = vpop.f32.mrf.mxu1 }
 0xc12   :  { %v6925_v9 = vadd.f32 %v6681_v34, %v2790_v42  ;;  %v4233_v29 = vpop.f32.mrf.mxu0 }
 0xc13   :  { %v4811_v30 = vpop.f32.mrf.mxu1 }
 0xc14   :  { %v4234_v8 = vpop.f32.mrf.mxu0  ;;  %2794 = vmax.xlane.f32.xlu1 %v6925_v9 }
 0xc15   :  { %v4235_v59 = vadd.f32 %v4234_v8, %v4233_v29 }
 0xc17   :  { %5000 = vtanh.f32 %v4235_v59 }
 0xc24   :  { %v5001_v62 = vpop.eup %5000 }
 0xc25   :  { %2919 = vst [vmem:[#allocation6 + $0x68] sm:$0xff] %v5001_v62  ;;  %4845 = vmatmul.mubr.f32.vlgmr.msra.gmra.mxu1 %v5001_v62  ;;  %3123 = vmatprep.mubr.f32.mxu0 %v5001_v62 }
 0xc26   :  { %3521 = vmatmul.mubr.msk.f32.vlgmr.msra.gmra.mxu0 %vm3024_vm15, %v7092_v44  ;;  %4848 = vmatpush3.msra.mxu1 %v6695_v2 }
 0xc27   :  { %4849 = vmatprep.subr.mxu1 %v7093_v7  ;;  %4306 = vmatpush3.msra.mxu0 %v6557_v47  ;;  %v7117_v47 = vld [vmem:[#allocation23_spill] sm:$0xff] }
 0xc28   :  { %4850 = vmatpush3.msra.mxu1 %v6702_v19  ;;  %4307 = vmatprep.subr.mxu0 %v6559_v15  ;;  %v7118_v15 = vld [vmem:[#allocation16_spill] sm:$0xff] }
 0xc29   :  { %4851 = vmatprep.subr.mxu1 %v7093_v7  ;;  %4308 = vmatpush3.msra.mxu0 %v6561_v17 }
 0xc2a   :  { %4852 = vmatpush3.msra.mxu1 %v6711_v12  ;;  %4309 = vmatprep.subr.mxu0 %v6565_v1 }
 0xc2b   :  { %4853 = vmatprep.subr.mxu1 %v7093_v7  ;;  %4310 = vmatpush3.msra.mxu0 %v6569_v21 }
 0xc2c   :  { %4854 = vmatpush3.msra.mxu1 %v6720_v52  ;;  %4311 = vmatprep.subr.mxu0 %v6573_v22 }
 0xc2d   :  { %4855 = vmatprep.subr.mxu1 %v7093_v7  ;;  %4312 = vmatpush3.msra.mxu0 %v6577_v24 }
 0xc2e   :  { %4856 = vmatpush3.msra.mxu1 %v6729_v46  ;;  %4313 = vmatprep.subr.mxu0 %v6581_v41 }
 0xc2f   :  { %4857 = vmatprep.subr.mxu1 %v7093_v7  ;;  %4314 = vmatpush3.msra.mxu0 %v6585_v13 }
 0xc30   :  { %4858 = vmatpush3.msra.mxu1 %v6738_v0  ;;  %4315 = vmatprep.subr.mxu0 %v6589_v43 }
 0xc31   :  { %4859 = vmatprep.subr.mxu1 %v7093_v7  ;;  %4316 = vmatpush3.msra.mxu0 %v6609_v3 }
 0xc32   :  { %4860 = vmatpush3.msra.mxu1 %v6772_v14  ;;  %4317 = vmatprep.subr.mxu0 %v6612_v33 }
 0xc33   :  { %4861 = vmatprep.subr.mxu1 %v7093_v7  ;;  %4318 = vmatpush3.msra.mxu0 %v6615_v35 }
 0xc34   :  { %4862 = vmatpush3.msra.mxu1 %v6779_v25  ;;  %4319 = vmatprep.subr.mxu0 %v6618_v37 }
 0xc35   :  { %4863 = vmatprep.subr.mxu1 %v7093_v7  ;;  %4320 = vmatpush3.msra.mxu0 %v6621_v45 }
 0xc36   :  { %4864 = vmatpush3.msra.mxu1 %v6786_v11  ;;  %4321 = vmatprep.subr.mxu0 %v6624_v6 }
 0xc37   :  { %4865 = vmatprep.subr.mxu1 %v7093_v7  ;;  %4322 = vmatpush3.msra.mxu0 %v6627_v53 }
 0xc38   :  { %4866 = vmatpush3.msra.mxu1 %v6793_v39  ;;  %4323 = vmatprep.subr.mxu0 %v6630_v55 }
 0xc39   :  { %4867 = vmatprep.subr.mxu1 %v7093_v7  ;;  %4324 = vmatpush3.msra.mxu0 %v6633_v56  ;;  %v7119_v56 = vld [vmem:[#allocation20_spill] sm:$0xff] }
 0xc3a   :  { %4868 = vmatpush3.msra.mxu1 %v6800_v5  ;;  %4325 = vmatprep.subr.mxu0 %v6636_v57  ;;  %vm3236_vm0 = vcmp.eq.s32.totalorder %v5309_v50, %v7119_v56 }
 0xc3b   :  { %4869 = vmatprep.subr.mxu1 %v7093_v7  ;;  %4326 = vmatpush3.msra.mxu0 %v6639_v20 }
 0xc3c   :  { %4870 = vmatpush3.msra.mxu1 %v6807_v54  ;;  %4327 = vmatprep.subr.mxu0 %v6642_v23 }
 0xc3d   :  { %4871 = vmatprep.subr.mxu1 %v7093_v7  ;;  %4328 = vmatpush3.msra.mxu0 %v6645_v40 }
 0xc3e   :  { %4872 = vmatpush3.msra.mxu1 %v6814_v48  ;;  %4329 = vmatprep.subr.mxu0 %v6648_v16 }
 0xc3f   :  { %4873 = vmatprep.subr.mxu1 %v7093_v7  ;;  %4330 = vmatpush3.msra.mxu0 %v6651_v18 }
 0xc40   :  { %4874 = vmatpush3.msra.mxu1 %v6821_v26  ;;  %4331 = vmatprep.subr.mxu0 %v6654_v49 }
 0xc41   :  { %4875 = vmatprep.subr.mxu1 %v7093_v7  ;;  %4332 = vmatpush3.msra.mxu0 %v6657_v32 }
 0xc42   :  { %4876 = vmatpush3.msra.mxu1 %v6828_v31  ;;  %4333 = vmatprep.subr.mxu0 %v6660_v38 }
 0xc43   :  { %4877 = vmatprep.subr.mxu1 %v7093_v7  ;;  %4334 = vmatpush3.msra.mxu0 %v6664_v63 }
 0xc44   :  { %4878 = vmatpush3.msra.mxu1 %v6836_v60  ;;  %4879 = vmatprep.mubr.msk.f32.mxu1 %vm5098_vm1, %v7093_v7 }
 0xc45   :  { %4335 = vmatprep.subr.mxu0 %v7117_v47  ;;  %4882 = vmatprep.subr.mxu1 %v7093_v7 }
 0xc46   :  { %4336 = vmatpush3.msra.mxu0 %v7118_v15 }
 0xc65   :  { %v2588_v17 = vpop.xlane.xlu0 %2587 }
 0xc66   :  { %5002 = vlog2.f32 %v2588_v17 }
 0xc73   :  { %v5003_v1 = vpop.eup %5002 }
 0xc74   :  { %v2590_v21 = vmul.f32 0.6931472, %v5003_v1 }
 0xc76   :  { %v2591_v22 = vadd.f32 %v2590_v21, %v6920_v10 }
 0xc78   :  { %v2592_v24 = vsub.f32 %v6846_v4, %v2591_v22 }
 0xc7a   :  { %2594 = vst [vmem:[#allocation7 + $0x58] sm:$0xff] %v2592_v24 }
 0xc9d   :  { %v2795_v41 = vpop.xlane.xlu1 %2794 }
 0xc9e   :  { %v2796_v13 = vsub.f32 %v6925_v9, %v2795_v41 }
 0xca0   :  { %v2797_v43 = vmul.f32 1.442695, %v2796_v13 }
 0xca2   :  { %5004 = vpow2.f32 %v2797_v43 }
 0xcaf   :  { %v5005_v3 = vpop.eup %5004 }
 0xcb0   :  { %2799 = vadd.xlane.f32.xlu0 %v5005_v3 }
 0xce5   :  { %v3002_v33 = vpop.f32.mrf.mxu1 }
 0xce6   :  { %v7000_v35 = vadd.f32 %v6681_v34, %v3002_v33  ;;  %v4285_v37 = vpop.f32.mrf.mxu0 }
 0xce7   :  { %v4846_v45 = vpop.f32.mrf.mxu1 }
 0xce8   :  { %v4286_v6 = vpop.f32.mrf.mxu0  ;;  %3006 = vmax.xlane.f32.xlu1 %v7000_v35 }
 0xce9   :  { %v4287_v53 = vadd.f32 %v4286_v6, %v4285_v37 }
 0xceb   :  { %5006 = vtanh.f32 %v4287_v53 }
 0xcf8   :  { %v5007_v55 = vpop.eup %5006 }
 0xcf9   :  { %3131 = vst [vmem:[#allocation6 + $0x70] sm:$0xff] %v5007_v55  ;;  %4880 = vmatmul.mubr.f32.vlgmr.msra.gmra.mxu1 %v5007_v55  ;;  %3335 = vmatprep.mubr.f32.mxu0 %v5007_v55 }
 0xcfa   :  { %3524 = vmatmul.mubr.msk.f32.vlgmr.msra.gmra.mxu0 %vm3236_vm0, %v7092_v44  ;;  %4883 = vmatpush3.msra.mxu1 %v6695_v2 }
 0xcfb   :  { %4884 = vmatprep.subr.mxu1 %v7093_v7  ;;  %4914 = vmatprep.mubr.msk.f32.mxu1 %vm5098_vm1, %v7093_v7 }
 0xcfc   :  { %4885 = vmatpush3.msra.mxu1 %v6702_v19 }
 0xcfd   :  { %4886 = vmatprep.subr.mxu1 %v7093_v7 }
 0xcfe   :  { %4887 = vmatpush3.msra.mxu1 %v6711_v12 }
 0xcff   :  { %4888 = vmatprep.subr.mxu1 %v7093_v7 }
 0xd00   :  { %4889 = vmatpush3.msra.mxu1 %v6720_v52 }
 0xd01   :  { %4890 = vmatprep.subr.mxu1 %v7093_v7 }
 0xd02   :  { %4891 = vmatpush3.msra.mxu1 %v6729_v46 }
 0xd03   :  { %4892 = vmatprep.subr.mxu1 %v7093_v7 }
 0xd04   :  { %4893 = vmatpush3.msra.mxu1 %v6738_v0 }
 0xd05   :  { %4894 = vmatprep.subr.mxu1 %v7093_v7 }
 0xd06   :  { %4895 = vmatpush3.msra.mxu1 %v6772_v14 }
 0xd07   :  { %4896 = vmatprep.subr.mxu1 %v7093_v7 }
 0xd08   :  { %4897 = vmatpush3.msra.mxu1 %v6779_v25 }
 0xd09   :  { %4898 = vmatprep.subr.mxu1 %v7093_v7 }
 0xd0a   :  { %4899 = vmatpush3.msra.mxu1 %v6786_v11 }
 0xd0b   :  { %4900 = vmatprep.subr.mxu1 %v7093_v7 }
 0xd0c   :  { %4901 = vmatpush3.msra.mxu1 %v6793_v39 }
 0xd0d   :  { %4902 = vmatprep.subr.mxu1 %v7093_v7 }
 0xd0e   :  { %4903 = vmatpush3.msra.mxu1 %v6800_v5 }
 0xd0f   :  { %4904 = vmatprep.subr.mxu1 %v7093_v7 }
 0xd10   :  { %4905 = vmatpush3.msra.mxu1 %v6807_v54 }
 0xd11   :  { %4906 = vmatprep.subr.mxu1 %v7093_v7 }
 0xd12   :  { %4907 = vmatpush3.msra.mxu1 %v6814_v48 }
 0xd13   :  { %4908 = vmatprep.subr.mxu1 %v7093_v7 }
 0xd14   :  { %4909 = vmatpush3.msra.mxu1 %v6821_v26 }
 0xd15   :  { %4910 = vmatprep.subr.mxu1 %v7093_v7 }
 0xd16   :  { %4911 = vmatpush3.msra.mxu1 %v6828_v31 }
 0xd17   :  { %4912 = vmatprep.subr.mxu1 %v7093_v7 }
 0xd18   :  { %4913 = vmatpush3.msra.mxu1 %v6836_v60 }
 0xd39   :  { %v2800_v50 = vpop.xlane.xlu0 %2799 }
 0xd3a   :  { %5008 = vlog2.f32 %v2800_v50 }
 0xd47   :  { %v5009_v44 = vpop.eup %5008 }
 0xd48   :  { %v2802_v57 = vmul.f32 0.6931472, %v5009_v44 }
 0xd4a   :  { %v2803_v20 = vadd.f32 %v2802_v57, %v2795_v41 }
 0xd4c   :  { %v2804_v23 = vsub.f32 %v6925_v9, %v2803_v20 }
 0xd4e   :  { %2806 = vst [vmem:[#allocation7 + $0x60] sm:$0xff] %v2804_v23 }
 0xd71   :  { %v3007_v40 = vpop.xlane.xlu1 %3006 }
 0xd72   :  { %v3008_v16 = vsub.f32 %v7000_v35, %v3007_v40 }
 0xd74   :  { %v3009_v18 = vmul.f32 1.442695, %v3008_v16 }
 0xd76   :  { %5010 = vpow2.f32 %v3009_v18 }
 0xd83   :  { %v5011_v49 = vpop.eup %5010 }
 0xd84   :  { %3011 = vadd.xlane.f32.xlu0 %v5011_v49 }
 0xdb9   :  { %v3214_v32 = vpop.f32.mrf.mxu1 }
 0xdba   :  { %v3215_v7 = vadd.f32 %v6681_v34, %v3214_v32  ;;  %v4337_v38 = vpop.f32.mrf.mxu0 }
 0xdbb   :  { %v4881_v63 = vpop.f32.mrf.mxu1 }
 0xdbc   :  { %v4338_v8 = vpop.f32.mrf.mxu0  ;;  %3218 = vmax.xlane.f32.xlu1 %v3215_v7 }
 0xdbd   :  { %v4339_v42 = vadd.f32 %v4338_v8, %v4337_v38 }
 0xdbf   :  { %5012 = vtanh.f32 %v4339_v42 }
 0xdcc   :  { %v5013_v2 = vpop.eup %5012 }
 0xdcd   :  { %3343 = vst [vmem:[#allocation6 + $0x78] sm:$0xff] %v5013_v2  ;;  %4915 = vmatmul.mubr.f32.vlgmr.msra.gmra.mxu1 %v5013_v2 }
 0xe0d   :  { %v3012_v19 = vpop.xlane.xlu0 %3011 }
 0xe0e   :  { %5014 = vlog2.f32 %v3012_v19 }
 0xe1b   :  { %v5015_v12 = vpop.eup %5014 }
 0xe1c   :  { %v3014_v52 = vmul.f32 0.6931472, %v5015_v12 }
 0xe1e   :  { %v3015_v46 = vadd.f32 %v3014_v52, %v3007_v40 }
 0xe20   :  { %v3016_v0 = vsub.f32 %v7000_v35, %v3015_v46 }
 0xe22   :  { %3018 = vst [vmem:[#allocation7 + $0x68] sm:$0xff] %v3016_v0 }
 0xe45   :  { %v3219_v14 = vpop.xlane.xlu1 %3218 }
 0xe46   :  { %v3220_v25 = vsub.f32 %v3215_v7, %v3219_v14 }
 0xe48   :  { %v3221_v11 = vmul.f32 1.442695, %v3220_v25 }
 0xe4a   :  { %5016 = vpow2.f32 %v3221_v11 }
 0xe57   :  { %v5017_v39 = vpop.eup %5016 }
 0xe58   :  { %3223 = vadd.xlane.f32.xlu0 %v5017_v39 }
 0xe8d   :  { %v3426_v5 = vpop.f32.mrf.mxu1 }
 0xe8e   :  { %v3427_v54 = vadd.f32 %v6681_v34, %v3426_v5 }
 0xe8f   :  { %v4916_v48 = vpop.f32.mrf.mxu1 }
 0xe90   :  { %3430 = vmax.xlane.f32.xlu1 %v3427_v54 }
 0xee1   :  { %v3224_v26 = vpop.xlane.xlu0 %3223 }
 0xee2   :  { %5018 = vlog2.f32 %v3224_v26 }
 0xeef   :  { %v5019_v31 = vpop.eup %5018 }
 0xef0   :  { %v3226_v60 = vmul.f32 0.6931472, %v5019_v31 }
 0xef2   :  { %v3227_v4 = vadd.f32 %v3226_v60, %v3219_v14 }
 0xef4   :  { %v3228_v51 = vsub.f32 %v3215_v7, %v3227_v4 }
 0xef6   :  { %3230 = vst [vmem:[#allocation7 + $0x70] sm:$0xff] %v3228_v51 }
 0xf19   :  { %v3431_v27 = vpop.xlane.xlu1 %3430 }
 0xf1a   :  { %v3432_v10 = vsub.f32 %v3427_v54, %v3431_v27 }
 0xf1c   :  { %v3433_v28 = vmul.f32 1.442695, %v3432_v10 }
 0xf1e   :  { %5020 = vpow2.f32 %v3433_v28 }
 0xf2b   :  { %v5021_v58 = vpop.eup %5020 }
 0xf2c   :  { %3435 = vadd.xlane.f32.xlu0 %v5021_v58 }
 0xf2d   :  { %5057 = shalt.err (!%p5054_p9)
}
 0xf2e   :  { %3455 = dma.vmem_to_hbm [thread:$0]  %s3450_s0, 2048, %s7061_s5, [#allocation5], %s5093_s24, %s5093_s24, %s5094_s25  }
 0xf2f   :  { %s5100_s23 = smov [#allocation7]  }
 0xf30   :  { %s3461_s26 = sshll.u32 %s5100_s23, 4  ;;  %s3462_s26 = int_to_ptr.vmem [resolvable:$true] %s3461_s26 }
 0xf31   :  { %s5066_s27 = scalar_lea.vmem %s3462_s26, 2048  ;;  %p5071_p11 = scmp.lt.s32.totalorder %s3462_s26, %s3462_s26 }
 0xf32   :  { %p5067_p10 = scmp.ne.s32.totalorder %s3462_s26, %s5066_s27  ;;  %p5072_p12 = scmp.lt.s32.totalorder %s5066_s27, %s5066_s27 }
 0xf34   :  { %p5073_p13 = por %p5072_p12, %p5071_p11 }
 0xf36   :  { %p5074_p0 = pnand %p5073_p13, %p5067_p10 }
 0xfb5   :  { %v3436_v34 = vpop.xlane.xlu0 %3435 }
 0xfb6   :  { %5022 = vlog2.f32 %v3436_v34 }
 0xfc3   :  { %v5023_v61 = vpop.eup %5022 }
 0xfc4   :  { %v3438_v9 = vmul.f32 0.6931472, %v5023_v61 }
 0xfc6   :  { %v3439_v29 = vadd.f32 %v3438_v9, %v3431_v27 }
 0xfc8   :  { %v3440_v30 = vsub.f32 %v3427_v54, %v3439_v29 }
 0xfca   :  { %3442 = vst [vmem:[#allocation7 + $0x78] sm:$0xff] %v3440_v30 }
 0xfcb   :  { %5077 = shalt.err (!%p5074_p0)
}
 0xfcc   :  { %3467 = dma.vmem_to_hbm [thread:$0]  %s3462_s26, 2048, %s7062_s6, [#allocation8], %s5093_s24, %s5093_s24, %s5094_s25  }
 0xfcd   :  { %5088 = dma.done.wait [#allocation5], 2048  }
 0xfce   :  { %5089 = vsyncadd [#allocation5], 4294965248 }
 0xfcf   :  { %5090 = dma.done.wait [#allocation8], 2048  }
 0xfd0   :  { %5091 = vsyncadd [#allocation8], 4294965248 }
 0xfd1   :  { %3474 = vsyncpa [#allocation4], 1 }
 0xfd2   :  { %3475 = vsyncpa [#allocation5], 1 }
 0xfd3   :  { %3476 = vsyncpa [#allocation8], 1 }

</bundles_post_ra>
